<compile_context>
chip_gen: v6e
topology: v6e:2x2x1
jax: 0.10.0
libtpu: 0.0.40
codegen_flags: <defaults>
</compile_context>

<pallas_src>
import functools

import jax
import jax.numpy as jnp
from jax.experimental import pallas as pl
from jax.experimental.pallas import tpu as pltpu


# ----------------------------------------------------------------------------
# Fused kernel: encoder -> decoder rollout -> projection, whole batch folded.
# ----------------------------------------------------------------------------
def _gcn_lstm_kernel(B, T, HOR,
                     g_ref, x_ref,
                     enc_wx_ref, enc_wh_ref, enc_b_ref,
                     dec_wh0_ref, dec_wh1_ref, dec_xrow_ref, dec_b_ref,
                     proj_w_ref, proj_b_ref,
                     out_ref,
                     xw_ref):
    """
    g_ref       : [B*N, B*K*N]   block-diag of permuted supports:
                                 g[b*N+n, b*K*N + k*N + j] = G[k, n, j]
    x_ref       : [T*B*N, C]     inputs, row order (t, b, n)
    enc_wx_ref  : [C, K*4H]      encoder GCN weight, x rows, k-major columns
    enc_wh_ref  : [H, K*4H]      encoder GCN weight, h rows
    enc_b_ref   : [1, 4H]
    dec_wh0_ref : [H, K*4H]      decoder h-weight (step 0: input is zeros)
    dec_wh1_ref : [H, K*4H]      decoder h-weight with projection folded in
    dec_xrow_ref: [1, K*4H]      proj_b @ dec_Wx (constant input-path term)
    dec_b_ref   : [1, 4H]
    proj_w_ref  : [H, D]
    proj_b_ref  : [1, D]
    out_ref     : [HOR*B*N, D]   row order (j, b, n)
    xw_ref      : VMEM scratch [T*B*N, K*4H] — staged encoder x-path
    """
    f32 = jnp.float32
    BN = g_ref.shape[0]
    N = BN // B
    K = g_ref.shape[1] // BN
    H = enc_wh_ref.shape[0]
    FourH = enc_b_ref.shape[1]

    # Stage the whole encoder x-path with one matmul (off the recurrent chain).
    xw_ref[...] = jnp.dot(x_ref[...], enc_wx_ref[...],
                          preferred_element_type=f32)            # [T*B*N, K*4H]

    g_bd = g_ref[...]                                            # [BN, B*K*N]
    # bias broadcasts hoisted out of the unrolled loops
    enc_bias = jnp.broadcast_to(enc_b_ref[...], (BN, FourH))
    dec_bias = jnp.broadcast_to(dec_b_ref[...], (BN, FourH))

    def cell(zw, bias, h, c):
        # zw[b*N+j, k*4H+q] = sum_p Z[b,j,p] * W[k*(C+H)+p, q]  with Z = [x_t | h]
        # Reorder to rows (b, k, j): every slice is sublane/lane tile aligned
        # (row offsets multiples of 16, lane offsets multiples of 128), so this
        # is whole-vreg data movement — no extra MXU work, no unaligned lanes.
        pieces = [zw[b * N:(b + 1) * N, k * FourH:(k + 1) * FourH]
                  for b in range(B) for k in range(K)]
        r = jnp.concatenate(pieces, axis=0)                      # [B*K*N, 4H]
        # All K supports and both batch elements in ONE dense 128-lane matmul.
        conv = jnp.dot(g_bd, r, preferred_element_type=f32) + bias   # [BN, 4H]
        sig = jax.nn.sigmoid(conv[:, :3 * H])        # only the 3 sigmoid gates
        i = sig[:, 0 * H:1 * H]
        f = sig[:, 1 * H:2 * H]
        o = sig[:, 2 * H:3 * H]
        gg = jnp.tanh(conv[:, 3 * H:])
        c_new = f * c + i * gg
        h_new = o * jnp.tanh(c_new)
        return h_new, c_new

    # recurrent state carried in registers (no VMEM round trip per cell)
    h = jnp.zeros((BN, H), f32)
    c = jnp.zeros((BN, H), f32)

    # --- encoder over the input sequence (static unroll; T is compile-time)
    for t in range(T):
        xw_t = xw_ref[t * BN:(t + 1) * BN, :]
        if t == 0:
            zw = xw_t                                # h == 0: skip the h-matmul
        else:
            zw = xw_t + jnp.dot(h, enc_wh_ref[...], preferred_element_type=f32)
        h, c = cell(zw, enc_bias, h, c)

    # --- decoder rollout; output projection folded off the recurrent chain
    hs = []
    for j in range(HOR):
        if j == 0:
            zw = jnp.dot(h, dec_wh0_ref[...], preferred_element_type=f32)
        else:
            zw = (jnp.dot(h, dec_wh1_ref[...], preferred_element_type=f32)
                  + dec_xrow_ref[...])
        h, c = cell(zw, dec_bias, h, c)
        hs.append(h)

    # --- one projection for all horizon steps + one consolidated store
    h_all = jnp.concatenate(hs, axis=0)                          # [HOR*BN, H]
    out = jnp.dot(h_all, proj_w_ref[...], preferred_element_type=f32) \
        + proj_b_ref[...]
    out_ref[...] = out.astype(out_ref.dtype)


# ----------------------------------------------------------------------------
# pallas_call wrapper: host-side weight/support restacking + single invocation
# ----------------------------------------------------------------------------
@functools.partial(jax.jit, static_argnames=("horizon",))
def gcn_lstm_forward(params, G, x, horizon):
    """x: [B, T, N, C], G: [K, N, N]  ->  outputs [B, horizon, N, D]."""
    hp = jax.lax.Precision.HIGHEST
    B, T, N, C = x.shape
    K = G.shape[0]
    H, D = params["proj_w"].shape
    assert D == C, "autoregressive rollout requires output_dim == input_dim"
    FourH = 4 * H
    K4H = K * FourH

    # Keep the original torch GCN weight layout [K*(C+H), 4H] and widen it once
    # on the host so the kernel needs only two MXU pushes per cell.
    def widen(W):                        # -> (Wx_wide [C,K*4H], Wh_wide [H,K*4H])
        W3 = W.reshape(K, C + H, FourH)
        wx = jnp.transpose(W3[:, :C, :], (1, 0, 2)).reshape(C, K4H)
        wh = jnp.transpose(W3[:, C:, :], (1, 0, 2)).reshape(H, K4H)
        return wx, wh

    enc_wx, enc_wh = widen(params["W_enc"].astype(jnp.float32))
    dec_wx, dec_wh = widen(params["W_dec"].astype(jnp.float32))
    pw = params["proj_w"].astype(jnp.float32)                    # [H, D]
    pb = params["proj_b"].reshape(1, D).astype(jnp.float32)      # [1, D]
    # Fold the decoder input path (deco = h @ pw + pb) into the h path.
    dec_wh_eff = dec_wh + jnp.dot(pw, dec_wx, precision=hp)      # [H, K*4H]
    dec_xrow = jnp.dot(pb, dec_wx, precision=hp)                 # [1, K*4H]
    enc_b = params["b_enc"].reshape(1, FourH).astype(jnp.float32)
    dec_b = params["b_dec"].reshape(1, FourH).astype(jnp.float32)

    # Permuted supports, block-diagonal over the folded batch.
    g_perm = jnp.transpose(G.astype(jnp.float32), (1, 0, 2)).reshape(N, K * N)
    g_bd = jnp.kron(jnp.eye(B, dtype=jnp.float32), g_perm)       # [B*N, B*K*N]

    # Inputs flattened to row order (t, b, n) so per-step slabs are row slices.
    x_flat = jnp.transpose(x.astype(jnp.float32), (1, 0, 2, 3)).reshape(
        T * B * N, C)

    kernel = pl.pallas_call(
        functools.partial(_gcn_lstm_kernel, B, T, horizon),
        out_shape=jax.ShapeDtypeStruct((horizon * B * N, D), jnp.float32),
        grid_spec=pltpu.PrefetchScalarGridSpec(
            num_scalar_prefetch=0,
            grid=(1,),   # whole batch folded into one invocation (see header)
            in_specs=[
                pl.BlockSpec((B * N, B * K * N), lambda i: (0, 0)),  # g_bd
                pl.BlockSpec((T * B * N, C), lambda i: (0, 0)),      # x_flat
                pl.BlockSpec((C, K4H), lambda i: (0, 0)),            # enc Wx wide
                pl.BlockSpec((H, K4H), lambda i: (0, 0)),            # enc Wh wide
                pl.BlockSpec((1, FourH), lambda i: (0, 0)),          # enc b
                pl.BlockSpec((H, K4H), lambda i: (0, 0)),            # dec Wh (j=0)
                pl.BlockSpec((H, K4H), lambda i: (0, 0)),            # dec Wh+proj
                pl.BlockSpec((1, K4H), lambda i: (0, 0)),            # dec x-row
                pl.BlockSpec((1, FourH), lambda i: (0, 0)),          # dec b
                pl.BlockSpec((H, D), lambda i: (0, 0)),              # proj W
                pl.BlockSpec((1, D), lambda i: (0, 0)),              # proj b
            ],
            out_specs=pl.BlockSpec((horizon * B * N, D), lambda i: (0, 0)),
            scratch_shapes=[pltpu.VMEM((T * B * N, K4H), jnp.float32)],
        ),
        compiler_params=pltpu.CompilerParams(
            dimension_semantics=("arbitrary",)),
    )
    out_flat = kernel(g_bd, x_flat, enc_wx, enc_wh, enc_b,
                      dec_wh, dec_wh_eff, dec_xrow, dec_b, pw, pb)
    return out_flat.reshape(horizon, B, N, D).transpose(1, 0, 2, 3)


# ----------------------------------------------------------------------------
# Parameter construction (mirrors the nn.Module __init__ shapes / init)
# ----------------------------------------------------------------------------
def _xavier_normal(key, shape):
    fan_in, fan_out = shape
    std = (2.0 / (fan_in + fan_out)) ** 0.5
    return std * jax.random.normal(key, shape, dtype=jnp.float32)


def init_params(key, K, C, H, output_dim):
    k_enc, k_dec, k_proj = jax.random.split(key, 3)
    return dict(
        W_enc=_xavier_normal(k_enc, (K * (C + H), 4 * H)),   # torch GCN.W
        b_enc=jnp.zeros((4 * H,), jnp.float32),              # torch GCN.b
        W_dec=_xavier_normal(k_dec, (K * (C + H), 4 * H)),
        b_dec=jnp.zeros((4 * H,), jnp.float32),
        proj_w=_xavier_normal(k_proj, (H, output_dim)),
        proj_b=jnp.zeros((output_dim,), jnp.float32),
    )


def compute_cheby_poly(adj, K):
    """adj: [N,N] -> [K,N,N] supports (T0=I, T1=A^T, Tk=2 A^T T_{k-1} - T_{k-2})."""
    p = adj.T.astype(jnp.float32)
    Ts = [jnp.eye(p.shape[0], dtype=jnp.float32), p]
    for _ in range(2, K):
        Ts.append(2.0 * (p @ Ts[-1]) - Ts[-2])
    return jnp.stack(Ts[:K], axis=0)


# ----------------------------------------------------------------------------
# Pure-JAX reference mirroring the PyTorch GCN / GCN-LSTM forward exactly
# ----------------------------------------------------------------------------
def _reference_forward(params, G, x, horizon):
    hp = jax.lax.Precision.HIGHEST
    B, T, N, C = x.shape
    K = G.shape[0]
    H = params["proj_w"].shape[0]

    def gcn(W, b, xg):                                    # == torch GCN.forward
        supports = [jnp.einsum('ij,bjp->bip', G[k], xg, precision=hp)
                    for k in range(K)]
        cat = jnp.concatenate(supports, axis=-1)          # [B, N, K*(C+H)]
        return jnp.einsum('bip,pq->biq', cat, W, precision=hp) + b

    def cell(W, b, x_t, h, c):
        conv = gcn(W, b, jnp.concatenate([x_t, h], axis=-1))
        i = jax.nn.sigmoid(conv[..., 0 * H:1 * H])
        f = jax.nn.sigmoid(conv[..., 1 * H:2 * H])
        o = jax.nn.sigmoid(conv[..., 2 * H:3 * H])
        g = jnp.tanh(conv[..., 3 * H:4 * H])
        c_n = f * c + i * g
        return o * jnp.tanh(c_n), c_n

    h = jnp.zeros((B, N, H), jnp.float32)
    c = jnp.zeros((B, N, H), jnp.float32)
    for t in range(T):
        h, c = cell(params["W_enc"], params["b_enc"], x[:, t], h, c)
    deco = jnp.zeros((B, N, C), jnp.float32)
    outs = []
    for _ in range(horizon):
        h, c = cell(params["W_dec"], params["b_dec"], deco, h, c)
        deco = jnp.einsum('bnh,hd->bnd', h, params["proj_w"], precision=hp) \
            + params["proj_b"]
        outs.append(deco)
    return jnp.stack(outs, axis=1)


# ----------------------------------------------------------------------------
if __name__ == "__main__":
    key = jax.random.PRNGKey(0)
    B, T, N, C = 2, 8, 16, 4          # batch, seq_len, num_nodes, input_dim
    H = 32                            # rnn_units
    K = 3                             # Chebyshev order
    horizon = 3
    output_dim = C                    # autoregressive rollout requires D == C

    k_adj, k_x, k_p, k_b1, k_b2, k_b3 = jax.random.split(key, 6)

    # deterministic synthetic adjacency (row-normalized) + Chebyshev supports
    A = jax.random.uniform(k_adj, (N, N), dtype=jnp.float32)
    A = A / jnp.sum(A, axis=1, keepdims=True)
    P = compute_cheby_poly(A, K)                        # [K, N, N]

    params = init_params(k_p, K, C, H, output_dim)
    # torch inits biases to 0; use small non-zero values so the bias and the
    # folded projection-bias paths are actually exercised by the check.
    params["b_enc"] = 0.1 * jax.random.normal(k_b1, (4 * H,), dtype=jnp.float32)
    params["b_dec"] = 0.1 * jax.random.normal(k_b2, (4 * H,), dtype=jnp.float32)
    params["proj_b"] = 0.1 * jax.random.normal(k_b3, (output_dim,),
                                               dtype=jnp.float32)

    x = jax.random.normal(k_x, (B, T, N, C), dtype=jnp.float32)

    out = gcn_lstm_forward(params, P, x, horizon)
    jax.block_until_ready(out)
    assert out.shape == (B, horizon, N, output_dim), out.shape
    assert bool(jnp.all(jnp.isfinite(out)))

    ref = _reference_forward(params, P, x, horizon)
    max_err = float(jnp.max(jnp.abs(out - ref)))
    assert bool(jnp.allclose(out, ref, atol=5e-3, rtol=5e-3)), max_err
    print("KERNEL_OK")
</pallas_src>

<mosaic_0001>
module attributes {stable_mosaic.version = 11 : i64} {
  func.func @_gcn_lstm_kernel(%arg0: i32, %arg1: memref<32x96xf32, #tpu.memory_space<vmem>>, %arg2: memref<256x4xf32, #tpu.memory_space<vmem>>, %arg3: memref<4x384xf32, #tpu.memory_space<vmem>>, %arg4: memref<32x384xf32, #tpu.memory_space<vmem>>, %arg5: memref<1x128xf32, #tpu.memory_space<vmem>>, %arg6: memref<32x384xf32, #tpu.memory_space<vmem>>, %arg7: memref<32x384xf32, #tpu.memory_space<vmem>>, %arg8: memref<1x384xf32, #tpu.memory_space<vmem>>, %arg9: memref<1x128xf32, #tpu.memory_space<vmem>>, %arg10: memref<32x4xf32, #tpu.memory_space<vmem>>, %arg11: memref<1x4xf32, #tpu.memory_space<vmem>>, %arg12: memref<96x4xf32, #tpu.memory_space<vmem>>, %arg13: memref<256x384xf32, #tpu.memory_space<vmem>>) attributes {dimension_semantics = [#tpu.dimension_semantics<arbitrary>], iteration_bounds = array<i64: 1>, scalar_prefetch = 0 : i64, scratch_operands = 1 : i64, tpu.core_type = #tpu.core_type<tc>, window_params = [{pipeline_mode = #tpu.pipeline_mode<synchronous>, transform_indices = @transform_0, window_bounds = array<i64: 32, 96>}, {pipeline_mode = #tpu.pipeline_mode<synchronous>, transform_indices = @transform_1, window_bounds = array<i64: 256, 4>}, {pipeline_mode = #tpu.pipeline_mode<synchronous>, transform_indices = @transform_2, window_bounds = array<i64: 4, 384>}, {pipeline_mode = #tpu.pipeline_mode<synchronous>, transform_indices = @transform_3, window_bounds = array<i64: 32, 384>}, {pipeline_mode = #tpu.pipeline_mode<synchronous>, transform_indices = @transform_4, window_bounds = array<i64: 1, 128>}, {pipeline_mode = #tpu.pipeline_mode<synchronous>, transform_indices = @transform_5, window_bounds = array<i64: 32, 384>}, {pipeline_mode = #tpu.pipeline_mode<synchronous>, transform_indices = @transform_6, window_bounds = array<i64: 32, 384>}, {pipeline_mode = #tpu.pipeline_mode<synchronous>, transform_indices = @transform_7, window_bounds = array<i64: 1, 384>}, {pipeline_mode = #tpu.pipeline_mode<synchronous>, transform_indices = @transform_8, window_bounds = array<i64: 1, 128>}, {pipeline_mode = #tpu.pipeline_mode<synchronous>, transform_indices = @transform_9, window_bounds = array<i64: 32, 4>}, {pipeline_mode = #tpu.pipeline_mode<synchronous>, transform_indices = @transform_10, window_bounds = array<i64: 1, 4>}, {pipeline_mode = #tpu.pipeline_mode<synchronous>, transform_indices = @transform_11, window_bounds = array<i64: 96, 4>}]} {
    %c0 = arith.constant 0 : index
    %c0_0 = arith.constant 0 : index
    %0 = vector.load %arg2[%c0, %c0_0] : memref<256x4xf32, #tpu.memory_space<vmem>>, vector<256x4xf32>
    %c0_1 = arith.constant 0 : index
    %c0_2 = arith.constant 0 : index
    %1 = vector.load %arg3[%c0_1, %c0_2] : memref<4x384xf32, #tpu.memory_space<vmem>>, vector<4x384xf32>
    %cst = arith.constant dense<0.000000e+00> : vector<256x384xf32>
    %2 = tpu.matmul %0, %1, %cst {dimension_numbers = #tpu.dot_dimension_numbers<[1], [0], [0], [1], [0, 0, 1, 1], [], []>} : vector<256x4xf32>, vector<4x384xf32>, vector<256x384xf32> -> vector<256x384xf32>
    %c0_3 = arith.constant 0 : index
    %c0_4 = arith.constant 0 : index
    %3 = vector.load %arg13[%c0_3, %c0_4] : memref<256x384xf32, #tpu.memory_space<vmem>>, vector<256x384xf32>
    tpu.vector_store %arg13[%c0_3, %c0_4], %2 {strides = array<i32>} : memref<256x384xf32, #tpu.memory_space<vmem>>, vector<256x384xf32>,
    %c0_5 = arith.constant 0 : index
    %c0_6 = arith.constant 0 : index
    %4 = vector.load %arg1[%c0_5, %c0_6] : memref<32x96xf32, #tpu.memory_space<vmem>>, vector<32x96xf32>
    %c0_7 = arith.constant 0 : index
    %c0_8 = arith.constant 0 : index
    %5 = vector.load %arg5[%c0_7, %c0_8] : memref<1x128xf32, #tpu.memory_space<vmem>>, vector<1x128xf32>
    %6 = vector.shape_cast %5 : vector<1x128xf32> to vector<1x128xf32>
    %7 = vector.broadcast %6 : vector<1x128xf32> to vector<32x128xf32>
    %c0_9 = arith.constant 0 : index
    %c0_10 = arith.constant 0 : index
    %8 = vector.load %arg9[%c0_9, %c0_10] : memref<1x128xf32, #tpu.memory_space<vmem>>, vector<1x128xf32>
    %9 = vector.shape_cast %8 : vector<1x128xf32> to vector<1x128xf32>
    %10 = vector.broadcast %9 : vector<1x128xf32> to vector<32x128xf32>
    %cst_11 = arith.constant 0.000000e+00 : f32
    %11 = vector.broadcast %cst_11 : f32 to vector<32x32xf32>
    %c0_12 = arith.constant 0 : index
    %c0_13 = arith.constant 0 : index
    %12 = vector.load %arg13[%c0_12, %c0_13] : memref<256x384xf32, #tpu.memory_space<vmem>>, vector<32x384xf32>
    %13 = vector.extract_strided_slice %12 {offsets = [0, 0], sizes = [16, 128], strides = [1, 1]} : vector<32x384xf32> to vector<16x128xf32>
    %14 = vector.extract_strided_slice %12 {offsets = [0, 128], sizes = [16, 128], strides = [1, 1]} : vector<32x384xf32> to vector<16x128xf32>
    %15 = vector.extract_strided_slice %12 {offsets = [0, 256], sizes = [16, 128], strides = [1, 1]} : vector<32x384xf32> to vector<16x128xf32>
    %16 = vector.extract_strided_slice %12 {offsets = [16, 0], sizes = [16, 128], strides = [1, 1]} : vector<32x384xf32> to vector<16x128xf32>
    %17 = vector.extract_strided_slice %12 {offsets = [16, 128], sizes = [16, 128], strides = [1, 1]} : vector<32x384xf32> to vector<16x128xf32>
    %18 = vector.extract_strided_slice %12 {offsets = [16, 256], sizes = [16, 128], strides = [1, 1]} : vector<32x384xf32> to vector<16x128xf32>
    %19 = tpu.concatenate %13, %14, %15, %16, %17, %18 in 0 : vector<16x128xf32>, vector<16x128xf32>, vector<16x128xf32>, vector<16x128xf32>, vector<16x128xf32>, vector<16x128xf32> -> vector<96x128xf32>
    %cst_14 = arith.constant dense<0.000000e+00> : vector<32x128xf32>
    %20 = tpu.matmul %4, %19, %cst_14 {dimension_numbers = #tpu.dot_dimension_numbers<[1], [0], [0], [1], [0, 0, 1, 1], [], []>} : vector<32x96xf32>, vector<96x128xf32>, vector<32x128xf32> -> vector<32x128xf32>
    %21 = arith.addf %20, %7 : vector<32x128xf32>
    %22 = vector.extract_strided_slice %21 {offsets = [0, 0], sizes = [32, 96], strides = [1, 1]} : vector<32x128xf32> to vector<32x96xf32>
    %23 = arith.negf %22 : vector<32x96xf32>
    %24 = math.exp %23 : vector<32x96xf32>
    %cst_15 = arith.constant 1.000000e+00 : f32
    %25 = vector.broadcast %cst_15 : f32 to vector<32x96xf32>
    %26 = arith.addf %25, %24 : vector<32x96xf32>
    %27 = arith.divf %25, %26 : vector<32x96xf32>
    %28 = vector.extract_strided_slice %27 {offsets = [0, 0], sizes = [32, 32], strides = [1, 1]} : vector<32x96xf32> to vector<32x32xf32>
    %29 = vector.extract_strided_slice %27 {offsets = [0, 32], sizes = [32, 32], strides = [1, 1]} : vector<32x96xf32> to vector<32x32xf32>
    %30 = vector.extract_strided_slice %27 {offsets = [0, 64], sizes = [32, 32], strides = [1, 1]} : vector<32x96xf32> to vector<32x32xf32>
    %31 = vector.extract_strided_slice %21 {offsets = [0, 96], sizes = [32, 32], strides = [1, 1]} : vector<32x128xf32> to vector<32x32xf32>
    %32 = math.tanh %31 : vector<32x32xf32>
    %33 = arith.mulf %29, %11 : vector<32x32xf32>
    %34 = arith.mulf %28, %32 : vector<32x32xf32>
    %35 = arith.addf %33, %34 : vector<32x32xf32>
    %36 = math.tanh %35 : vector<32x32xf32>
    %37 = arith.mulf %30, %36 : vector<32x32xf32>
    %c32 = arith.constant 32 : index
    %c0_16 = arith.constant 0 : index
    %38 = vector.load %arg13[%c32, %c0_16] : memref<256x384xf32, #tpu.memory_space<vmem>>, vector<32x384xf32>
    %c0_17 = arith.constant 0 : index
    %c0_18 = arith.constant 0 : index
    %39 = vector.load %arg4[%c0_17, %c0_18] : memref<32x384xf32, #tpu.memory_space<vmem>>, vector<32x384xf32>
    %cst_19 = arith.constant dense<0.000000e+00> : vector<32x384xf32>
    %40 = tpu.matmul %37, %39, %cst_19 {dimension_numbers = #tpu.dot_dimension_numbers<[1], [0], [0], [1], [0, 0, 1, 1], [], []>} : vector<32x32xf32>, vector<32x384xf32>, vector<32x384xf32> -> vector<32x384xf32>
    %41 = arith.addf %38, %40 : vector<32x384xf32>
    %42 = vector.extract_strided_slice %41 {offsets = [0, 0], sizes = [16, 128], strides = [1, 1]} : vector<32x384xf32> to vector<16x128xf32>
    %43 = vector.extract_strided_slice %41 {offsets = [0, 128], sizes = [16, 128], strides = [1, 1]} : vector<32x384xf32> to vector<16x128xf32>
    %44 = vector.extract_strided_slice %41 {offsets = [0, 256], sizes = [16, 128], strides = [1, 1]} : vector<32x384xf32> to vector<16x128xf32>
    %45 = vector.extract_strided_slice %41 {offsets = [16, 0], sizes = [16, 128], strides = [1, 1]} : vector<32x384xf32> to vector<16x128xf32>
    %46 = vector.extract_strided_slice %41 {offsets = [16, 128], sizes = [16, 128], strides = [1, 1]} : vector<32x384xf32> to vector<16x128xf32>
    %47 = vector.extract_strided_slice %41 {offsets = [16, 256], sizes = [16, 128], strides = [1, 1]} : vector<32x384xf32> to vector<16x128xf32>
    %48 = tpu.concatenate %42, %43, %44, %45, %46, %47 in 0 : vector<16x128xf32>, vector<16x128xf32>, vector<16x128xf32>, vector<16x128xf32>, vector<16x128xf32>, vector<16x128xf32> -> vector<96x128xf32>
    %cst_20 = arith.constant dense<0.000000e+00> : vector<32x128xf32>
    %49 = tpu.matmul %4, %48, %cst_20 {dimension_numbers = #tpu.dot_dimension_numbers<[1], [0], [0], [1], [0, 0, 1, 1], [], []>} : vector<32x96xf32>, vector<96x128xf32>, vector<32x128xf32> -> vector<32x128xf32>
    %50 = arith.addf %49, %7 : vector<32x128xf32>
    %51 = vector.extract_strided_slice %50 {offsets = [0, 0], sizes = [32, 96], strides = [1, 1]} : vector<32x128xf32> to vector<32x96xf32>
    %52 = arith.negf %51 : vector<32x96xf32>
    %53 = math.exp %52 : vector<32x96xf32>
    %cst_21 = arith.constant 1.000000e+00 : f32
    %54 = vector.broadcast %cst_21 : f32 to vector<32x96xf32>
    %55 = arith.addf %54, %53 : vector<32x96xf32>
    %56 = arith.divf %54, %55 : vector<32x96xf32>
    %57 = vector.extract_strided_slice %56 {offsets = [0, 0], sizes = [32, 32], strides = [1, 1]} : vector<32x96xf32> to vector<32x32xf32>
    %58 = vector.extract_strided_slice %56 {offsets = [0, 32], sizes = [32, 32], strides = [1, 1]} : vector<32x96xf32> to vector<32x32xf32>
    %59 = vector.extract_strided_slice %56 {offsets = [0, 64], sizes = [32, 32], strides = [1, 1]} : vector<32x96xf32> to vector<32x32xf32>
    %60 = vector.extract_strided_slice %50 {offsets = [0, 96], sizes = [32, 32], strides = [1, 1]} : vector<32x128xf32> to vector<32x32xf32>
    %61 = math.tanh %60 : vector<32x32xf32>
    %62 = arith.mulf %58, %35 : vector<32x32xf32>
    %63 = arith.mulf %57, %61 : vector<32x32xf32>
    %64 = arith.addf %62, %63 : vector<32x32xf32>
    %65 = math.tanh %64 : vector<32x32xf32>
    %66 = arith.mulf %59, %65 : vector<32x32xf32>
    %c64 = arith.constant 64 : index
    %c0_22 = arith.constant 0 : index
    %67 = vector.load %arg13[%c64, %c0_22] : memref<256x384xf32, #tpu.memory_space<vmem>>, vector<32x384xf32>
    %c0_23 = arith.constant 0 : index
    %c0_24 = arith.constant 0 : index
    %68 = vector.load %arg4[%c0_23, %c0_24] : memref<32x384xf32, #tpu.memory_space<vmem>>, vector<32x384xf32>
    %cst_25 = arith.constant dense<0.000000e+00> : vector<32x384xf32>
    %69 = tpu.matmul %66, %68, %cst_25 {dimension_numbers = #tpu.dot_dimension_numbers<[1], [0], [0], [1], [0, 0, 1, 1], [], []>} : vector<32x32xf32>, vector<32x384xf32>, vector<32x384xf32> -> vector<32x384xf32>
    %70 = arith.addf %67, %69 : vector<32x384xf32>
    %71 = vector.extract_strided_slice %70 {offsets = [0, 0], sizes = [16, 128], strides = [1, 1]} : vector<32x384xf32> to vector<16x128xf32>
    %72 = vector.extract_strided_slice %70 {offsets = [0, 128], sizes = [16, 128], strides = [1, 1]} : vector<32x384xf32> to vector<16x128xf32>
    %73 = vector.extract_strided_slice %70 {offsets = [0, 256], sizes = [16, 128], strides = [1, 1]} : vector<32x384xf32> to vector<16x128xf32>
    %74 = vector.extract_strided_slice %70 {offsets = [16, 0], sizes = [16, 128], strides = [1, 1]} : vector<32x384xf32> to vector<16x128xf32>
    %75 = vector.extract_strided_slice %70 {offsets = [16, 128], sizes = [16, 128], strides = [1, 1]} : vector<32x384xf32> to vector<16x128xf32>
    %76 = vector.extract_strided_slice %70 {offsets = [16, 256], sizes = [16, 128], strides = [1, 1]} : vector<32x384xf32> to vector<16x128xf32>
    %77 = tpu.concatenate %71, %72, %73, %74, %75, %76 in 0 : vector<16x128xf32>, vector<16x128xf32>, vector<16x128xf32>, vector<16x128xf32>, vector<16x128xf32>, vector<16x128xf32> -> vector<96x128xf32>
    %cst_26 = arith.constant dense<0.000000e+00> : vector<32x128xf32>
    %78 = tpu.matmul %4, %77, %cst_26 {dimension_numbers = #tpu.dot_dimension_numbers<[1], [0], [0], [1], [0, 0, 1, 1], [], []>} : vector<32x96xf32>, vector<96x128xf32>, vector<32x128xf32> -> vector<32x128xf32>
    %79 = arith.addf %78, %7 : vector<32x128xf32>
    %80 = vector.extract_strided_slice %79 {offsets = [0, 0], sizes = [32, 96], strides = [1, 1]} : vector<32x128xf32> to vector<32x96xf32>
    %81 = arith.negf %80 : vector<32x96xf32>
    %82 = math.exp %81 : vector<32x96xf32>
    %cst_27 = arith.constant 1.000000e+00 : f32
    %83 = vector.broadcast %cst_27 : f32 to vector<32x96xf32>
    %84 = arith.addf %83, %82 : vector<32x96xf32>
    %85 = arith.divf %83, %84 : vector<32x96xf32>
    %86 = vector.extract_strided_slice %85 {offsets = [0, 0], sizes = [32, 32], strides = [1, 1]} : vector<32x96xf32> to vector<32x32xf32>
    %87 = vector.extract_strided_slice %85 {offsets = [0, 32], sizes = [32, 32], strides = [1, 1]} : vector<32x96xf32> to vector<32x32xf32>
    %88 = vector.extract_strided_slice %85 {offsets = [0, 64], sizes = [32, 32], strides = [1, 1]} : vector<32x96xf32> to vector<32x32xf32>
    %89 = vector.extract_strided_slice %79 {offsets = [0, 96], sizes = [32, 32], strides = [1, 1]} : vector<32x128xf32> to vector<32x32xf32>
    %90 = math.tanh %89 : vector<32x32xf32>
    %91 = arith.mulf %87, %64 : vector<32x32xf32>
    %92 = arith.mulf %86, %90 : vector<32x32xf32>
    %93 = arith.addf %91, %92 : vector<32x32xf32>
    %94 = math.tanh %93 : vector<32x32xf32>
    %95 = arith.mulf %88, %94 : vector<32x32xf32>
    %c96 = arith.constant 96 : index
    %c0_28 = arith.constant 0 : index
    %96 = vector.load %arg13[%c96, %c0_28] : memref<256x384xf32, #tpu.memory_space<vmem>>, vector<32x384xf32>
    %c0_29 = arith.constant 0 : index
    %c0_30 = arith.constant 0 : index
    %97 = vector.load %arg4[%c0_29, %c0_30] : memref<32x384xf32, #tpu.memory_space<vmem>>, vector<32x384xf32>
    %cst_31 = arith.constant dense<0.000000e+00> : vector<32x384xf32>
    %98 = tpu.matmul %95, %97, %cst_31 {dimension_numbers = #tpu.dot_dimension_numbers<[1], [0], [0], [1], [0, 0, 1, 1], [], []>} : vector<32x32xf32>, vector<32x384xf32>, vector<32x384xf32> -> vector<32x384xf32>
    %99 = arith.addf %96, %98 : vector<32x384xf32>
    %100 = vector.extract_strided_slice %99 {offsets = [0, 0], sizes = [16, 128], strides = [1, 1]} : vector<32x384xf32> to vector<16x128xf32>
    %101 = vector.extract_strided_slice %99 {offsets = [0, 128], sizes = [16, 128], strides = [1, 1]} : vector<32x384xf32> to vector<16x128xf32>
    %102 = vector.extract_strided_slice %99 {offsets = [0, 256], sizes = [16, 128], strides = [1, 1]} : vector<32x384xf32> to vector<16x128xf32>
    %103 = vector.extract_strided_slice %99 {offsets = [16, 0], sizes = [16, 128], strides = [1, 1]} : vector<32x384xf32> to vector<16x128xf32>
    %104 = vector.extract_strided_slice %99 {offsets = [16, 128], sizes = [16, 128], strides = [1, 1]} : vector<32x384xf32> to vector<16x128xf32>
    %105 = vector.extract_strided_slice %99 {offsets = [16, 256], sizes = [16, 128], strides = [1, 1]} : vector<32x384xf32> to vector<16x128xf32>
    %106 = tpu.concatenate %100, %101, %102, %103, %104, %105 in 0 : vector<16x128xf32>, vector<16x128xf32>, vector<16x128xf32>, vector<16x128xf32>, vector<16x128xf32>, vector<16x128xf32> -> vector<96x128xf32>
    %cst_32 = arith.constant dense<0.000000e+00> : vector<32x128xf32>
    %107 = tpu.matmul %4, %106, %cst_32 {dimension_numbers = #tpu.dot_dimension_numbers<[1], [0], [0], [1], [0, 0, 1, 1], [], []>} : vector<32x96xf32>, vector<96x128xf32>, vector<32x128xf32> -> vector<32x128xf32>
    %108 = arith.addf %107, %7 : vector<32x128xf32>
    %109 = vector.extract_strided_slice %108 {offsets = [0, 0], sizes = [32, 96], strides = [1, 1]} : vector<32x128xf32> to vector<32x96xf32>
    %110 = arith.negf %109 : vector<32x96xf32>
    %111 = math.exp %110 : vector<32x96xf32>
    %cst_33 = arith.constant 1.000000e+00 : f32
    %112 = vector.broadcast %cst_33 : f32 to vector<32x96xf32>
    %113 = arith.addf %112, %111 : vector<32x96xf32>
    %114 = arith.divf %112, %113 : vector<32x96xf32>
    %115 = vector.extract_strided_slice %114 {offsets = [0, 0], sizes = [32, 32], strides = [1, 1]} : vector<32x96xf32> to vector<32x32xf32>
    %116 = vector.extract_strided_slice %114 {offsets = [0, 32], sizes = [32, 32], strides = [1, 1]} : vector<32x96xf32> to vector<32x32xf32>
    %117 = vector.extract_strided_slice %114 {offsets = [0, 64], sizes = [32, 32], strides = [1, 1]} : vector<32x96xf32> to vector<32x32xf32>
    %118 = vector.extract_strided_slice %108 {offsets = [0, 96], sizes = [32, 32], strides = [1, 1]} : vector<32x128xf32> to vector<32x32xf32>
    %119 = math.tanh %118 : vector<32x32xf32>
    %120 = arith.mulf %116, %93 : vector<32x32xf32>
    %121 = arith.mulf %115, %119 : vector<32x32xf32>
    %122 = arith.addf %120, %121 : vector<32x32xf32>
    %123 = math.tanh %122 : vector<32x32xf32>
    %124 = arith.mulf %117, %123 : vector<32x32xf32>
    %c128 = arith.constant 128 : index
    %c0_34 = arith.constant 0 : index
    %125 = vector.load %arg13[%c128, %c0_34] : memref<256x384xf32, #tpu.memory_space<vmem>>, vector<32x384xf32>
    %c0_35 = arith.constant 0 : index
    %c0_36 = arith.constant 0 : index
    %126 = vector.load %arg4[%c0_35, %c0_36] : memref<32x384xf32, #tpu.memory_space<vmem>>, vector<32x384xf32>
    %cst_37 = arith.constant dense<0.000000e+00> : vector<32x384xf32>
    %127 = tpu.matmul %124, %126, %cst_37 {dimension_numbers = #tpu.dot_dimension_numbers<[1], [0], [0], [1], [0, 0, 1, 1], [], []>} : vector<32x32xf32>, vector<32x384xf32>, vector<32x384xf32> -> vector<32x384xf32>
    %128 = arith.addf %125, %127 : vector<32x384xf32>
    %129 = vector.extract_strided_slice %128 {offsets = [0, 0], sizes = [16, 128], strides = [1, 1]} : vector<32x384xf32> to vector<16x128xf32>
    %130 = vector.extract_strided_slice %128 {offsets = [0, 128], sizes = [16, 128], strides = [1, 1]} : vector<32x384xf32> to vector<16x128xf32>
    %131 = vector.extract_strided_slice %128 {offsets = [0, 256], sizes = [16, 128], strides = [1, 1]} : vector<32x384xf32> to vector<16x128xf32>
    %132 = vector.extract_strided_slice %128 {offsets = [16, 0], sizes = [16, 128], strides = [1, 1]} : vector<32x384xf32> to vector<16x128xf32>
    %133 = vector.extract_strided_slice %128 {offsets = [16, 128], sizes = [16, 128], strides = [1, 1]} : vector<32x384xf32> to vector<16x128xf32>
    %134 = vector.extract_strided_slice %128 {offsets = [16, 256], sizes = [16, 128], strides = [1, 1]} : vector<32x384xf32> to vector<16x128xf32>
    %135 = tpu.concatenate %129, %130, %131, %132, %133, %134 in 0 : vector<16x128xf32>, vector<16x128xf32>, vector<16x128xf32>, vector<16x128xf32>, vector<16x128xf32>, vector<16x128xf32> -> vector<96x128xf32>
    %cst_38 = arith.constant dense<0.000000e+00> : vector<32x128xf32>
    %136 = tpu.matmul %4, %135, %cst_38 {dimension_numbers = #tpu.dot_dimension_numbers<[1], [0], [0], [1], [0, 0, 1, 1], [], []>} : vector<32x96xf32>, vector<96x128xf32>, vector<32x128xf32> -> vector<32x128xf32>
    %137 = arith.addf %136, %7 : vector<32x128xf32>
    %138 = vector.extract_strided_slice %137 {offsets = [0, 0], sizes = [32, 96], strides = [1, 1]} : vector<32x128xf32> to vector<32x96xf32>
    %139 = arith.negf %138 : vector<32x96xf32>
    %140 = math.exp %139 : vector<32x96xf32>
    %cst_39 = arith.constant 1.000000e+00 : f32
    %141 = vector.broadcast %cst_39 : f32 to vector<32x96xf32>
    %142 = arith.addf %141, %140 : vector<32x96xf32>
    %143 = arith.divf %141, %142 : vector<32x96xf32>
    %144 = vector.extract_strided_slice %143 {offsets = [0, 0], sizes = [32, 32], strides = [1, 1]} : vector<32x96xf32> to vector<32x32xf32>
    %145 = vector.extract_strided_slice %143 {offsets = [0, 32], sizes = [32, 32], strides = [1, 1]} : vector<32x96xf32> to vector<32x32xf32>
    %146 = vector.extract_strided_slice %143 {offsets = [0, 64], sizes = [32, 32], strides = [1, 1]} : vector<32x96xf32> to vector<32x32xf32>
    %147 = vector.extract_strided_slice %137 {offsets = [0, 96], sizes = [32, 32], strides = [1, 1]} : vector<32x128xf32> to vector<32x32xf32>
    %148 = math.tanh %147 : vector<32x32xf32>
    %149 = arith.mulf %145, %122 : vector<32x32xf32>
    %150 = arith.mulf %144, %148 : vector<32x32xf32>
    %151 = arith.addf %149, %150 : vector<32x32xf32>
    %152 = math.tanh %151 : vector<32x32xf32>
    %153 = arith.mulf %146, %152 : vector<32x32xf32>
    %c160 = arith.constant 160 : index
    %c0_40 = arith.constant 0 : index
    %154 = vector.load %arg13[%c160, %c0_40] : memref<256x384xf32, #tpu.memory_space<vmem>>, vector<32x384xf32>
    %c0_41 = arith.constant 0 : index
    %c0_42 = arith.constant 0 : index
    %155 = vector.load %arg4[%c0_41, %c0_42] : memref<32x384xf32, #tpu.memory_space<vmem>>, vector<32x384xf32>
    %cst_43 = arith.constant dense<0.000000e+00> : vector<32x384xf32>
    %156 = tpu.matmul %153, %155, %cst_43 {dimension_numbers = #tpu.dot_dimension_numbers<[1], [0], [0], [1], [0, 0, 1, 1], [], []>} : vector<32x32xf32>, vector<32x384xf32>, vector<32x384xf32> -> vector<32x384xf32>
    %157 = arith.addf %154, %156 : vector<32x384xf32>
    %158 = vector.extract_strided_slice %157 {offsets = [0, 0], sizes = [16, 128], strides = [1, 1]} : vector<32x384xf32> to vector<16x128xf32>
    %159 = vector.extract_strided_slice %157 {offsets = [0, 128], sizes = [16, 128], strides = [1, 1]} : vector<32x384xf32> to vector<16x128xf32>
    %160 = vector.extract_strided_slice %157 {offsets = [0, 256], sizes = [16, 128], strides = [1, 1]} : vector<32x384xf32> to vector<16x128xf32>
    %161 = vector.extract_strided_slice %157 {offsets = [16, 0], sizes = [16, 128], strides = [1, 1]} : vector<32x384xf32> to vector<16x128xf32>
    %162 = vector.extract_strided_slice %157 {offsets = [16, 128], sizes = [16, 128], strides = [1, 1]} : vector<32x384xf32> to vector<16x128xf32>
    %163 = vector.extract_strided_slice %157 {offsets = [16, 256], sizes = [16, 128], strides = [1, 1]} : vector<32x384xf32> to vector<16x128xf32>
    %164 = tpu.concatenate %158, %159, %160, %161, %162, %163 in 0 : vector<16x128xf32>, vector<16x128xf32>, vector<16x128xf32>, vector<16x128xf32>, vector<16x128xf32>, vector<16x128xf32> -> vector<96x128xf32>
    %cst_44 = arith.constant dense<0.000000e+00> : vector<32x128xf32>
    %165 = tpu.matmul %4, %164, %cst_44 {dimension_numbers = #tpu.dot_dimension_numbers<[1], [0], [0], [1], [0, 0, 1, 1], [], []>} : vector<32x96xf32>, vector<96x128xf32>, vector<32x128xf32> -> vector<32x128xf32>
    %166 = arith.addf %165, %7 : vector<32x128xf32>
    %167 = vector.extract_strided_slice %166 {offsets = [0, 0], sizes = [32, 96], strides = [1, 1]} : vector<32x128xf32> to vector<32x96xf32>
    %168 = arith.negf %167 : vector<32x96xf32>
    %169 = math.exp %168 : vector<32x96xf32>
    %cst_45 = arith.constant 1.000000e+00 : f32
    %170 = vector.broadcast %cst_45 : f32 to vector<32x96xf32>
    %171 = arith.addf %170, %169 : vector<32x96xf32>
    %172 = arith.divf %170, %171 : vector<32x96xf32>
    %173 = vector.extract_strided_slice %172 {offsets = [0, 0], sizes = [32, 32], strides = [1, 1]} : vector<32x96xf32> to vector<32x32xf32>
    %174 = vector.extract_strided_slice %172 {offsets = [0, 32], sizes = [32, 32], strides = [1, 1]} : vector<32x96xf32> to vector<32x32xf32>
    %175 = vector.extract_strided_slice %172 {offsets = [0, 64], sizes = [32, 32], strides = [1, 1]} : vector<32x96xf32> to vector<32x32xf32>
    %176 = vector.extract_strided_slice %166 {offsets = [0, 96], sizes = [32, 32], strides = [1, 1]} : vector<32x128xf32> to vector<32x32xf32>
    %177 = math.tanh %176 : vector<32x32xf32>
    %178 = arith.mulf %174, %151 : vector<32x32xf32>
    %179 = arith.mulf %173, %177 : vector<32x32xf32>
    %180 = arith.addf %178, %179 : vector<32x32xf32>
    %181 = math.tanh %180 : vector<32x32xf32>
    %182 = arith.mulf %175, %181 : vector<32x32xf32>
    %c192 = arith.constant 192 : index
    %c0_46 = arith.constant 0 : index
    %183 = vector.load %arg13[%c192, %c0_46] : memref<256x384xf32, #tpu.memory_space<vmem>>, vector<32x384xf32>
    %c0_47 = arith.constant 0 : index
    %c0_48 = arith.constant 0 : index
    %184 = vector.load %arg4[%c0_47, %c0_48] : memref<32x384xf32, #tpu.memory_space<vmem>>, vector<32x384xf32>
    %cst_49 = arith.constant dense<0.000000e+00> : vector<32x384xf32>
    %185 = tpu.matmul %182, %184, %cst_49 {dimension_numbers = #tpu.dot_dimension_numbers<[1], [0], [0], [1], [0, 0, 1, 1], [], []>} : vector<32x32xf32>, vector<32x384xf32>, vector<32x384xf32> -> vector<32x384xf32>
    %186 = arith.addf %183, %185 : vector<32x384xf32>
    %187 = vector.extract_strided_slice %186 {offsets = [0, 0], sizes = [16, 128], strides = [1, 1]} : vector<32x384xf32> to vector<16x128xf32>
    %188 = vector.extract_strided_slice %186 {offsets = [0, 128], sizes = [16, 128], strides = [1, 1]} : vector<32x384xf32> to vector<16x128xf32>
    %189 = vector.extract_strided_slice %186 {offsets = [0, 256], sizes = [16, 128], strides = [1, 1]} : vector<32x384xf32> to vector<16x128xf32>
    %190 = vector.extract_strided_slice %186 {offsets = [16, 0], sizes = [16, 128], strides = [1, 1]} : vector<32x384xf32> to vector<16x128xf32>
    %191 = vector.extract_strided_slice %186 {offsets = [16, 128], sizes = [16, 128], strides = [1, 1]} : vector<32x384xf32> to vector<16x128xf32>
    %192 = vector.extract_strided_slice %186 {offsets = [16, 256], sizes = [16, 128], strides = [1, 1]} : vector<32x384xf32> to vector<16x128xf32>
    %193 = tpu.concatenate %187, %188, %189, %190, %191, %192 in 0 : vector<16x128xf32>, vector<16x128xf32>, vector<16x128xf32>, vector<16x128xf32>, vector<16x128xf32>, vector<16x128xf32> -> vector<96x128xf32>
    %cst_50 = arith.constant dense<0.000000e+00> : vector<32x128xf32>
    %194 = tpu.matmul %4, %193, %cst_50 {dimension_numbers = #tpu.dot_dimension_numbers<[1], [0], [0], [1], [0, 0, 1, 1], [], []>} : vector<32x96xf32>, vector<96x128xf32>, vector<32x128xf32> -> vector<32x128xf32>
    %195 = arith.addf %194, %7 : vector<32x128xf32>
    %196 = vector.extract_strided_slice %195 {offsets = [0, 0], sizes = [32, 96], strides = [1, 1]} : vector<32x128xf32> to vector<32x96xf32>
    %197 = arith.negf %196 : vector<32x96xf32>
    %198 = math.exp %197 : vector<32x96xf32>
    %cst_51 = arith.constant 1.000000e+00 : f32
    %199 = vector.broadcast %cst_51 : f32 to vector<32x96xf32>
    %200 = arith.addf %199, %198 : vector<32x96xf32>
    %201 = arith.divf %199, %200 : vector<32x96xf32>
    %202 = vector.extract_strided_slice %201 {offsets = [0, 0], sizes = [32, 32], strides = [1, 1]} : vector<32x96xf32> to vector<32x32xf32>
    %203 = vector.extract_strided_slice %201 {offsets = [0, 32], sizes = [32, 32], strides = [1, 1]} : vector<32x96xf32> to vector<32x32xf32>
    %204 = vector.extract_strided_slice %201 {offsets = [0, 64], sizes = [32, 32], strides = [1, 1]} : vector<32x96xf32> to vector<32x32xf32>
    %205 = vector.extract_strided_slice %195 {offsets = [0, 96], sizes = [32, 32], strides = [1, 1]} : vector<32x128xf32> to vector<32x32xf32>
    %206 = math.tanh %205 : vector<32x32xf32>
    %207 = arith.mulf %203, %180 : vector<32x32xf32>
    %208 = arith.mulf %202, %206 : vector<32x32xf32>
    %209 = arith.addf %207, %208 : vector<32x32xf32>
    %210 = math.tanh %209 : vector<32x32xf32>
    %211 = arith.mulf %204, %210 : vector<32x32xf32>
    %c224 = arith.constant 224 : index
    %c0_52 = arith.constant 0 : index
    %212 = vector.load %arg13[%c224, %c0_52] : memref<256x384xf32, #tpu.memory_space<vmem>>, vector<32x384xf32>
    %c0_53 = arith.constant 0 : index
    %c0_54 = arith.constant 0 : index
    %213 = vector.load %arg4[%c0_53, %c0_54] : memref<32x384xf32, #tpu.memory_space<vmem>>, vector<32x384xf32>
    %cst_55 = arith.constant dense<0.000000e+00> : vector<32x384xf32>
    %214 = tpu.matmul %211, %213, %cst_55 {dimension_numbers = #tpu.dot_dimension_numbers<[1], [0], [0], [1], [0, 0, 1, 1], [], []>} : vector<32x32xf32>, vector<32x384xf32>, vector<32x384xf32> -> vector<32x384xf32>
    %215 = arith.addf %212, %214 : vector<32x384xf32>
    %216 = vector.extract_strided_slice %215 {offsets = [0, 0], sizes = [16, 128], strides = [1, 1]} : vector<32x384xf32> to vector<16x128xf32>
    %217 = vector.extract_strided_slice %215 {offsets = [0, 128], sizes = [16, 128], strides = [1, 1]} : vector<32x384xf32> to vector<16x128xf32>
    %218 = vector.extract_strided_slice %215 {offsets = [0, 256], sizes = [16, 128], strides = [1, 1]} : vector<32x384xf32> to vector<16x128xf32>
    %219 = vector.extract_strided_slice %215 {offsets = [16, 0], sizes = [16, 128], strides = [1, 1]} : vector<32x384xf32> to vector<16x128xf32>
    %220 = vector.extract_strided_slice %215 {offsets = [16, 128], sizes = [16, 128], strides = [1, 1]} : vector<32x384xf32> to vector<16x128xf32>
    %221 = vector.extract_strided_slice %215 {offsets = [16, 256], sizes = [16, 128], strides = [1, 1]} : vector<32x384xf32> to vector<16x128xf32>
    %222 = tpu.concatenate %216, %217, %218, %219, %220, %221 in 0 : vector<16x128xf32>, vector<16x128xf32>, vector<16x128xf32>, vector<16x128xf32>, vector<16x128xf32>, vector<16x128xf32> -> vector<96x128xf32>
    %cst_56 = arith.constant dense<0.000000e+00> : vector<32x128xf32>
    %223 = tpu.matmul %4, %222, %cst_56 {dimension_numbers = #tpu.dot_dimension_numbers<[1], [0], [0], [1], [0, 0, 1, 1], [], []>} : vector<32x96xf32>, vector<96x128xf32>, vector<32x128xf32> -> vector<32x128xf32>
    %224 = arith.addf %223, %7 : vector<32x128xf32>
    %225 = vector.extract_strided_slice %224 {offsets = [0, 0], sizes = [32, 96], strides = [1, 1]} : vector<32x128xf32> to vector<32x96xf32>
    %226 = arith.negf %225 : vector<32x96xf32>
    %227 = math.exp %226 : vector<32x96xf32>
    %cst_57 = arith.constant 1.000000e+00 : f32
    %228 = vector.broadcast %cst_57 : f32 to vector<32x96xf32>
    %229 = arith.addf %228, %227 : vector<32x96xf32>
    %230 = arith.divf %228, %229 : vector<32x96xf32>
    %231 = vector.extract_strided_slice %230 {offsets = [0, 0], sizes = [32, 32], strides = [1, 1]} : vector<32x96xf32> to vector<32x32xf32>
    %232 = vector.extract_strided_slice %230 {offsets = [0, 32], sizes = [32, 32], strides = [1, 1]} : vector<32x96xf32> to vector<32x32xf32>
    %233 = vector.extract_strided_slice %230 {offsets = [0, 64], sizes = [32, 32], strides = [1, 1]} : vector<32x96xf32> to vector<32x32xf32>
    %234 = vector.extract_strided_slice %224 {offsets = [0, 96], sizes = [32, 32], strides = [1, 1]} : vector<32x128xf32> to vector<32x32xf32>
    %235 = math.tanh %234 : vector<32x32xf32>
    %236 = arith.mulf %232, %209 : vector<32x32xf32>
    %237 = arith.mulf %231, %235 : vector<32x32xf32>
    %238 = arith.addf %236, %237 : vector<32x32xf32>
    %239 = math.tanh %238 : vector<32x32xf32>
    %240 = arith.mulf %233, %239 : vector<32x32xf32>
    %c0_58 = arith.constant 0 : index
    %c0_59 = arith.constant 0 : index
    %241 = vector.load %arg6[%c0_58, %c0_59] : memref<32x384xf32, #tpu.memory_space<vmem>>, vector<32x384xf32>
    %cst_60 = arith.constant dense<0.000000e+00> : vector<32x384xf32>
    %242 = tpu.matmul %240, %241, %cst_60 {dimension_numbers = #tpu.dot_dimension_numbers<[1], [0], [0], [1], [0, 0, 1, 1], [], []>} : vector<32x32xf32>, vector<32x384xf32>, vector<32x384xf32> -> vector<32x384xf32>
    %243 = vector.extract_strided_slice %242 {offsets = [0, 0], sizes = [16, 128], strides = [1, 1]} : vector<32x384xf32> to vector<16x128xf32>
    %244 = vector.extract_strided_slice %242 {offsets = [0, 128], sizes = [16, 128], strides = [1, 1]} : vector<32x384xf32> to vector<16x128xf32>
    %245 = vector.extract_strided_slice %242 {offsets = [0, 256], sizes = [16, 128], strides = [1, 1]} : vector<32x384xf32> to vector<16x128xf32>
    %246 = vector.extract_strided_slice %242 {offsets = [16, 0], sizes = [16, 128], strides = [1, 1]} : vector<32x384xf32> to vector<16x128xf32>
    %247 = vector.extract_strided_slice %242 {offsets = [16, 128], sizes = [16, 128], strides = [1, 1]} : vector<32x384xf32> to vector<16x128xf32>
    %248 = vector.extract_strided_slice %242 {offsets = [16, 256], sizes = [16, 128], strides = [1, 1]} : vector<32x384xf32> to vector<16x128xf32>
    %249 = tpu.concatenate %243, %244, %245, %246, %247, %248 in 0 : vector<16x128xf32>, vector<16x128xf32>, vector<16x128xf32>, vector<16x128xf32>, vector<16x128xf32>, vector<16x128xf32> -> vector<96x128xf32>
    %cst_61 = arith.constant dense<0.000000e+00> : vector<32x128xf32>
    %250 = tpu.matmul %4, %249, %cst_61 {dimension_numbers = #tpu.dot_dimension_numbers<[1], [0], [0], [1], [0, 0, 1, 1], [], []>} : vector<32x96xf32>, vector<96x128xf32>, vector<32x128xf32> -> vector<32x128xf32>
    %251 = arith.addf %250, %10 : vector<32x128xf32>
    %252 = vector.extract_strided_slice %251 {offsets = [0, 0], sizes = [32, 96], strides = [1, 1]} : vector<32x128xf32> to vector<32x96xf32>
    %253 = arith.negf %252 : vector<32x96xf32>
    %254 = math.exp %253 : vector<32x96xf32>
    %cst_62 = arith.constant 1.000000e+00 : f32
    %255 = vector.broadcast %cst_62 : f32 to vector<32x96xf32>
    %256 = arith.addf %255, %254 : vector<32x96xf32>
    %257 = arith.divf %255, %256 : vector<32x96xf32>
    %258 = vector.extract_strided_slice %257 {offsets = [0, 0], sizes = [32, 32], strides = [1, 1]} : vector<32x96xf32> to vector<32x32xf32>
    %259 = vector.extract_strided_slice %257 {offsets = [0, 32], sizes = [32, 32], strides = [1, 1]} : vector<32x96xf32> to vector<32x32xf32>
    %260 = vector.extract_strided_slice %257 {offsets = [0, 64], sizes = [32, 32], strides = [1, 1]} : vector<32x96xf32> to vector<32x32xf32>
    %261 = vector.extract_strided_slice %251 {offsets = [0, 96], sizes = [32, 32], strides = [1, 1]} : vector<32x128xf32> to vector<32x32xf32>
    %262 = math.tanh %261 : vector<32x32xf32>
    %263 = arith.mulf %259, %238 : vector<32x32xf32>
    %264 = arith.mulf %258, %262 : vector<32x32xf32>
    %265 = arith.addf %263, %264 : vector<32x32xf32>
    %266 = math.tanh %265 : vector<32x32xf32>
    %267 = arith.mulf %260, %266 : vector<32x32xf32>
    %c0_63 = arith.constant 0 : index
    %c0_64 = arith.constant 0 : index
    %268 = vector.load %arg7[%c0_63, %c0_64] : memref<32x384xf32, #tpu.memory_space<vmem>>, vector<32x384xf32>
    %cst_65 = arith.constant dense<0.000000e+00> : vector<32x384xf32>
    %269 = tpu.matmul %267, %268, %cst_65 {dimension_numbers = #tpu.dot_dimension_numbers<[1], [0], [0], [1], [0, 0, 1, 1], [], []>} : vector<32x32xf32>, vector<32x384xf32>, vector<32x384xf32> -> vector<32x384xf32>
    %c0_66 = arith.constant 0 : index
    %c0_67 = arith.constant 0 : index
    %270 = vector.load %arg8[%c0_66, %c0_67] : memref<1x384xf32, #tpu.memory_space<vmem>>, vector<1x384xf32>
    %271 = vector.broadcast %270 : vector<1x384xf32> to vector<32x384xf32>
    %272 = arith.addf %269, %271 : vector<32x384xf32>
    %273 = vector.extract_strided_slice %272 {offsets = [0, 0], sizes = [16, 128], strides = [1, 1]} : vector<32x384xf32> to vector<16x128xf32>
    %274 = vector.extract_strided_slice %272 {offsets = [0, 128], sizes = [16, 128], strides = [1, 1]} : vector<32x384xf32> to vector<16x128xf32>
    %275 = vector.extract_strided_slice %272 {offsets = [0, 256], sizes = [16, 128], strides = [1, 1]} : vector<32x384xf32> to vector<16x128xf32>
    %276 = vector.extract_strided_slice %272 {offsets = [16, 0], sizes = [16, 128], strides = [1, 1]} : vector<32x384xf32> to vector<16x128xf32>
    %277 = vector.extract_strided_slice %272 {offsets = [16, 128], sizes = [16, 128], strides = [1, 1]} : vector<32x384xf32> to vector<16x128xf32>
    %278 = vector.extract_strided_slice %272 {offsets = [16, 256], sizes = [16, 128], strides = [1, 1]} : vector<32x384xf32> to vector<16x128xf32>
    %279 = tpu.concatenate %273, %274, %275, %276, %277, %278 in 0 : vector<16x128xf32>, vector<16x128xf32>, vector<16x128xf32>, vector<16x128xf32>, vector<16x128xf32>, vector<16x128xf32> -> vector<96x128xf32>
    %cst_68 = arith.constant dense<0.000000e+00> : vector<32x128xf32>
    %280 = tpu.matmul %4, %279, %cst_68 {dimension_numbers = #tpu.dot_dimension_numbers<[1], [0], [0], [1], [0, 0, 1, 1], [], []>} : vector<32x96xf32>, vector<96x128xf32>, vector<32x128xf32> -> vector<32x128xf32>
    %281 = arith.addf %280, %10 : vector<32x128xf32>
    %282 = vector.extract_strided_slice %281 {offsets = [0, 0], sizes = [32, 96], strides = [1, 1]} : vector<32x128xf32> to vector<32x96xf32>
    %283 = arith.negf %282 : vector<32x96xf32>
    %284 = math.exp %283 : vector<32x96xf32>
    %cst_69 = arith.constant 1.000000e+00 : f32
    %285 = vector.broadcast %cst_69 : f32 to vector<32x96xf32>
    %286 = arith.addf %285, %284 : vector<32x96xf32>
    %287 = arith.divf %285, %286 : vector<32x96xf32>
    %288 = vector.extract_strided_slice %287 {offsets = [0, 0], sizes = [32, 32], strides = [1, 1]} : vector<32x96xf32> to vector<32x32xf32>
    %289 = vector.extract_strided_slice %287 {offsets = [0, 32], sizes = [32, 32], strides = [1, 1]} : vector<32x96xf32> to vector<32x32xf32>
    %290 = vector.extract_strided_slice %287 {offsets = [0, 64], sizes = [32, 32], strides = [1, 1]} : vector<32x96xf32> to vector<32x32xf32>
    %291 = vector.extract_strided_slice %281 {offsets = [0, 96], sizes = [32, 32], strides = [1, 1]} : vector<32x128xf32> to vector<32x32xf32>
    %292 = math.tanh %291 : vector<32x32xf32>
    %293 = arith.mulf %289, %265 : vector<32x32xf32>
    %294 = arith.mulf %288, %292 : vector<32x32xf32>
    %295 = arith.addf %293, %294 : vector<32x32xf32>
    %296 = math.tanh %295 : vector<32x32xf32>
    %297 = arith.mulf %290, %296 : vector<32x32xf32>
    %c0_70 = arith.constant 0 : index
    %c0_71 = arith.constant 0 : index
    %298 = vector.load %arg7[%c0_70, %c0_71] : memref<32x384xf32, #tpu.memory_space<vmem>>, vector<32x384xf32>
    %cst_72 = arith.constant dense<0.000000e+00> : vector<32x384xf32>
    %299 = tpu.matmul %297, %298, %cst_72 {dimension_numbers = #tpu.dot_dimension_numbers<[1], [0], [0], [1], [0, 0, 1, 1], [], []>} : vector<32x32xf32>, vector<32x384xf32>, vector<32x384xf32> -> vector<32x384xf32>
    %c0_73 = arith.constant 0 : index
    %c0_74 = arith.constant 0 : index
    %300 = vector.load %arg8[%c0_73, %c0_74] : memref<1x384xf32, #tpu.memory_space<vmem>>, vector<1x384xf32>
    %301 = vector.broadcast %300 : vector<1x384xf32> to vector<32x384xf32>
    %302 = arith.addf %299, %301 : vector<32x384xf32>
    %303 = vector.extract_strided_slice %302 {offsets = [0, 0], sizes = [16, 128], strides = [1, 1]} : vector<32x384xf32> to vector<16x128xf32>
    %304 = vector.extract_strided_slice %302 {offsets = [0, 128], sizes = [16, 128], strides = [1, 1]} : vector<32x384xf32> to vector<16x128xf32>
    %305 = vector.extract_strided_slice %302 {offsets = [0, 256], sizes = [16, 128], strides = [1, 1]} : vector<32x384xf32> to vector<16x128xf32>
    %306 = vector.extract_strided_slice %302 {offsets = [16, 0], sizes = [16, 128], strides = [1, 1]} : vector<32x384xf32> to vector<16x128xf32>
    %307 = vector.extract_strided_slice %302 {offsets = [16, 128], sizes = [16, 128], strides = [1, 1]} : vector<32x384xf32> to vector<16x128xf32>
    %308 = vector.extract_strided_slice %302 {offsets = [16, 256], sizes = [16, 128], strides = [1, 1]} : vector<32x384xf32> to vector<16x128xf32>
    %309 = tpu.concatenate %303, %304, %305, %306, %307, %308 in 0 : vector<16x128xf32>, vector<16x128xf32>, vector<16x128xf32>, vector<16x128xf32>, vector<16x128xf32>, vector<16x128xf32> -> vector<96x128xf32>
    %cst_75 = arith.constant dense<0.000000e+00> : vector<32x128xf32>
    %310 = tpu.matmul %4, %309, %cst_75 {dimension_numbers = #tpu.dot_dimension_numbers<[1], [0], [0], [1], [0, 0, 1, 1], [], []>} : vector<32x96xf32>, vector<96x128xf32>, vector<32x128xf32> -> vector<32x128xf32>
    %311 = arith.addf %310, %10 : vector<32x128xf32>
    %312 = vector.extract_strided_slice %311 {offsets = [0, 0], sizes = [32, 96], strides = [1, 1]} : vector<32x128xf32> to vector<32x96xf32>
    %313 = arith.negf %312 : vector<32x96xf32>
    %314 = math.exp %313 : vector<32x96xf32>
    %cst_76 = arith.constant 1.000000e+00 : f32
    %315 = vector.broadcast %cst_76 : f32 to vector<32x96xf32>
    %316 = arith.addf %315, %314 : vector<32x96xf32>
    %317 = arith.divf %315, %316 : vector<32x96xf32>
    %318 = vector.extract_strided_slice %317 {offsets = [0, 0], sizes = [32, 32], strides = [1, 1]} : vector<32x96xf32> to vector<32x32xf32>
    %319 = vector.extract_strided_slice %317 {offsets = [0, 32], sizes = [32, 32], strides = [1, 1]} : vector<32x96xf32> to vector<32x32xf32>
    %320 = vector.extract_strided_slice %317 {offsets = [0, 64], sizes = [32, 32], strides = [1, 1]} : vector<32x96xf32> to vector<32x32xf32>
    %321 = vector.extract_strided_slice %311 {offsets = [0, 96], sizes = [32, 32], strides = [1, 1]} : vector<32x128xf32> to vector<32x32xf32>
    %322 = math.tanh %321 : vector<32x32xf32>
    %323 = arith.mulf %319, %295 : vector<32x32xf32>
    %324 = arith.mulf %318, %322 : vector<32x32xf32>
    %325 = arith.addf %323, %324 : vector<32x32xf32>
    %326 = math.tanh %325 : vector<32x32xf32>
    %327 = arith.mulf %320, %326 : vector<32x32xf32>
    %328 = tpu.concatenate %267, %297, %327 in 0 : vector<32x32xf32>, vector<32x32xf32>, vector<32x32xf32> -> vector<96x32xf32>
    %c0_77 = arith.constant 0 : index
    %c0_78 = arith.constant 0 : index
    %329 = vector.load %arg10[%c0_77, %c0_78] : memref<32x4xf32, #tpu.memory_space<vmem>>, vector<32x4xf32>
    %cst_79 = arith.constant dense<0.000000e+00> : vector<96x4xf32>
    %330 = tpu.matmul %328, %329, %cst_79 {dimension_numbers = #tpu.dot_dimension_numbers<[1], [0], [0], [1], [0, 0, 1, 1], [], []>} : vector<96x32xf32>, vector<32x4xf32>, vector<96x4xf32> -> vector<96x4xf32>
    %c0_80 = arith.constant 0 : index
    %c0_81 = arith.constant 0 : index
    %331 = vector.load %arg11[%c0_80, %c0_81] : memref<1x4xf32, #tpu.memory_space<vmem>>, vector<1x4xf32>
    %332 = vector.broadcast %331 : vector<1x4xf32> to vector<96x4xf32>
    %333 = arith.addf %330, %332 : vector<96x4xf32>
    %c0_82 = arith.constant 0 : index
    %c0_83 = arith.constant 0 : index
    %334 = vector.load %arg12[%c0_82, %c0_83] : memref<96x4xf32, #tpu.memory_space<vmem>>, vector<96x4xf32>
    tpu.vector_store %arg12[%c0_82, %c0_83], %333 {strides = array<i32>} : memref<96x4xf32, #tpu.memory_space<vmem>>, vector<96x4xf32>,
    return
  }
  func.func @transform_0(%arg0: i32) -> (i32, i32) {
    %c0_i32 = arith.constant 0 : i32
    %c0_i32_0 = arith.constant 0 : i32
    %c0_i32_1 = arith.constant 0 : i32
    return %c0_i32, %c0_i32_0 : i32, i32
  }
  func.func @transform_1(%arg0: i32) -> (i32, i32) {
    %c0_i32 = arith.constant 0 : i32
    %c0_i32_0 = arith.constant 0 : i32
    %c0_i32_1 = arith.constant 0 : i32
    return %c0_i32, %c0_i32_0 : i32, i32
  }
  func.func @transform_2(%arg0: i32) -> (i32, i32) {
    %c0_i32 = arith.constant 0 : i32
    %c0_i32_0 = arith.constant 0 : i32
    %c0_i32_1 = arith.constant 0 : i32
    return %c0_i32, %c0_i32_0 : i32, i32
  }
  func.func @transform_3(%arg0: i32) -> (i32, i32) {
    %c0_i32 = arith.constant 0 : i32
    %c0_i32_0 = arith.constant 0 : i32
    %c0_i32_1 = arith.constant 0 : i32
    return %c0_i32, %c0_i32_0 : i32, i32
  }
  func.func @transform_4(%arg0: i32) -> (i32, i32) {
    %c0_i32 = arith.constant 0 : i32
    %c0_i32_0 = arith.constant 0 : i32
    %c0_i32_1 = arith.constant 0 : i32
    return %c0_i32, %c0_i32_0 : i32, i32
  }
  func.func @transform_5(%arg0: i32) -> (i32, i32) {
    %c0_i32 = arith.constant 0 : i32
    %c0_i32_0 = arith.constant 0 : i32
    %c0_i32_1 = arith.constant 0 : i32
    return %c0_i32, %c0_i32_0 : i32, i32
  }
  func.func @transform_6(%arg0: i32) -> (i32, i32) {
    %c0_i32 = arith.constant 0 : i32
    %c0_i32_0 = arith.constant 0 : i32
    %c0_i32_1 = arith.constant 0 : i32
    return %c0_i32, %c0_i32_0 : i32, i32
  }
  func.func @transform_7(%arg0: i32) -> (i32, i32) {
    %c0_i32 = arith.constant 0 : i32
    %c0_i32_0 = arith.constant 0 : i32
    %c0_i32_1 = arith.constant 0 : i32
    return %c0_i32, %c0_i32_0 : i32, i32
  }
  func.func @transform_8(%arg0: i32) -> (i32, i32) {
    %c0_i32 = arith.constant 0 : i32
    %c0_i32_0 = arith.constant 0 : i32
    %c0_i32_1 = arith.constant 0 : i32
    return %c0_i32, %c0_i32_0 : i32, i32
  }
  func.func @transform_9(%arg0: i32) -> (i32, i32) {
    %c0_i32 = arith.constant 0 : i32
    %c0_i32_0 = arith.constant 0 : i32
    %c0_i32_1 = arith.constant 0 : i32
    return %c0_i32, %c0_i32_0 : i32, i32
  }
  func.func @transform_10(%arg0: i32) -> (i32, i32) {
    %c0_i32 = arith.constant 0 : i32
    %c0_i32_0 = arith.constant 0 : i32
    %c0_i32_1 = arith.constant 0 : i32
    return %c0_i32, %c0_i32_0 : i32, i32
  }
  func.func @transform_11(%arg0: i32) -> (i32, i32) {
    %c0_i32 = arith.constant 0 : i32
    %c0_i32_0 = arith.constant 0 : i32
    %c0_i32_1 = arith.constant 0 : i32
    return %c0_i32, %c0_i32_0 : i32, i32
  }
}

</mosaic_0001>

<bundles_post_ra>
// kernel: mul.4
= control target key start
LH: loop header
LB: loop body
LE: loop exit
PB: predicated region body
PF: predicated region fallthrough
CT: control target
= control target key end

     0   :  { %vm83_vm0 = vcmask 1047556   ;;  %vm85_vm1 = vcmask 130048   ;;  %s173_s9 = smov 16   ;;  %vm104_vm2 = vcmask 392448   ;;  %vm125_vm3 = vcmask 261248   ;;  %s258_s0 = inlined_call_operand.vmem [shape: f32[16,3,16], index: 0, kind: input, shape index: {}]   ;;  %s259_s1 = inlined_call_operand.vmem [shape: f32[16,48], index: 1, kind: output, shape index: {}]  }
   0x1   :  { %v160_v0 = vld [vmem:[%s258_s0 + $0x1c] sm:$0xf]  ;;  %v161_v1 = vld [vmem:[%s258_s0 + $0x18] sm:$0xf]  ;;  %v162_v2 = vld [vmem:[%s258_s0 + $0x14] sm:$0xf] }
   0x2   :  { %49 = vst [vmem:[#allocation0 + $0x38] sm:$0xf] %v160_v0  ;;  %54 = vst [vmem:[#allocation0 + $0x30] sm:$0xf] %v161_v1  ;;  %v163_v3 = vld [vmem:[%s258_s0 + $0x10] sm:$0xf] }
   0x3   :  { %59 = vst [vmem:[#allocation0 + $0x28] sm:$0xf] %v162_v2  ;;  %v164_v4 = vld [vmem:[%s258_s0 + $0xc] sm:$0xf]  ;;  %v165_v5 = vld [vmem:[%s258_s0 + $0x8] sm:$0xf] }
   0x4   :  { %64 = vst [vmem:[#allocation0 + $0x20] sm:$0xf] %v163_v3  ;;  %69 = vst [vmem:[#allocation0 + $0x18] sm:$0xf] %v164_v4  ;;  %v166_v6 = vld [vmem:[%s258_s0 + $0x4] sm:$0xf] }
   0x5   :  { %74 = vst [vmem:[#allocation0 + $0x10] sm:$0xf] %v165_v5  ;;  %v79_v7 = vld [vmem:[%s258_s0] sm:$0xf]  ;;  %78 = vst [vmem:[#allocation0 + $0x8] sm:$0xf] %v166_v6 }
   0x6   :  { %80 = vst [vmem:[#allocation0] sm:$0xf] %v79_v7  ;;  %v152_v8 = vld [vmem:[%s258_s0 + $0x3c] sm:$0xf]  ;;  %v153_v9 = vld [vmem:[%s258_s0 + $0x38] sm:$0xf] }
   0x7   :  { %9 = vst [vmem:[#allocation0 + $0x78] sm:$0xf] %v152_v8  ;;  %14 = vst [vmem:[#allocation0 + $0x70] sm:$0xf] %v153_v9  ;;  %v154_v10 = vld [vmem:[%s258_s0 + $0x34] sm:$0xf] }
   0x8   :  { %v155_v11 = vld [vmem:[%s258_s0 + $0x30] sm:$0xf]  ;;  %v156_v12 = vld [vmem:[%s258_s0 + $0x2c] sm:$0xf]  ;;  %19 = vst [vmem:[#allocation0 + $0x68] sm:$0xf] %v154_v10 }
   0x9   :  { %24 = vst [vmem:[#allocation0 + $0x60] sm:$0xf] %v155_v11  ;;  %29 = vst [vmem:[#allocation0 + $0x58] sm:$0xf] %v156_v12  ;;  %v157_v13 = vld [vmem:[%s258_s0 + $0x28] sm:$0xf] }
   0xa   :  { %v158_v14 = vld [vmem:[%s258_s0 + $0x24] sm:$0xf]  ;;  %v159_v15 = vld [vmem:[%s258_s0 + $0x20] sm:$0xf]  ;;  %34 = vst [vmem:[#allocation0 + $0x50] sm:$0xf] %v157_v13 }
   0xb   :  { %39 = vst [vmem:[#allocation0 + $0x48] sm:$0xf] %v158_v14  ;;  %44 = vst [vmem:[#allocation0 + $0x40] sm:$0xf] %v159_v15  ;;  %s172_s0 = smov 32  }
   0xc   :  { %v99_v16 = vld [vmem:[#allocation0 + $0x2] ss:$8 sm:$0xf0]   ;;  %v120_v17 = vld [vmem:[#allocation0 + $0x1] ss:$8 sm:$0xf0]  }
   0xd   :  { %v97_v18 = vld [vmem:[#allocation0 + $0x2] ss:$8 sm:$0xf]   ;;  %v118_v19 = vld [vmem:[#allocation0 + $0x1] ss:$8 sm:$0xf]  }
   0xe   :  { %v101_v20 = vsel %vm83_vm0, %v99_v16, %v97_v18  ;;  %v122_v21 = vsel %vm83_vm0, %v120_v17, %v118_v19  ;;  %v81_v22 = vld [vmem:[#allocation0] ss:$8 sm:$0xf]  }
   0xf   :  { %v82_v23 = vld [vmem:[#allocation0] ss:$8 sm:$0xf0]   ;;  %102 = vrot.lane.b32.xlu0 %v101_v20, %s172_s0  ;;  %123 = vrot.lane.b32.xlu1 %v122_v21, %s173_s9 }
  0x10   :  { %v109_v24 = vld [vmem:[#allocation0 + $0x42] ss:$8 sm:$0xf0]   ;;  %v130_v25 = vld [vmem:[#allocation0 + $0x41] ss:$8 sm:$0xf0]   ;;  %v84_v26 = vsel %vm83_vm0, %v82_v23, %v81_v22 }
  0x11   :  { %86 = vst.msk [vmem:[%s259_s1] sm:$0xff] %vm85_vm1, %v84_v26   ;;  %v90_v32 = vld [vmem:[#allocation0 + $0x40] ss:$8 sm:$0xf0]  }
  0x12   :  { %v107_v27 = vld [vmem:[#allocation0 + $0x42] ss:$8 sm:$0xf]   ;;  %v128_v28 = vld [vmem:[#allocation0 + $0x41] ss:$8 sm:$0xf]  }
  0x13   :  { %v111_v29 = vsel %vm83_vm0, %v109_v24, %v107_v27  ;;  %v132_v30 = vsel %vm83_vm0, %v130_v25, %v128_v28  ;;  %v88_v31 = vld [vmem:[#allocation0 + $0x40] ss:$8 sm:$0xf]  }
  0x14   :  { %v92_v33 = vsel %vm83_vm0, %v90_v32, %v88_v31  ;;  %112 = vrot.lane.b32.xlu0 %v111_v29, %s172_s0  ;;  %133 = vrot.lane.b32.xlu1 %v132_v30, %s173_s9 }
  0x15   :  { %167 = vst.msk [vmem:[%s259_s1 + $0x8] sm:$0xff] %vm85_vm1, %v92_v33  }
  0x81   :  { %v103_v34 = vpop.permute.xlu0 %102   ;;  %v124_v35 = vpop.permute.xlu1 %123  }
  0x82   :  { %105 = vst.msk [vmem:[%s259_s1] sm:$0xff] %vm104_vm2, %v103_v34  }
  0x83   :  { %126 = vst.msk [vmem:[%s259_s1] sm:$0xff] %vm125_vm3, %v124_v35  }
  0x86   :  { %v113_v36 = vpop.permute.xlu0 %112   ;;  %v134_v37 = vpop.permute.xlu1 %133  }
  0x87   :  { %168 = vst.msk [vmem:[%s259_s1 + $0x8] sm:$0xff] %vm104_vm2, %v113_v36  }
  0x88   :  { %169 = vst.msk [vmem:[%s259_s1 + $0x8] sm:$0xff] %vm125_vm3, %v134_v37  }

// kernel: gcn_lstm_forward.1
= control target key start
LH: loop header
LB: loop body
LE: loop exit
PB: predicated region body
PF: predicated region fallthrough
CT: control target
= control target key end

     0   :  { %vm172_vm0 = vcmask 1043456   ;;  %v8305_v1 = vmov 0.0   ;;  %vm75_vm1 = vcmask 31744   ;;  %vm787_vm2 = vcmask 785408   ;;  %s6615_s14 = smov 32   ;;  %s6616_s17 = smov 64   ;;  %s8293_s2 = inlined_call_operand.vmem [shape: f32[4,384], index: 2, kind: input, shape index: {}]   ;;  %s8294_s1 = inlined_call_operand.vmem [shape: f32[256,4], index: 1, kind: input, shape index: {}]   ;;  %s8295_s0 = inlined_call_operand.vmem [shape: f32[32,96], index: 0, kind: input, shape index: {}]   ;;  %s8296_s4 = inlined_call_operand.vmem [shape: f32[1,128], index: 4, kind: input, shape index: {}]   ;;  %s8297_s3 = inlined_call_operand.vmem [shape: f32[32,384], index: 3, kind: input, shape index: {}]   ;;  %s8298_s5 = inlined_call_operand.vmem [shape: f32[32,384], index: 5, kind: input, shape index: {}]   ;;  %s8299_s8 = inlined_call_operand.vmem [shape: f32[1,128], index: 8, kind: input, shape index: {}]   ;;  %s8300_s6 = inlined_call_operand.vmem [shape: f32[32,384], index: 6, kind: input, shape index: {}]   ;;  %s8301_s7 = inlined_call_operand.vmem [shape: f32[1,384], index: 7, kind: input, shape index: {}]   ;;  %s8302_s9 = inlined_call_operand.vmem [shape: f32[32,4], index: 9, kind: input, shape index: {}]   ;;  %s8303_s10 = inlined_call_operand.vmem [shape: f32[1,4], index: 10, kind: input, shape index: {}]   ;;  %s8304_s11 = inlined_call_operand.vmem [shape: f32[96,4], index: 11, kind: output, shape index: {}]  }
   0x1   :  { %v70_v0 = vld [vmem:[%s8293_s2] sm:$0xff]  ;;  %243 = vmatprep.mubr.f32.mxu0 %v8305_v1  ;;  %429 = vmatprep.mubr.f32.mxu1 %v8305_v1  ;;  %v6688_v4 = vld [vmem:[%s8294_s1 + $0xf8] sm:$0xff]  ;;  %v71_v5 = vld [vmem:[%s8293_s2 + $0x8] sm:$0xf]  ;;  %vm1017_vm3 = vcmask 261120  }
   0x2   :  { %v74_v2 = vcombine.high %v70_v0, %v70_v0  ;;  %v38_v3 = vld [vmem:[%s8294_s1] sm:$0xff]  ;;  %v39_v6 = vld [vmem:[%s8294_s1 + $0x8] sm:$0xff]  ;;  %v40_v7 = vld [vmem:[%s8294_s1 + $0x10] sm:$0xff] }
   0x3   :  { %v41_v8 = vld [vmem:[%s8294_s1 + $0x18] sm:$0xff]  ;;  %v42_v9 = vld [vmem:[%s8294_s1 + $0x20] sm:$0xff]  ;;  %v43_v10 = vld [vmem:[%s8294_s1 + $0x28] sm:$0xff] }
   0x4   :  { %5125 = vmatprep.subr.msk.mxu0 %vm172_vm0, %v74_v2  ;;  %6226 = vmatprep.subr.msk.mxu1 %vm172_vm0, %v74_v2  ;;  %v44_v11 = vld [vmem:[%s8294_s1 + $0x30] sm:$0xff]  ;;  %v45_v12 = vld [vmem:[%s8294_s1 + $0x38] sm:$0xff]  ;;  %v46_v13 = vld [vmem:[%s8294_s1 + $0x40] sm:$0xff] }
   0x5   :  { %5126 = vmatpush1.msk.msra.mxu0 %vm172_vm0, %v70_v0  ;;  %6227 = vmatpush1.msk.msra.mxu1 %vm172_vm0, %v70_v0  ;;  %v47_v14 = vld [vmem:[%s8294_s1 + $0x48] sm:$0xff]  ;;  %v48_v15 = vld [vmem:[%s8294_s1 + $0x50] sm:$0xff]  ;;  %v49_v16 = vld [vmem:[%s8294_s1 + $0x58] sm:$0xff] }
   0x6   :  { %5127 = vmatmul.mubr.msk.f32.vlgmr.msra.gmra.mxu0 %vm75_vm1, %v38_v3  ;;  %5158 = vmatmul.mubr.msk.f32.vlgmr.msra.gmra.mxu1 %vm75_vm1, %v6688_v4  ;;  %v50_v17 = vld [vmem:[%s8294_s1 + $0x60] sm:$0xff]  ;;  %v51_v18 = vld [vmem:[%s8294_s1 + $0x68] sm:$0xff]  ;;  %v52_v19 = vld [vmem:[%s8294_s1 + $0x70] sm:$0xff] }
   0x7   :  { %5680 = vmatprep.subr.msk.mxu1 %vm172_vm0, %v71_v5  ;;  %249 = vmatprep.mubr.f32.mxu0 %v8305_v1  ;;  %v53_v20 = vld [vmem:[%s8294_s1 + $0x78] sm:$0xff]  ;;  %v54_v21 = vld [vmem:[%s8294_s1 + $0x80] sm:$0xff]  ;;  %v55_v22 = vld [vmem:[%s8294_s1 + $0x88] sm:$0xff] }
   0x8   :  { %5681 = vmatpush3.msk.msra.mxu1 %vm172_vm0, %v71_v5  ;;  %5682 = vmatprep.mubr.msk.f32.mxu1 %vm75_vm1, %v38_v3  ;;  %v56_v23 = vld [vmem:[%s8294_s1 + $0x90] sm:$0xff]  ;;  %v57_v24 = vld [vmem:[%s8294_s1 + $0x98] sm:$0xff]  ;;  %v58_v25 = vld [vmem:[%s8294_s1 + $0xa0] sm:$0xff] }
   0x9   :  { %v59_v26 = vld [vmem:[%s8294_s1 + $0xa8] sm:$0xff]  ;;  %v60_v27 = vld [vmem:[%s8294_s1 + $0xb0] sm:$0xff]  ;;  %v61_v28 = vld [vmem:[%s8294_s1 + $0xb8] sm:$0xff] }
   0xa   :  { %5128 = vmatmul.mubr.msk.f32.gmra.mxu0 %vm75_vm1, %v39_v6  ;;  %5683 = vmatmul.mubr.msk.f32.vlgmr.msra.gmra.mxu1 %vm75_vm1, %v39_v6  ;;  %v62_v29 = vld [vmem:[%s8294_s1 + $0xc0] sm:$0xff]  ;;  %v63_v30 = vld [vmem:[%s8294_s1 + $0xc8] sm:$0xff]  ;;  %v64_v31 = vld [vmem:[%s8294_s1 + $0xd0] sm:$0xff] }
   0xb   :  { %255 = vmatprep.mubr.f32.mxu0 %v8305_v1  ;;  %5685 = vmatprep.mubr.msk.f32.mxu1 %vm75_vm1, %v40_v7  ;;  %v65_v32 = vld [vmem:[%s8294_s1 + $0xd8] sm:$0xff]  ;;  %v66_v33 = vld [vmem:[%s8294_s1 + $0xe0] sm:$0xff]  ;;  %v67_v34 = vld [vmem:[%s8294_s1 + $0xe8] sm:$0xff] }
   0xc   :  { %v68_v35 = vld [vmem:[%s8294_s1 + $0xf0] sm:$0xff]  ;;  %v6876_v36 = vld [vmem:[%s8295_s0] sm:$0xff]  ;;  %v6899_v51 = vld [vmem:[%s8295_s0 + $0x8] sm:$0xff] }
   0xd   :  { %v6904_v52 = vld [vmem:[%s8295_s0 + $0x10] sm:$0xff]  ;;  %v6913_v53 = vld [vmem:[%s8295_s0 + $0x18] sm:$0xff] }
   0xe   :  { %5129 = vmatmul.mubr.msk.f32.gmra.mxu0 %vm75_vm1, %v40_v7  ;;  %5686 = vmatmul.mubr.msk.f32.gmra.mxu1 %vm75_vm1, %v41_v8 }
   0xf   :  { %261 = vmatprep.mubr.f32.mxu0 %v8305_v1  ;;  %5688 = vmatprep.mubr.msk.f32.mxu1 %vm75_vm1, %v42_v9 }
  0x12   :  { %5130 = vmatmul.mubr.msk.f32.gmra.mxu0 %vm75_vm1, %v41_v8  ;;  %5689 = vmatmul.mubr.msk.f32.gmra.mxu1 %vm75_vm1, %v43_v10 }
  0x13   :  { %5691 = vmatprep.mubr.msk.f32.mxu1 %vm75_vm1, %v44_v11  ;;  %267 = vmatprep.mubr.f32.mxu0 %v8305_v1 }
  0x16   :  { %5692 = vmatmul.mubr.msk.f32.gmra.mxu1 %vm75_vm1, %v45_v12  ;;  %5131 = vmatmul.mubr.msk.f32.gmra.mxu0 %vm75_vm1, %v42_v9 }
  0x17   :  { %5694 = vmatprep.mubr.msk.f32.mxu1 %vm75_vm1, %v46_v13  ;;  %273 = vmatprep.mubr.f32.mxu0 %v8305_v1 }
  0x1a   :  { %5695 = vmatmul.mubr.msk.f32.gmra.mxu1 %vm75_vm1, %v47_v14  ;;  %5132 = vmatmul.mubr.msk.f32.gmra.mxu0 %vm75_vm1, %v43_v10 }
  0x1b   :  { %5697 = vmatprep.mubr.msk.f32.mxu1 %vm75_vm1, %v48_v15  ;;  %279 = vmatprep.mubr.f32.mxu0 %v8305_v1 }
  0x1e   :  { %5698 = vmatmul.mubr.msk.f32.gmra.mxu1 %vm75_vm1, %v49_v16  ;;  %5133 = vmatmul.mubr.msk.f32.gmra.mxu0 %vm75_vm1, %v44_v11 }
  0x1f   :  { %5700 = vmatprep.mubr.msk.f32.mxu1 %vm75_vm1, %v50_v17  ;;  %285 = vmatprep.mubr.f32.mxu0 %v8305_v1 }
  0x22   :  { %5701 = vmatmul.mubr.msk.f32.gmra.mxu1 %vm75_vm1, %v51_v18  ;;  %5134 = vmatmul.mubr.msk.f32.gmra.mxu0 %vm75_vm1, %v45_v12 }
  0x23   :  { %5703 = vmatprep.mubr.msk.f32.mxu1 %vm75_vm1, %v52_v19  ;;  %291 = vmatprep.mubr.f32.mxu0 %v8305_v1 }
  0x26   :  { %5704 = vmatmul.mubr.msk.f32.gmra.mxu1 %vm75_vm1, %v53_v20  ;;  %5135 = vmatmul.mubr.msk.f32.gmra.mxu0 %vm75_vm1, %v46_v13 }
  0x27   :  { %297 = vmatprep.mubr.f32.mxu0 %v8305_v1  ;;  %5706 = vmatprep.mubr.msk.f32.mxu1 %vm75_vm1, %v54_v21 }
  0x2a   :  { %5136 = vmatmul.mubr.msk.f32.gmra.mxu0 %vm75_vm1, %v47_v14  ;;  %5707 = vmatmul.mubr.msk.f32.gmra.mxu1 %vm75_vm1, %v55_v22 }
  0x2b   :  { %303 = vmatprep.mubr.f32.mxu0 %v8305_v1  ;;  %5709 = vmatprep.mubr.msk.f32.mxu1 %vm75_vm1, %v56_v23 }
  0x2e   :  { %5137 = vmatmul.mubr.msk.f32.gmra.mxu0 %vm75_vm1, %v48_v15  ;;  %5710 = vmatmul.mubr.msk.f32.gmra.mxu1 %vm75_vm1, %v57_v24 }
  0x2f   :  { %309 = vmatprep.mubr.f32.mxu0 %v8305_v1  ;;  %5712 = vmatprep.mubr.msk.f32.mxu1 %vm75_vm1, %v58_v25 }
  0x32   :  { %5138 = vmatmul.mubr.msk.f32.gmra.mxu0 %vm75_vm1, %v49_v16  ;;  %5713 = vmatmul.mubr.msk.f32.gmra.mxu1 %vm75_vm1, %v59_v26 }
  0x33   :  { %315 = vmatprep.mubr.f32.mxu0 %v8305_v1  ;;  %5715 = vmatprep.mubr.msk.f32.mxu1 %vm75_vm1, %v60_v27 }
  0x36   :  { %5139 = vmatmul.mubr.msk.f32.gmra.mxu0 %vm75_vm1, %v50_v17  ;;  %5716 = vmatmul.mubr.msk.f32.gmra.mxu1 %vm75_vm1, %v61_v28 }
  0x37   :  { %321 = vmatprep.mubr.f32.mxu0 %v8305_v1  ;;  %5718 = vmatprep.mubr.msk.f32.mxu1 %vm75_vm1, %v62_v29 }
  0x3a   :  { %5140 = vmatmul.mubr.msk.f32.gmra.mxu0 %vm75_vm1, %v51_v18  ;;  %5719 = vmatmul.mubr.msk.f32.gmra.mxu1 %vm75_vm1, %v63_v30 }
  0x3b   :  { %327 = vmatprep.mubr.f32.mxu0 %v8305_v1  ;;  %5721 = vmatprep.mubr.msk.f32.mxu1 %vm75_vm1, %v64_v31 }
  0x3e   :  { %5141 = vmatmul.mubr.msk.f32.gmra.mxu0 %vm75_vm1, %v52_v19  ;;  %5722 = vmatmul.mubr.msk.f32.gmra.mxu1 %vm75_vm1, %v65_v32 }
  0x3f   :  { %333 = vmatprep.mubr.f32.mxu0 %v8305_v1  ;;  %5724 = vmatprep.mubr.msk.f32.mxu1 %vm75_vm1, %v66_v33 }
  0x42   :  { %5142 = vmatmul.mubr.msk.f32.gmra.mxu0 %vm75_vm1, %v53_v20  ;;  %5725 = vmatmul.mubr.msk.f32.gmra.mxu1 %vm75_vm1, %v67_v34  ;;  %v6977_v20 = vld [vmem:[%s8296_s4] ss:$0 sm:$0xff] }
  0x43   :  { %339 = vmatprep.mubr.f32.mxu0 %v8305_v1  ;;  %5727 = vmatprep.mubr.msk.f32.mxu1 %vm75_vm1, %v68_v35 }
  0x46   :  { %5143 = vmatmul.mubr.msk.f32.gmra.mxu0 %vm75_vm1, %v54_v21  ;;  %5728 = vmatmul.mubr.msk.f32.gmra.mxu1 %vm75_vm1, %v6688_v4 }
  0x47   :  { %345 = vmatprep.mubr.f32.mxu0 %v8305_v1  ;;  %5754 = vmatprep.mubr.msk.f32.mxu1 %vm787_vm2, %v6876_v36 }
  0x4a   :  { %5144 = vmatmul.mubr.msk.f32.gmra.mxu0 %vm75_vm1, %v55_v22 }
  0x4b   :  { %351 = vmatprep.mubr.f32.mxu0 %v8305_v1 }
  0x4e   :  { %5145 = vmatmul.mubr.msk.f32.gmra.mxu0 %vm75_vm1, %v56_v23 }
  0x4f   :  { %357 = vmatprep.mubr.f32.mxu0 %v8305_v1 }
  0x52   :  { %5146 = vmatmul.mubr.msk.f32.gmra.mxu0 %vm75_vm1, %v57_v24 }
  0x53   :  { %363 = vmatprep.mubr.f32.mxu0 %v8305_v1 }
  0x56   :  { %5147 = vmatmul.mubr.msk.f32.gmra.mxu0 %vm75_vm1, %v58_v25 }
  0x57   :  { %369 = vmatprep.mubr.f32.mxu0 %v8305_v1 }
  0x5a   :  { %5148 = vmatmul.mubr.msk.f32.gmra.mxu0 %vm75_vm1, %v59_v26 }
  0x5b   :  { %375 = vmatprep.mubr.f32.mxu0 %v8305_v1 }
  0x5e   :  { %5149 = vmatmul.mubr.msk.f32.gmra.mxu0 %vm75_vm1, %v60_v27 }
  0x5f   :  { %381 = vmatprep.mubr.f32.mxu0 %v8305_v1 }
  0x62   :  { %5150 = vmatmul.mubr.msk.f32.gmra.mxu0 %vm75_vm1, %v61_v28 }
  0x63   :  { %387 = vmatprep.mubr.f32.mxu0 %v8305_v1 }
  0x66   :  { %5151 = vmatmul.mubr.msk.f32.gmra.mxu0 %vm75_vm1, %v62_v29 }
  0x67   :  { %393 = vmatprep.mubr.f32.mxu0 %v8305_v1 }
  0x6a   :  { %5152 = vmatmul.mubr.msk.f32.gmra.mxu0 %vm75_vm1, %v63_v30 }
  0x6b   :  { %399 = vmatprep.mubr.f32.mxu0 %v8305_v1 }
  0x6e   :  { %5153 = vmatmul.mubr.msk.f32.gmra.mxu0 %vm75_vm1, %v64_v31 }
  0x6f   :  { %405 = vmatprep.mubr.f32.mxu0 %v8305_v1 }
  0x72   :  { %5154 = vmatmul.mubr.msk.f32.gmra.mxu0 %vm75_vm1, %v65_v32 }
  0x73   :  { %411 = vmatprep.mubr.f32.mxu0 %v8305_v1 }
  0x76   :  { %5155 = vmatmul.mubr.msk.f32.gmra.mxu0 %vm75_vm1, %v66_v33 }
  0x77   :  { %417 = vmatprep.mubr.f32.mxu0 %v8305_v1 }
  0x7a   :  { %5156 = vmatmul.mubr.msk.f32.gmra.mxu0 %vm75_vm1, %v67_v34 }
  0x7b   :  { %423 = vmatprep.mubr.f32.mxu0 %v8305_v1 }
  0x7e   :  { %5157 = vmatmul.mubr.msk.f32.gmra.mxu0 %vm75_vm1, %v68_v35 }
  0xc6   :  { %v245_v37 = vpop.f32.mrf.mxu0  ;;  %v6892_v38 = vpop.f32.mrf.mxu1 }
  0xc7   :  { %8307 = vst [vmem:[#allocation3_spill] sm:$0xff] %v6892_v38 }
  0xc8   :  { %v247_v39 = vpop.f32.mrf.mxu0  ;;  %v6894_v40 = vpop.f32.mrf.mxu1 }
  0xc9   :  { %8308 = vst [vmem:[#allocation4_spill] sm:$0xff] %v6894_v40 }
  0xca   :  { %v251_v41 = vpop.f32.mrf.mxu0  ;;  %v5684_v42 = vpop.f32.mrf.mxu1 }
  0xcc   :  { %v253_v43 = vpop.f32.mrf.mxu0  ;;  %v502_v44 = vpop.f32.mrf.mxu1 }
  0xce   :  { %v257_v45 = vpop.f32.mrf.mxu0  ;;  %v5687_v46 = vpop.f32.mrf.mxu1 }
  0xcf   :  { %5730 = vmatprep.subr.mxu1 %v5687_v46 }
  0xd0   :  { %v259_v47 = vpop.f32.mrf.mxu0  ;;  %v512_v48 = vpop.f32.mrf.mxu1  ;;  %5731 = vmatpush3.msra.mxu1 %v5687_v46 }
  0xd1   :  { %5732 = vmatprep.subr.mxu1 %v512_v48 }
  0xd2   :  { %v263_v49 = vpop.f32.mrf.mxu0  ;;  %5733 = vmatpush3.msra.mxu1 %v512_v48  ;;  %v6918_v54 = vpop.f32.mrf.mxu1 }
  0xd4   :  { %v265_v50 = vpop.f32.mrf.mxu0  ;;  %v6920_v55 = vpop.f32.mrf.mxu1 }
  0xd5   :  { %5734 = vmatprep.subr.mxu1 %v265_v50 }
  0xd6   :  { %5735 = vmatpush3.msra.mxu1 %v265_v50  ;;  %v6922_v56 = vpop.f32.mrf.mxu1 }
  0xd7   :  { %5736 = vmatprep.subr.mxu1 %v259_v47 }
  0xd8   :  { %5737 = vmatpush3.msra.mxu1 %v259_v47  ;;  %v6924_v57 = vpop.f32.mrf.mxu1 }
  0xd9   :  { %5738 = vmatprep.subr.mxu1 %v263_v49 }
  0xda   :  { %5739 = vmatpush3.msra.mxu1 %v263_v49  ;;  %v6926_v58 = vpop.f32.mrf.mxu1 }
  0xdb   :  { %5740 = vmatprep.subr.mxu1 %v257_v45 }
  0xdc   :  { %5741 = vmatpush3.msra.mxu1 %v257_v45  ;;  %v6928_v59 = vpop.f32.mrf.mxu1 }
  0xdd   :  { %5742 = vmatprep.subr.mxu1 %v5684_v42 }
  0xde   :  { %5743 = vmatpush3.msra.mxu1 %v5684_v42  ;;  %v6930_v60 = vpop.f32.mrf.mxu1 }
  0xdf   :  { %5744 = vmatprep.subr.mxu1 %v502_v44 }
  0xe0   :  { %5745 = vmatpush3.msra.mxu1 %v502_v44  ;;  %v6932_v61 = vpop.f32.mrf.mxu1 }
  0xe1   :  { %5746 = vmatprep.subr.mxu1 %v253_v43 }
  0xe2   :  { %5747 = vmatpush3.msra.mxu1 %v253_v43  ;;  %v6934_v62 = vpop.f32.mrf.mxu1 }
  0xe3   :  { %5748 = vmatprep.subr.mxu1 %v247_v39 }
  0xe4   :  { %5749 = vmatpush3.msra.mxu1 %v247_v39  ;;  %v6936_v63 = vpop.f32.mrf.mxu1 }
  0xe5   :  { %5750 = vmatprep.subr.mxu1 %v251_v41 }
  0xe6   :  { %5751 = vmatpush3.msra.mxu1 %v251_v41  ;;  %v6938_v0 = vpop.f32.mrf.mxu1 }
  0xe7   :  { %5752 = vmatprep.subr.mxu1 %v245_v37 }
  0xe8   :  { %5753 = vmatpush3.msra.mxu1 %v245_v37  ;;  %v6940_v2 = vpop.f32.mrf.mxu1 }
  0xe9   :  { %5755 = vmatmul.mubr.msk.f32.vlgmr.msra.gmra.mxu1 %vm787_vm2, %v6899_v51 }
  0xea   :  { %5757 = vmatprep.mubr.msk.f32.mxu1 %vm787_vm2, %v6904_v52  ;;  %v6942_v3 = vpop.f32.mrf.mxu1 }
  0xeb   :  { %8309 = vst [vmem:[#allocation5_spill] sm:$0xff] %v6942_v3 }
  0xec   :  { %v6944_v4 = vpop.f32.mrf.mxu1 }
  0xed   :  { %5758 = vmatmul.mubr.msk.f32.gmra.mxu1 %vm787_vm2, %v6913_v53  ;;  %8310 = vst [vmem:[#allocation6_spill] sm:$0xff] %v6944_v4 }
  0xee   :  { %1090 = vmatprep.mubr.f32.mxu1 %v8305_v1  ;;  %v6946_v5 = vpop.f32.mrf.mxu1 }
  0xf0   :  { %v6948_v6 = vpop.f32.mrf.mxu1 }
  0xf2   :  { %v6950_v7 = vpop.f32.mrf.mxu1 }
  0xf3   :  { %8311 = vst [vmem:[#allocation7_spill] sm:$0xff] %v6950_v7 }
  0xf4   :  { %v6952_v8 = vpop.f32.mrf.mxu1 }
  0xf5   :  { %8312 = vst [vmem:[#allocation8_spill] sm:$0xff] %v6952_v8 }
  0xf6   :  { %v6954_v9 = vpop.f32.mrf.mxu1 }
  0xf7   :  { %8313 = vst [vmem:[#allocation9_spill] sm:$0xff] %v6954_v9 }
  0xf8   :  { %v6956_v10 = vpop.f32.mrf.mxu1 }
  0xf9   :  { %8314 = vst [vmem:[#allocation10_spill] sm:$0xff] %v6956_v10 }
  0xfa   :  { %v6958_v11 = vpop.f32.mrf.mxu1 }
  0xfb   :  { %8315 = vst [vmem:[#allocation11_spill] sm:$0xff] %v6958_v11 }
  0xfc   :  { %v6960_v12 = vpop.f32.mrf.mxu1 }
  0xfd   :  { %8316 = vst [vmem:[#allocation12_spill] sm:$0xff] %v6960_v12 }
  0xfe   :  { %v6962_v13 = vpop.f32.mrf.mxu1 }
  0xff   :  { %8317 = vst [vmem:[#allocation13_spill] sm:$0xff] %v6962_v13 }
 0x100   :  { %v6964_v14 = vpop.f32.mrf.mxu1 }
 0x101   :  { %8318 = vst [vmem:[#allocation14_spill] sm:$0xff] %v6964_v14 }
 0x102   :  { %v6966_v15 = vpop.f32.mrf.mxu1 }
 0x103   :  { %8319 = vst [vmem:[#allocation15_spill] sm:$0xff] %v6966_v15 }
 0x104   :  { %v6968_v16 = vpop.f32.mrf.mxu1 }
 0x105   :  { %8320 = vst [vmem:[#allocation16_spill] sm:$0xff] %v6968_v16 }
 0x106   :  { %v6970_v17 = vpop.f32.mrf.mxu1 }
 0x107   :  { %8321 = vst [vmem:[#allocation17_spill] sm:$0xff] %v6970_v17 }
 0x108   :  { %v6972_v18 = vpop.f32.mrf.mxu1 }
 0x109   :  { %8322 = vst [vmem:[#allocation18_spill] sm:$0xff] %v6972_v18 }
 0x1a9   :  { %v5756_v19 = vpop.f32.mrf.mxu1 }
 0x1aa   :  { %v872_v24 = vadd.f32 %v5756_v19, %v6977_v20 }
 0x1ab   :  { %v866_v21 = vpop.f32.mrf.mxu1 }
 0x1ac   :  { %v867_v22 = vadd.f32 %v6977_v20, %v866_v21  ;;  %v5199_v33 = vmul.f32 -1.442695, %v872_v24 }
 0x1ad   :  { %v5759_v23 = vpop.f32.mrf.mxu1 }
 0x1ae   :  { %6232 = vtanh.f32 %v867_v22  ;;  %v882_v27 = vadd.f32 %v5759_v23, %v6977_v20  ;;  %v5198_v32 = vmul.f32 -1.442695, %v867_v22 }
 0x1af   :  { %v876_v25 = vpop.f32.mrf.mxu1  ;;  %6234 = vtanh.f32 %v872_v24 }
 0x1b0   :  { %v877_v26 = vadd.f32 %v6977_v20, %v876_v25  ;;  %v5201_v35 = vmul.f32 -1.442695, %v882_v27 }
 0x1b2   :  { %6236 = vtanh.f32 %v877_v26  ;;  %v5200_v34 = vmul.f32 -1.442695, %v877_v26 }
 0x1b3   :  { %6238 = vtanh.f32 %v882_v27 }
 0x1b4   :  { %6240 = vpow2.f32 %v5198_v32 }
 0x1b5   :  { %6242 = vpow2.f32 %v5199_v33 }
 0x1b6   :  { %6244 = vpow2.f32 %v5200_v34 }
 0x1b7   :  { %6246 = vpow2.f32 %v5201_v35 }
 0x1bb   :  { %v6233_v28 = vpop.eup %6232 }
 0x1bc   :  { %921 = vrot.lane.b32.xlu0 %v6233_v28, %s6615_s14  ;;  %v6235_v29 = vpop.eup %6234 }
 0x1bf   :  { %v6237_v30 = vpop.eup %6236 }
 0x1c0   :  { %925 = vrot.lane.b32.xlu1 %v6237_v30, %s6615_s14  ;;  %923 = vrot.lane.b32.xlu0 %v6235_v29, %s6615_s14  ;;  %v6239_v31 = vpop.eup %6238 }
 0x1c1   :  { %v6241_v37 = vpop.eup %6240 }
 0x1c2   :  { %v6243_v39 = vpop.eup %6242  ;;  %v897_v41 = vadd.f32 1.0, %v6241_v37 }
 0x1c3   :  { %v6245_v42 = vpop.eup %6244  ;;  %v898_v43 = vadd.f32 1.0, %v6243_v39 }
 0x1c4   :  { %927 = vrot.lane.b32.xlu1 %v6239_v31, %s6615_s14  ;;  %6248 = vrcp.f32 %v897_v41  ;;  %v899_v44 = vadd.f32 1.0, %v6245_v42  ;;  %v6247_v45 = vpop.eup %6246 }
 0x1c5   :  { %6250 = vrcp.f32 %v898_v43  ;;  %v900_v46 = vadd.f32 1.0, %v6247_v45  ;;  %v7022_v43 = vld [vmem:[%s8297_s3 + $0x50] sm:$0xff]  ;;  %v7032_v45 = vld [vmem:[%s8297_s3 + $0x38] sm:$0xff] }
 0x1c6   :  { %6252 = vrcp.f32 %v899_v44  ;;  %v7027_v44 = vld [vmem:[%s8297_s3 + $0x48] sm:$0xff]  ;;  %1050 = vmatprep.subr.mxu1 %v7022_v43 }
 0x1c7   :  { %6254 = vrcp.f32 %v900_v46  ;;  %1051 = vmatpush1.msra.mxu1 %v7027_v44 }
 0x1c8   :  { %1052 = vmatprep.subr.mxu1 %v7032_v45 }
 0x1d1   :  { %v6987_v47 = vpop.eup %6248 }
 0x1d2   :  { %v6990_v50 = vpop.eup %6250  ;;  %v913_v28 = vmul.f32 0.0, %v6987_v47 }
 0x1d3   :  { %v6993_v19 = vpop.eup %6252  ;;  %v914_v31 = vmul.f32 0.0, %v6990_v50 }
 0x1d4   :  { %v6999_v25 = vpop.eup %6254  ;;  %v915_v32 = vmul.f32 0.0, %v6993_v19 }
 0x1d5   :  { %v916_v39 = vmul.f32 0.0, %v6999_v25 }
 0x22e   :  { %v922_v48 = vpop.permute.xlu0 %921 }
 0x22f   :  { %v933_v49 = vmul.f32 %v6987_v47, %v922_v48  ;;  %v7038_v48 = vld [vmem:[%s8297_s3 + $0x30] sm:$0xff] }
 0x230   :  { %1053 = vmatpush1.msra.mxu1 %v7038_v48 }
 0x231   :  { %941 = vrot.lane.b32.xlu0 %v933_v49, %s6615_s14  ;;  %v7045_v49 = vld [vmem:[%s8297_s3 + $0x20] sm:$0xff] }
 0x232   :  { %v926_v21 = vpop.permute.xlu1 %925  ;;  %v924_v22 = vpop.permute.xlu0 %923  ;;  %1054 = vmatprep.subr.mxu1 %v7045_v49 }
 0x233   :  { %v935_v23 = vmul.f32 %v6993_v19, %v926_v21  ;;  %v934_v24 = vmul.f32 %v6990_v50, %v924_v22  ;;  %v7051_v21 = vld [vmem:[%s8297_s3 + $0x18] sm:$0xff]  ;;  %v7057_v22 = vld [vmem:[%s8297_s3 + $0x8] sm:$0xff] }
 0x234   :  { %1055 = vmatpush1.msra.mxu1 %v7051_v21 }
 0x235   :  { %943 = vrot.lane.b32.xlu1 %v934_v24, %s6615_s14  ;;  %945 = vrot.lane.b32.xlu0 %v935_v23, %s6615_s14  ;;  %v7063_v24 = vld [vmem:[%s8297_s3] sm:$0xff] }
 0x236   :  { %v928_v26 = vpop.permute.xlu1 %927  ;;  %1056 = vmatprep.subr.mxu1 %v7057_v22 }
 0x237   :  { %v936_v27 = vmul.f32 %v6999_v25, %v928_v26  ;;  %1057 = vmatpush1.msra.mxu1 %v7063_v24 }
 0x239   :  { %947 = vrot.lane.b32.xlu1 %v936_v27, %s6615_s14 }
 0x2a3   :  { %v942_v29 = vpop.permute.xlu0 %941 }
 0x2a4   :  { %v7004_v30 = vadd.f32 %v942_v29, %v913_v28  ;;  %v7074_v28 = vld [vmem:[%s8297_s3 + $0x58] sm:$0xff] }
 0x2a5   :  { %5760 = vmatprep.subr.mxu1 %v7074_v28  ;;  %5804 = vmatprep.subr.mxu0 %v7074_v28 }
 0x2a6   :  { %6256 = vtanh.f32 %v7004_v30  ;;  %5805 = vmatpush3.msra.mxu0 %v7074_v28 }
 0x2a7   :  { %v944_v33 = vpop.permute.xlu1 %943  ;;  %v946_v34 = vpop.permute.xlu0 %945 }
 0x2a8   :  { %v7009_v35 = vadd.f32 %v944_v33, %v914_v31  ;;  %v7011_v37 = vadd.f32 %v946_v34, %v915_v32  ;;  %v7081_v31 = vld [vmem:[%s8297_s3 + $0x40] sm:$0xff]  ;;  %v7089_v33 = vld [vmem:[%s8297_s3 + $0x28] sm:$0xff] }
 0x2a9   :  { %5806 = vmatprep.subr.mxu0 %v7081_v31 }
 0x2aa   :  { %6258 = vtanh.f32 %v7009_v35  ;;  %5807 = vmatpush3.msra.mxu0 %v7081_v31 }
 0x2ab   :  { %6260 = vtanh.f32 %v7011_v37  ;;  %v948_v41 = vpop.permute.xlu1 %947  ;;  %5808 = vmatprep.subr.mxu0 %v7089_v33 }
 0x2ac   :  { %v7016_v42 = vadd.f32 %v948_v41, %v916_v39  ;;  %v7097_v39 = vld [vmem:[%s8297_s3 + $0x10] sm:$0xff]  ;;  %5809 = vmatpush3.msra.mxu0 %v7089_v33 }
 0x2ad   :  { %5810 = vmatprep.subr.mxu0 %v7097_v39 }
 0x2ae   :  { %6262 = vtanh.f32 %v7016_v42  ;;  %5811 = vmatpush3.msra.mxu0 %v7097_v39 }
 0x2af   :  { %1848 = vmatprep.subr.mxu0 %v7022_v43 }
 0x2b3   :  { %v6257_v46 = vpop.eup %6256 }
 0x2b4   :  { %965 = vrot.lane.b32.xlu0 %v6257_v46, %s6615_s14 }
 0x2b7   :  { %v6259_v23 = vpop.eup %6258 }
 0x2b8   :  { %v6261_v26 = vpop.eup %6260  ;;  %967 = vrot.lane.b32.xlu1 %v6259_v23, %s6615_s14 }
 0x2b9   :  { %969 = vrot.lane.b32.xlu0 %v6261_v26, %s6615_s14 }
 0x2bb   :  { %v6263_v27 = vpop.eup %6262 }
 0x2bc   :  { %971 = vrot.lane.b32.xlu1 %v6263_v27, %s6615_s14 }
 0x326   :  { %v966_v29 = vpop.permute.xlu0 %965 }
 0x327   :  { %v977_v32 = vmul.f32 %v6987_v47, %v966_v29  ;;  %v269_v29 = vpop.f32.mrf.mxu0 }
 0x329   :  { %1009 = vrot.lane.b32.xlu0 %v977_v32, %s6616_s17  ;;  %v271_v32 = vpop.f32.mrf.mxu0 }
 0x32a   :  { %v968_v34 = vpop.permute.xlu1 %967 }
 0x32b   :  { %v978_v47 = vmul.f32 %v6990_v50, %v968_v34  ;;  %v970_v41 = vpop.permute.xlu0 %969 }
 0x32c   :  { %v979_v46 = vmul.f32 %v6993_v19, %v970_v41  ;;  %v275_v41 = vpop.f32.mrf.mxu0 }
 0x32d   :  { %1011 = vrot.lane.b32.xlu1 %v978_v47, %s6616_s17 }
 0x32e   :  { %1013 = vrot.lane.b32.xlu0 %v979_v46, %s6616_s17  ;;  %v972_v23 = vpop.permute.xlu1 %971 }
 0x32f   :  { %v980_v26 = vmul.f32 %v6999_v25, %v972_v23  ;;  %v277_v23 = vpop.f32.mrf.mxu0 }
 0x331   :  { %1015 = vrot.lane.b32.xlu1 %v980_v26, %s6616_s17  ;;  %v281_v16 = vpop.f32.mrf.mxu0 }
 0x39b   :  { %v1010_v50 = vpop.permute.xlu0 %1009 }
 0x39c   :  { %5202 = vmatmul.mubr.msk.f32.vlgmr.msra.gmra.mxu1 %vm1017_vm3, %v1010_v50 }
 0x39d   :  { %1096 = vmatprep.mubr.f32.mxu1 %v8305_v1  ;;  %5761 = vmatpush3.msra.mxu1 %v7074_v28 }
 0x39e   :  { %5762 = vmatprep.subr.mxu1 %v7081_v31 }
 0x39f   :  { %v1012_v19 = vpop.permute.xlu1 %1011  ;;  %5763 = vmatpush3.msra.mxu1 %v7081_v31 }
 0x3a0   :  { %5203 = vmatmul.mubr.msk.f32.gmra.mxu1 %vm1017_vm3, %v1012_v19  ;;  %5764 = vmatprep.subr.mxu1 %v7089_v33  ;;  %v1014_v25 = vpop.permute.xlu0 %1013 }
 0x3a1   :  { %1102 = vmatprep.mubr.f32.mxu1 %v8305_v1  ;;  %5765 = vmatpush3.msra.mxu1 %v7089_v33 }
 0x3a2   :  { %5766 = vmatprep.subr.mxu1 %v7097_v39 }
 0x3a3   :  { %5767 = vmatpush3.msra.mxu1 %v7097_v39  ;;  %v1016_v27 = vpop.permute.xlu1 %1015 }
 0x3a4   :  { %5204 = vmatmul.mubr.msk.f32.gmra.mxu1 %vm1017_vm3, %v1014_v25 }
 0x3a5   :  { %1108 = vmatprep.mubr.f32.mxu1 %v8305_v1 }
 0x3a8   :  { %5205 = vmatmul.mubr.msk.f32.gmra.mxu1 %vm1017_vm3, %v1016_v27 }
 0x3a9   :  { %5768 = vmatprep.mubr.msk.f32.mxu1 %vm1017_vm3, %v1010_v50 }
 0x3ac   :  { %5769 = vmatmul.mubr.msk.f32.vlgmr.msra.gmra.mxu1 %vm1017_vm3, %v1012_v19  ;;  %v283_v19 = vpop.f32.mrf.mxu0 }
 0x3ad   :  { %5771 = vmatprep.mubr.msk.f32.mxu1 %vm1017_vm3, %v1014_v25 }
 0x3ae   :  { %v287_v40 = vpop.f32.mrf.mxu0 }
 0x3b0   :  { %5772 = vmatmul.mubr.msk.f32.gmra.mxu1 %vm1017_vm3, %v1016_v27  ;;  %v289_v12 = vpop.f32.mrf.mxu0 }
 0x3b1   :  { %5798 = vmatprep.mubr.msk.f32.mxu1 %vm787_vm2, %v6876_v36 }
 0x45c   :  { %v1092_v34 = vpop.f32.mrf.mxu1 }
 0x45e   :  { %v1094_v47 = vpop.f32.mrf.mxu1 }
 0x460   :  { %v1098_v46 = vpop.f32.mrf.mxu1 }
 0x462   :  { %v1100_v26 = vpop.f32.mrf.mxu1 }
 0x464   :  { %v1104_v1 = vpop.f32.mrf.mxu1 }
 0x465   :  { %v1206_v10 = vadd.f32 %v1104_v1, %v281_v16  ;;  %v1200_v1 = vadd.f32 %v1092_v34, %v269_v29 }
 0x466   :  { %v1106_v50 = vpop.f32.mrf.mxu1 }
 0x467   :  { %v1207_v8 = vadd.f32 %v1106_v50, %v283_v19 }
 0x468   :  { %v1110_v15 = vpop.f32.mrf.mxu1 }
 0x469   :  { %v1209_v7 = vadd.f32 %v1110_v15, %v287_v40  ;;  %v1203_v40 = vadd.f32 %v1098_v46, %v275_v41 }
 0x46a   :  { %v1112_v38 = vpop.f32.mrf.mxu1 }
 0x46b   :  { %v1210_v13 = vadd.f32 %v1112_v38, %v289_v12  ;;  %v1204_v38 = vadd.f32 %v1100_v26, %v277_v23 }
 0x46c   :  { %v5770_v25 = vpop.f32.mrf.mxu1 }
 0x46e   :  { %v1181_v27 = vpop.f32.mrf.mxu1 }
 0x470   :  { %v5773_v18 = vpop.f32.mrf.mxu1 }
 0x471   :  { %v1211_v17 = vadd.f32 %v5773_v18, %v6922_v56  ;;  %v1205_v56 = vadd.f32 %v5770_v25, %v6918_v54  ;;  %v8323_v54 = vmov 0.0  }
 0x472   :  { %v1191_v11 = vpop.f32.mrf.mxu1 }
 0x473   :  { %v1208_v14 = vadd.f32 %v1191_v11, %v6924_v57  ;;  %5774 = vmatprep.subr.mxu1 %v1211_v17  ;;  %v1202_v57 = vadd.f32 %v1181_v27, %v6920_v55  ;;  %v1201_v11 = vadd.f32 %v1094_v47, %v271_v32 }
 0x474   :  { %5775 = vmatpush3.msra.mxu1 %v1211_v17 }
 0x475   :  { %5776 = vmatprep.subr.mxu1 %v1208_v14 }
 0x476   :  { %5777 = vmatpush3.msra.mxu1 %v1208_v14 }
 0x477   :  { %5778 = vmatprep.subr.mxu1 %v1210_v13 }
 0x478   :  { %5779 = vmatpush3.msra.mxu1 %v1210_v13 }
 0x479   :  { %5780 = vmatprep.subr.mxu1 %v1207_v8 }
 0x47a   :  { %5781 = vmatpush3.msra.mxu1 %v1207_v8 }
 0x47b   :  { %5782 = vmatprep.subr.mxu1 %v1209_v7 }
 0x47c   :  { %5783 = vmatpush3.msra.mxu1 %v1209_v7 }
 0x47d   :  { %5784 = vmatprep.subr.mxu1 %v1206_v10 }
 0x47e   :  { %5785 = vmatpush3.msra.mxu1 %v1206_v10 }
 0x47f   :  { %5786 = vmatprep.subr.mxu1 %v1205_v56 }
 0x480   :  { %5787 = vmatpush3.msra.mxu1 %v1205_v56 }
 0x481   :  { %5788 = vmatprep.subr.mxu1 %v1202_v57 }
 0x482   :  { %5789 = vmatpush3.msra.mxu1 %v1202_v57 }
 0x483   :  { %5790 = vmatprep.subr.mxu1 %v1204_v38 }
 0x484   :  { %5791 = vmatpush3.msra.mxu1 %v1204_v38 }
 0x485   :  { %5792 = vmatprep.subr.mxu1 %v1201_v11 }
 0x486   :  { %5793 = vmatpush3.msra.mxu1 %v1201_v11 }
 0x487   :  { %5794 = vmatprep.subr.mxu1 %v1203_v40 }
 0x488   :  { %5795 = vmatpush3.msra.mxu1 %v1203_v40 }
 0x489   :  { %5796 = vmatprep.subr.mxu1 %v1200_v1 }
 0x48a   :  { %5797 = vmatpush3.msra.mxu1 %v1200_v1 }
 0x48b   :  { %5799 = vmatmul.mubr.msk.f32.vlgmr.msra.gmra.mxu1 %vm787_vm2, %v6899_v51  ;;  %1449 = vmatprep.subr.mxu1 %v7022_v43 }
 0x48c   :  { %5801 = vmatprep.mubr.msk.f32.mxu1 %vm787_vm2, %v6904_v52  ;;  %1450 = vmatpush1.msra.mxu1 %v7027_v44 }
 0x48d   :  { %1451 = vmatprep.subr.mxu1 %v7032_v45 }
 0x48e   :  { %1452 = vmatpush1.msra.mxu1 %v7038_v48 }
 0x48f   :  { %5802 = vmatmul.mubr.msk.f32.gmra.mxu1 %vm787_vm2, %v6913_v53  ;;  %1453 = vmatprep.subr.mxu1 %v7045_v49 }
 0x490   :  { %1454 = vmatpush1.msra.mxu1 %v7051_v21  ;;  %1489 = vmatprep.mubr.f32.mxu1 %v8323_v54 }
 0x491   :  { %1455 = vmatprep.subr.mxu1 %v7057_v22 }
 0x492   :  { %1456 = vmatpush1.msra.mxu1 %v7063_v24 }
 0x54b   :  { %v5800_v55 = vpop.f32.mrf.mxu1 }
 0x54c   :  { %v1284_v7 = vadd.f32 %v5800_v55, %v6977_v20 }
 0x54d   :  { %v1278_v8 = vpop.f32.mrf.mxu1 }
 0x54e   :  { %6264 = vtanh.f32 %v1284_v7  ;;  %v1279_v10 = vadd.f32 %v6977_v20, %v1278_v8  ;;  %v5215_v32 = vmul.f32 -1.442695, %v1284_v7 }
 0x54f   :  { %v5803_v12 = vpop.f32.mrf.mxu1 }
 0x550   :  { %v1294_v13 = vadd.f32 %v5803_v12, %v6977_v20  ;;  %6266 = vtanh.f32 %v1279_v10  ;;  %v5214_v34 = vmul.f32 -1.442695, %v1279_v10 }
 0x551   :  { %v1288_v14 = vpop.f32.mrf.mxu1 }
 0x552   :  { %v1289_v15 = vadd.f32 %v6977_v20, %v1288_v14  ;;  %6268 = vtanh.f32 %v1294_v13  ;;  %v5217_v47 = vmul.f32 -1.442695, %v1294_v13 }
 0x554   :  { %6270 = vtanh.f32 %v1289_v15  ;;  %v5216_v41 = vmul.f32 -1.442695, %v1289_v15 }
 0x555   :  { %6272 = vpow2.f32 %v5215_v32 }
 0x556   :  { %6274 = vpow2.f32 %v5214_v34 }
 0x557   :  { %6276 = vpow2.f32 %v5217_v47 }
 0x558   :  { %6278 = vpow2.f32 %v5216_v41 }
 0x55b   :  { %v6265_v16 = vpop.eup %6264 }
 0x55c   :  { %1335 = vrot.lane.b32.xlu1 %v6265_v16, %s6615_s14 }
 0x55d   :  { %v6267_v17 = vpop.eup %6266 }
 0x55e   :  { %1333 = vrot.lane.b32.xlu0 %v6267_v17, %s6615_s14 }
 0x55f   :  { %v6269_v18 = vpop.eup %6268 }
 0x560   :  { %1339 = vrot.lane.b32.xlu1 %v6269_v18, %s6615_s14 }
 0x561   :  { %v6271_v29 = vpop.eup %6270 }
 0x562   :  { %1337 = vrot.lane.b32.xlu0 %v6271_v29, %s6615_s14  ;;  %v6273_v46 = vpop.eup %6272 }
 0x563   :  { %v6275_v23 = vpop.eup %6274  ;;  %v1310_v26 = vadd.f32 1.0, %v6273_v46 }
 0x564   :  { %v6277_v50 = vpop.eup %6276  ;;  %v1309_v19 = vadd.f32 1.0, %v6275_v23 }
 0x565   :  { %v6279_v25 = vpop.eup %6278  ;;  %6280 = vrcp.f32 %v1310_v26  ;;  %v1312_v27 = vadd.f32 1.0, %v6277_v50 }
 0x566   :  { %6282 = vrcp.f32 %v1309_v19  ;;  %v1311_v56 = vadd.f32 1.0, %v6279_v25 }
 0x567   :  { %6284 = vrcp.f32 %v1312_v27 }
 0x568   :  { %6286 = vrcp.f32 %v1311_v56 }
 0x572   :  { %v6281_v57 = vpop.eup %6280 }
 0x573   :  { %v6283_v40 = vpop.eup %6282  ;;  %v1326_v15 = vmul.f32 %v6281_v57, %v7009_v35 }
 0x574   :  { %v6285_v7 = vpop.eup %6284  ;;  %v1325_v18 = vmul.f32 %v6283_v40, %v7004_v30 }
 0x575   :  { %v6287_v12 = vpop.eup %6286  ;;  %v1328_v34 = vmul.f32 %v6285_v7, %v7016_v42 }
 0x576   :  { %v1327_v46 = vmul.f32 %v6287_v12, %v7011_v37 }
 0x5ce   :  { %v1336_v38 = vpop.permute.xlu1 %1335 }
 0x5cf   :  { %v1346_v11 = vmul.f32 %v6281_v57, %v1336_v38 }
 0x5d0   :  { %v1334_v1 = vpop.permute.xlu0 %1333 }
 0x5d1   :  { %1355 = vrot.lane.b32.xlu1 %v1346_v11, %s6615_s14  ;;  %v1345_v55 = vmul.f32 %v6283_v40, %v1334_v1 }
 0x5d2   :  { %v1340_v8 = vpop.permute.xlu1 %1339 }
 0x5d3   :  { %v1348_v10 = vmul.f32 %v6285_v7, %v1340_v8  ;;  %1353 = vrot.lane.b32.xlu0 %v1345_v55, %s6615_s14 }
 0x5d4   :  { %v1338_v13 = vpop.permute.xlu0 %1337 }
 0x5d5   :  { %v1347_v14 = vmul.f32 %v6287_v12, %v1338_v13  ;;  %1359 = vrot.lane.b32.xlu1 %v1348_v10, %s6615_s14 }
 0x5d7   :  { %1357 = vrot.lane.b32.xlu0 %v1347_v14, %s6615_s14 }
 0x643   :  { %v1356_v16 = vpop.permute.xlu1 %1355 }
 0x644   :  { %v7161_v17 = vadd.f32 %v1356_v16, %v1326_v15 }
 0x645   :  { %v1354_v29 = vpop.permute.xlu0 %1353 }
 0x646   :  { %6288 = vtanh.f32 %v7161_v17  ;;  %v7165_v32 = vadd.f32 %v1354_v29, %v1325_v18 }
 0x647   :  { %v1360_v47 = vpop.permute.xlu1 %1359 }
 0x648   :  { %6290 = vtanh.f32 %v7165_v32  ;;  %v7169_v41 = vadd.f32 %v1360_v47, %v1328_v34 }
 0x649   :  { %v1358_v35 = vpop.permute.xlu0 %1357 }
 0x64a   :  { %6292 = vtanh.f32 %v7169_v41  ;;  %v7173_v23 = vadd.f32 %v1358_v35, %v1327_v46 }
 0x64c   :  { %6294 = vtanh.f32 %v7173_v23 }
 0x653   :  { %v6289_v30 = vpop.eup %6288 }
 0x654   :  { %1379 = vrot.lane.b32.xlu1 %v6289_v30, %s6615_s14 }
 0x655   :  { %v6291_v26 = vpop.eup %6290 }
 0x656   :  { %1377 = vrot.lane.b32.xlu0 %v6291_v26, %s6615_s14 }
 0x657   :  { %v6293_v42 = vpop.eup %6292 }
 0x658   :  { %1383 = vrot.lane.b32.xlu1 %v6293_v42, %s6615_s14 }
 0x659   :  { %v6295_v50 = vpop.eup %6294 }
 0x65a   :  { %1381 = vrot.lane.b32.xlu0 %v6295_v50, %s6615_s14 }
 0x6c6   :  { %v1380_v37 = vpop.permute.xlu1 %1379 }
 0x6c7   :  { %v1390_v19 = vmul.f32 %v6281_v57, %v1380_v37 }
 0x6c8   :  { %v1378_v25 = vpop.permute.xlu0 %1377 }
 0x6c9   :  { %1411 = vrot.lane.b32.xlu1 %v1390_v19, %s6616_s17  ;;  %v1389_v27 = vmul.f32 %v6283_v40, %v1378_v25 }
 0x6ca   :  { %v1384_v56 = vpop.permute.xlu1 %1383 }
 0x6cb   :  { %v1392_v38 = vmul.f32 %v6285_v7, %v1384_v56  ;;  %1409 = vrot.lane.b32.xlu0 %v1389_v27, %s6616_s17  ;;  %v7200_v7 = vpop.f32.mrf.mxu0 }
 0x6cc   :  { %v1382_v11 = vpop.permute.xlu0 %1381 }
 0x6cd   :  { %v1391_v1 = vmul.f32 %v6287_v12, %v1382_v11  ;;  %1415 = vrot.lane.b32.xlu1 %v1392_v38, %s6616_s17  ;;  %v7206_v10 = vpop.f32.mrf.mxu0 }
 0x6cf   :  { %1413 = vrot.lane.b32.xlu0 %v1391_v1, %s6616_s17  ;;  %v7210_v12 = vpop.f32.mrf.mxu0 }
 0x6d1   :  { %v7212_v13 = vpop.f32.mrf.mxu0 }
 0x6d3   :  { %v7214_v14 = vpop.f32.mrf.mxu0 }
 0x6d5   :  { %v307_v15 = vpop.f32.mrf.mxu0 }
 0x6d7   :  { %v311_v16 = vpop.f32.mrf.mxu0 }
 0x6d9   :  { %v313_v18 = vpop.f32.mrf.mxu0 }
 0x6db   :  { %v7216_v29 = vpop.f32.mrf.mxu0 }
 0x6dd   :  { %v7218_v34 = vpop.f32.mrf.mxu0 }
 0x6df   :  { %v7220_v47 = vpop.f32.mrf.mxu0 }
 0x6e1   :  { %v7222_v46 = vpop.f32.mrf.mxu0 }
 0x6e3   :  { %v7224_v35 = vpop.f32.mrf.mxu0 }
 0x73b   :  { %v1412_v55 = vpop.permute.xlu1 %1411 }
 0x73d   :  { %v1410_v8 = vpop.permute.xlu0 %1409 }
 0x73e   :  { %5218 = vmatmul.mubr.msk.f32.vlgmr.msra.gmra.mxu1 %vm1017_vm3, %v1410_v8  ;;  %5812 = vmatprep.mubr.msk.f32.mxu0 %vm1017_vm3, %v1410_v8 }
 0x73f   :  { %5813 = vmatmul.mubr.msk.f32.vlgmr.msra.gmra.mxu0 %vm1017_vm3, %v1412_v55  ;;  %1495 = vmatprep.mubr.f32.mxu1 %v8323_v54  ;;  %v1416_v40 = vpop.permute.xlu1 %1415 }
 0x740   :  { %1849 = vmatpush1.msra.mxu0 %v7027_v44 }
 0x741   :  { %v1414_v57 = vpop.permute.xlu0 %1413  ;;  %1850 = vmatprep.subr.mxu0 %v7032_v45 }
 0x742   :  { %5219 = vmatmul.mubr.msk.f32.gmra.mxu1 %vm1017_vm3, %v1412_v55  ;;  %5815 = vmatprep.mubr.msk.f32.mxu0 %vm1017_vm3, %v1414_v57 }
 0x743   :  { %5816 = vmatmul.mubr.msk.f32.gmra.mxu0 %vm1017_vm3, %v1416_v40  ;;  %1501 = vmatprep.mubr.f32.mxu1 %v8323_v54 }
 0x744   :  { %1851 = vmatpush1.msra.mxu0 %v7038_v48  ;;  %1888 = vmatprep.mubr.f32.mxu0 %v8323_v54 }
 0x745   :  { %1852 = vmatprep.subr.mxu0 %v7045_v49 }
 0x746   :  { %5220 = vmatmul.mubr.msk.f32.gmra.mxu1 %vm1017_vm3, %v1414_v57  ;;  %1853 = vmatpush1.msra.mxu0 %v7051_v21 }
 0x747   :  { %1507 = vmatprep.mubr.f32.mxu1 %v8323_v54  ;;  %1854 = vmatprep.subr.mxu0 %v7057_v22 }
 0x748   :  { %1855 = vmatpush1.msra.mxu0 %v7063_v24 }
 0x749   :  { %5848 = vmatprep.subr.mxu0 %v7074_v28 }
 0x74a   :  { %5221 = vmatmul.mubr.msk.f32.gmra.mxu1 %vm1017_vm3, %v1416_v40 }
 0x74b   :  { %5842 = vmatprep.mubr.msk.f32.mxu1 %vm787_vm2, %v6876_v36  ;;  %v7226_v36 = vpop.f32.mrf.mxu0 }
 0x74d   :  { %v7228_v30 = vpop.f32.mrf.mxu0 }
 0x74f   :  { %v7230_v26 = vpop.f32.mrf.mxu0 }
 0x751   :  { %v7232_v42 = vpop.f32.mrf.mxu0 }
 0x752   :  { %8324 = vst [vmem:[#allocation19_spill] sm:$0xff] %v7232_v42 }
 0x753   :  { %v7234_v50 = vpop.f32.mrf.mxu0 }
 0x754   :  { %8325 = vst [vmem:[#allocation20_spill] sm:$0xff] %v7234_v50 }
 0x755   :  { %v7236_v37 = vpop.f32.mrf.mxu0 }
 0x756   :  { %8326 = vst [vmem:[#allocation21_spill] sm:$0xff] %v7236_v37 }
 0x757   :  { %v7238_v19 = vpop.f32.mrf.mxu0 }
 0x758   :  { %8327 = vst [vmem:[#allocation22_spill] sm:$0xff] %v7238_v19 }
 0x759   :  { %v7240_v25 = vpop.f32.mrf.mxu0 }
 0x75a   :  { %8328 = vst [vmem:[#allocation23_spill] sm:$0xff] %v7240_v25 }
 0x75b   :  { %v7242_v27 = vpop.f32.mrf.mxu0 }
 0x75c   :  { %8329 = vst [vmem:[#allocation24_spill] sm:$0xff] %v7242_v27 }
 0x75d   :  { %v7244_v56 = vpop.f32.mrf.mxu0 }
 0x75e   :  { %8330 = vst [vmem:[#allocation25_spill] sm:$0xff] %v7244_v56 }
 0x75f   :  { %v7246_v38 = vpop.f32.mrf.mxu0 }
 0x760   :  { %8331 = vst [vmem:[#allocation26_spill] sm:$0xff] %v7246_v38 }
 0x761   :  { %v7248_v11 = vpop.f32.mrf.mxu0 }
 0x762   :  { %8332 = vst [vmem:[#allocation27_spill] sm:$0xff] %v7248_v11 }
 0x763   :  { %v7250_v1 = vpop.f32.mrf.mxu0 }
 0x764   :  { %8333 = vst [vmem:[#allocation28_spill] sm:$0xff] %v7250_v1 }
 0x765   :  { %v7252_v55 = vpop.f32.mrf.mxu0 }
 0x766   :  { %8334 = vst [vmem:[#allocation29_spill] sm:$0xff] %v7252_v55 }
 0x767   :  { %v7254_v8 = vpop.f32.mrf.mxu0 }
 0x768   :  { %8335 = vst [vmem:[#allocation30_spill] sm:$0xff] %v7254_v8 }
 0x769   :  { %v7256_v57 = vpop.f32.mrf.mxu0 }
 0x76a   :  { %8336 = vst [vmem:[#allocation31_spill] sm:$0xff] %v7256_v57 }
 0x76b   :  { %v7258_v40 = vpop.f32.mrf.mxu0 }
 0x76c   :  { %8337 = vst [vmem:[#allocation32_spill] sm:$0xff] %v7258_v40 }
 0x76d   :  { %v7260_v9 = vpop.f32.mrf.mxu0 }
 0x76e   :  { %8338 = vst [vmem:[#allocation33_spill] sm:$0xff] %v7260_v9 }
 0x76f   :  { %v7262_v42 = vpop.f32.mrf.mxu0 }
 0x770   :  { %8339 = vst [vmem:[#allocation34_spill] sm:$0xff] %v7262_v42 }
 0x771   :  { %v7264_v37 = vpop.f32.mrf.mxu0 }
 0x772   :  { %8340 = vst [vmem:[#allocation35_spill] sm:$0xff] %v7264_v37 }
 0x773   :  { %v7266_v50 = vpop.f32.mrf.mxu0 }
 0x774   :  { %8341 = vst [vmem:[#allocation36_spill] sm:$0xff] %v7266_v50 }
 0x775   :  { %v7268_v19 = vpop.f32.mrf.mxu0 }
 0x776   :  { %8342 = vst [vmem:[#allocation37_spill] sm:$0xff] %v7268_v19 }
 0x777   :  { %v7270_v11 = vpop.f32.mrf.mxu0 }
 0x778   :  { %8343 = vst [vmem:[#allocation38_spill] sm:$0xff] %v7270_v11 }
 0x779   :  { %v7272_v1 = vpop.f32.mrf.mxu0 }
 0x77a   :  { %8344 = vst [vmem:[#allocation39_spill] sm:$0xff] %v7272_v1 }
 0x77b   :  { %v7274_v55 = vpop.f32.mrf.mxu0 }
 0x77c   :  { %8345 = vst [vmem:[#allocation40_spill] sm:$0xff] %v7274_v55 }
 0x77d   :  { %v7276_v8 = vpop.f32.mrf.mxu0 }
 0x77e   :  { %8346 = vst [vmem:[#allocation41_spill] sm:$0xff] %v7276_v8 }
 0x77f   :  { %v7278_v57 = vpop.f32.mrf.mxu0 }
 0x780   :  { %8347 = vst [vmem:[#allocation42_spill] sm:$0xff] %v7278_v57 }
 0x781   :  { %v7280_v40 = vpop.f32.mrf.mxu0 }
 0x782   :  { %8348 = vst [vmem:[#allocation43_spill] sm:$0xff] %v7280_v40 }
 0x783   :  { %v7282_v9 = vpop.f32.mrf.mxu0 }
 0x784   :  { %8349 = vst [vmem:[#allocation44_spill] sm:$0xff] %v7282_v9 }
 0x785   :  { %v7284_v42 = vpop.f32.mrf.mxu0 }
 0x786   :  { %8350 = vst [vmem:[#allocation45_spill] sm:$0xff] %v7284_v42 }
 0x787   :  { %v7286_v37 = vpop.f32.mrf.mxu0 }
 0x788   :  { %8351 = vst [vmem:[#allocation46_spill] sm:$0xff] %v7286_v37 }
 0x789   :  { %v7288_v50 = vpop.f32.mrf.mxu0 }
 0x78a   :  { %8352 = vst [vmem:[#allocation47_spill] sm:$0xff] %v7288_v50 }
 0x78b   :  { %v7290_v19 = vpop.f32.mrf.mxu0 }
 0x78c   :  { %8353 = vst [vmem:[#allocation48_spill] sm:$0xff] %v7290_v19 }
 0x7fe   :  { %v1491_v11 = vpop.f32.mrf.mxu1 }
 0x7ff   :  { %v5814_v1 = vpop.f32.mrf.mxu0 }
 0x800   :  { %v1493_v4 = vpop.f32.mrf.mxu1 }
 0x801   :  { %v1580_v55 = vpop.f32.mrf.mxu0 }
 0x802   :  { %v1497_v3 = vpop.f32.mrf.mxu1 }
 0x803   :  { %v5817_v8 = vpop.f32.mrf.mxu0 }
 0x804   :  { %v1610_v57 = vadd.f32 %v5817_v8, %v6930_v60  ;;  %v1499_v25 = vpop.f32.mrf.mxu1  ;;  %v1601_v8 = vadd.f32 %v1580_v55, %v6928_v59  ;;  %v7310_v59 = vld [vmem:[%s8295_s0] sm:$0xff] }
 0x805   :  { %v1590_v40 = vpop.f32.mrf.mxu0 }
 0x806   :  { %v1607_v9 = vadd.f32 %v1590_v40, %v6932_v61  ;;  %v1503_v56 = vpop.f32.mrf.mxu1  ;;  %5818 = vmatprep.subr.mxu1 %v1610_v57  ;;  %v1604_v61 = vadd.f32 %v5814_v1, %v6926_v58  ;;  %v1599_v58 = vadd.f32 %v1491_v11, %v7200_v7 }
 0x807   :  { %5819 = vmatpush3.msra.mxu1 %v1610_v57  ;;  %v1605_v60 = vadd.f32 %v1503_v56, %v7214_v14  ;;  %v1602_v14 = vadd.f32 %v1497_v3, %v7210_v12 }
 0x808   :  { %v1505_v42 = vpop.f32.mrf.mxu1  ;;  %5820 = vmatprep.subr.mxu1 %v1607_v9 }
 0x809   :  { %5821 = vmatpush3.msra.mxu1 %v1607_v9  ;;  %v1606_v27 = vadd.f32 %v1505_v42, %v307_v15  ;;  %v1603_v9 = vadd.f32 %v1499_v25, %v7212_v13  ;;  %v1600_v15 = vadd.f32 %v1493_v4, %v7206_v10 }
 0x80a   :  { %v1509_v37 = vpop.f32.mrf.mxu1 }
 0x80b   :  { %v1608_v38 = vadd.f32 %v1509_v37, %v311_v16 }
 0x80c   :  { %v1511_v50 = vpop.f32.mrf.mxu1 }
 0x80d   :  { %v1609_v19 = vadd.f32 %v1511_v50, %v313_v18 }
 0x80f   :  { %5822 = vmatprep.subr.mxu1 %v1609_v19 }
 0x810   :  { %5823 = vmatpush3.msra.mxu1 %v1609_v19 }
 0x811   :  { %5824 = vmatprep.subr.mxu1 %v1606_v27 }
 0x812   :  { %5825 = vmatpush3.msra.mxu1 %v1606_v27 }
 0x813   :  { %5826 = vmatprep.subr.mxu1 %v1608_v38 }
 0x814   :  { %5827 = vmatpush3.msra.mxu1 %v1608_v38 }
 0x815   :  { %5828 = vmatprep.subr.mxu1 %v1605_v60 }
 0x816   :  { %5829 = vmatpush3.msra.mxu1 %v1605_v60 }
 0x817   :  { %5830 = vmatprep.subr.mxu1 %v1604_v61 }
 0x818   :  { %5831 = vmatpush3.msra.mxu1 %v1604_v61 }
 0x819   :  { %5832 = vmatprep.subr.mxu1 %v1601_v8 }
 0x81a   :  { %5833 = vmatpush3.msra.mxu1 %v1601_v8 }
 0x81b   :  { %5834 = vmatprep.subr.mxu1 %v1603_v9 }
 0x81c   :  { %5835 = vmatpush3.msra.mxu1 %v1603_v9 }
 0x81d   :  { %5836 = vmatprep.subr.mxu1 %v1600_v15 }
 0x81e   :  { %5837 = vmatpush3.msra.mxu1 %v1600_v15 }
 0x81f   :  { %5838 = vmatprep.subr.mxu1 %v1602_v14 }
 0x820   :  { %5839 = vmatpush3.msra.mxu1 %v1602_v14 }
 0x821   :  { %5840 = vmatprep.subr.mxu1 %v1599_v58 }
 0x822   :  { %5841 = vmatpush3.msra.mxu1 %v1599_v58 }
 0x823   :  { %5843 = vmatmul.mubr.msk.f32.vlgmr.msra.gmra.mxu1 %vm787_vm2, %v6899_v51 }
 0x824   :  { %5845 = vmatprep.mubr.msk.f32.mxu1 %vm787_vm2, %v6904_v52 }
 0x827   :  { %5846 = vmatmul.mubr.msk.f32.gmra.mxu1 %vm787_vm2, %v6913_v53 }
 0x828   :  { %5886 = vmatprep.mubr.msk.f32.mxu1 %vm787_vm2, %v7310_v59 }
 0x8e3   :  { %v5844_v3 = vpop.f32.mrf.mxu1 }
 0x8e4   :  { %v1683_v4 = vadd.f32 %v5844_v3, %v6977_v20 }
 0x8e5   :  { %v1677_v7 = vpop.f32.mrf.mxu1 }
 0x8e6   :  { %6296 = vtanh.f32 %v1683_v4  ;;  %v1678_v51 = vadd.f32 %v6977_v20, %v1677_v7  ;;  %v5231_v50 = vmul.f32 -1.442695, %v1683_v4 }
 0x8e7   :  { %v5847_v10 = vpop.f32.mrf.mxu1 }
 0x8e8   :  { %v1693_v52 = vadd.f32 %v5847_v10, %v6977_v20  ;;  %6298 = vtanh.f32 %v1678_v51  ;;  %v5230_v37 = vmul.f32 -1.442695, %v1678_v51 }
 0x8e9   :  { %v1687_v53 = vpop.f32.mrf.mxu1 }
 0x8ea   :  { %v1688_v12 = vadd.f32 %v6977_v20, %v1687_v53  ;;  %6300 = vtanh.f32 %v1693_v52  ;;  %v5233_v19 = vmul.f32 -1.442695, %v1693_v52 }
 0x8ec   :  { %6302 = vtanh.f32 %v1688_v12  ;;  %v5232_v20 = vmul.f32 -1.442695, %v1688_v12 }
 0x8ed   :  { %6304 = vpow2.f32 %v5231_v50 }
 0x8ee   :  { %6306 = vpow2.f32 %v5230_v37 }
 0x8ef   :  { %6308 = vpow2.f32 %v5233_v19 }
 0x8f0   :  { %6310 = vpow2.f32 %v5232_v20 }
 0x8f3   :  { %v6297_v13 = vpop.eup %6296 }
 0x8f4   :  { %1734 = vrot.lane.b32.xlu1 %v6297_v13, %s6615_s14 }
 0x8f5   :  { %v6299_v16 = vpop.eup %6298 }
 0x8f6   :  { %1732 = vrot.lane.b32.xlu0 %v6299_v16, %s6615_s14 }
 0x8f7   :  { %v6301_v18 = vpop.eup %6300 }
 0x8f8   :  { %1738 = vrot.lane.b32.xlu1 %v6301_v18, %s6615_s14 }
 0x8f9   :  { %v6303_v42 = vpop.eup %6302 }
 0x8fa   :  { %1736 = vrot.lane.b32.xlu0 %v6303_v42, %s6615_s14  ;;  %v6305_v25 = vpop.eup %6304 }
 0x8fb   :  { %v6307_v27 = vpop.eup %6306  ;;  %v1709_v56 = vadd.f32 1.0, %v6305_v25 }
 0x8fc   :  { %v6309_v38 = vpop.eup %6308  ;;  %v1708_v11 = vadd.f32 1.0, %v6307_v27 }
 0x8fd   :  { %v6311_v1 = vpop.eup %6310  ;;  %6312 = vrcp.f32 %v1709_v56  ;;  %v1711_v55 = vadd.f32 1.0, %v6309_v38 }
 0x8fe   :  { %6314 = vrcp.f32 %v1708_v11  ;;  %v1710_v57 = vadd.f32 1.0, %v6311_v1 }
 0x8ff   :  { %6316 = vrcp.f32 %v1711_v55 }
 0x900   :  { %6318 = vrcp.f32 %v1710_v57 }
 0x90a   :  { %v6313_v40 = vpop.eup %6312 }
 0x90b   :  { %v6315_v8 = vpop.eup %6314  ;;  %v1725_v10 = vmul.f32 %v6313_v40, %v7161_v17 }
 0x90c   :  { %v6317_v14 = vpop.eup %6316  ;;  %v1724_v12 = vmul.f32 %v6315_v8, %v7165_v32 }
 0x90d   :  { %v6319_v4 = vpop.eup %6318  ;;  %v1727_v18 = vmul.f32 %v6317_v14, %v7169_v41 }
 0x90e   :  { %v1726_v37 = vmul.f32 %v6319_v4, %v7173_v23 }
 0x966   :  { %v1735_v60 = vpop.permute.xlu1 %1734 }
 0x967   :  { %v1745_v61 = vmul.f32 %v6313_v40, %v1735_v60 }
 0x968   :  { %v1733_v9 = vpop.permute.xlu0 %1732 }
 0x969   :  { %1754 = vrot.lane.b32.xlu1 %v1745_v61, %s6615_s14  ;;  %v1744_v15 = vmul.f32 %v6315_v8, %v1733_v9 }
 0x96a   :  { %v1739_v58 = vpop.permute.xlu1 %1738 }
 0x96b   :  { %v1747_v3 = vmul.f32 %v6317_v14, %v1739_v58  ;;  %1752 = vrot.lane.b32.xlu0 %v1744_v15, %s6615_s14 }
 0x96c   :  { %v1737_v7 = vpop.permute.xlu0 %1736 }
 0x96d   :  { %v1746_v51 = vmul.f32 %v6319_v4, %v1737_v7  ;;  %1758 = vrot.lane.b32.xlu1 %v1747_v3, %s6615_s14 }
 0x96f   :  { %1756 = vrot.lane.b32.xlu0 %v1746_v51, %s6615_s14 }
 0x9db   :  { %v1755_v52 = vpop.permute.xlu1 %1754 }
 0x9dc   :  { %v7327_v53 = vadd.f32 %v1755_v52, %v1725_v10 }
 0x9dd   :  { %v1753_v13 = vpop.permute.xlu0 %1752 }
 0x9de   :  { %6320 = vtanh.f32 %v7327_v53  ;;  %v7331_v16 = vadd.f32 %v1753_v13, %v1724_v12 }
 0x9df   :  { %v1759_v42 = vpop.permute.xlu1 %1758 }
 0x9e0   :  { %6322 = vtanh.f32 %v7331_v16  ;;  %v7335_v50 = vadd.f32 %v1759_v42, %v1727_v18 }
 0x9e1   :  { %v1757_v17 = vpop.permute.xlu0 %1756 }
 0x9e2   :  { %6324 = vtanh.f32 %v7335_v50  ;;  %v7339_v19 = vadd.f32 %v1757_v17, %v1726_v37 }
 0x9e4   :  { %6326 = vtanh.f32 %v7339_v19 }
 0x9eb   :  { %v6321_v32 = vpop.eup %6320 }
 0x9ec   :  { %1778 = vrot.lane.b32.xlu1 %v6321_v32, %s6615_s14 }
 0x9ed   :  { %v6323_v20 = vpop.eup %6322 }
 0x9ee   :  { %1776 = vrot.lane.b32.xlu0 %v6323_v20, %s6615_s14 }
 0x9ef   :  { %v6325_v41 = vpop.eup %6324 }
 0x9f0   :  { %1782 = vrot.lane.b32.xlu1 %v6325_v41, %s6615_s14 }
 0x9f1   :  { %v6327_v25 = vpop.eup %6326 }
 0x9f2   :  { %1780 = vrot.lane.b32.xlu0 %v6327_v25, %s6615_s14 }
 0xa5e   :  { %v1779_v23 = vpop.permute.xlu1 %1778 }
 0xa5f   :  { %v1789_v27 = vmul.f32 %v6313_v40, %v1779_v23 }
 0xa60   :  { %v1777_v56 = vpop.permute.xlu0 %1776 }
 0xa61   :  { %1810 = vrot.lane.b32.xlu1 %v1789_v27, %s6616_s17  ;;  %v1788_v38 = vmul.f32 %v6315_v8, %v1777_v56 }
 0xa62   :  { %v1783_v11 = vpop.permute.xlu1 %1782 }
 0xa63   :  { %v1791_v1 = vmul.f32 %v6317_v14, %v1783_v11  ;;  %1808 = vrot.lane.b32.xlu0 %v1788_v38, %s6616_s17 }
 0xa64   :  { %v1781_v55 = vpop.permute.xlu0 %1780 }
 0xa65   :  { %v1790_v57 = vmul.f32 %v6319_v4, %v1781_v55  ;;  %1814 = vrot.lane.b32.xlu1 %v1791_v1, %s6616_s17 }
 0xa67   :  { %1812 = vrot.lane.b32.xlu0 %v1790_v57, %s6616_s17 }
 0xad3   :  { %v1811_v40 = vpop.permute.xlu1 %1810 }
 0xad5   :  { %v1809_v60 = vpop.permute.xlu0 %1808 }
 0xad6   :  { %5234 = vmatmul.mubr.msk.f32.vlgmr.msra.gmra.mxu0 %vm1017_vm3, %v1809_v60 }
 0xad7   :  { %1894 = vmatprep.mubr.f32.mxu0 %v8323_v54  ;;  %5849 = vmatpush3.msra.mxu0 %v7074_v28 }
 0xad8   :  { %5850 = vmatprep.subr.mxu0 %v7081_v31 }
 0xad9   :  { %5851 = vmatpush3.msra.mxu0 %v7081_v31  ;;  %v1813_v61 = vpop.permute.xlu0 %1812  ;;  %v1815_v31 = vpop.permute.xlu1 %1814 }
 0xada   :  { %5235 = vmatmul.mubr.msk.f32.gmra.mxu0 %vm1017_vm3, %v1811_v40  ;;  %5852 = vmatprep.subr.mxu0 %v7089_v33 }
 0xadb   :  { %1900 = vmatprep.mubr.f32.mxu0 %v8323_v54  ;;  %5853 = vmatpush3.msra.mxu0 %v7089_v33 }
 0xadc   :  { %5854 = vmatprep.subr.mxu0 %v7097_v39 }
 0xadd   :  { %5855 = vmatpush3.msra.mxu0 %v7097_v39 }
 0xade   :  { %5236 = vmatmul.mubr.msk.f32.gmra.mxu0 %vm1017_vm3, %v1813_v61  ;;  %2247 = vmatprep.subr.mxu0 %v7022_v43 }
 0xadf   :  { %1906 = vmatprep.mubr.f32.mxu0 %v8323_v54 }
 0xae2   :  { %5237 = vmatmul.mubr.msk.f32.gmra.mxu0 %vm1017_vm3, %v1815_v31 }
 0xae3   :  { %5856 = vmatprep.mubr.msk.f32.mxu0 %vm1017_vm3, %v1809_v60 }
 0xae6   :  { %5857 = vmatmul.mubr.msk.f32.vlgmr.msra.gmra.mxu0 %vm1017_vm3, %v1811_v40 }
 0xae7   :  { %5859 = vmatprep.mubr.msk.f32.mxu0 %vm1017_vm3, %v1813_v61  ;;  %2248 = vmatpush1.msra.mxu0 %v7027_v44 }
 0xae8   :  { %2249 = vmatprep.subr.mxu0 %v7032_v45 }
 0xae9   :  { %2250 = vmatpush1.msra.mxu0 %v7038_v48 }
 0xaea   :  { %5860 = vmatmul.mubr.msk.f32.gmra.mxu0 %vm1017_vm3, %v1815_v31  ;;  %2251 = vmatprep.subr.mxu0 %v7045_v49 }
 0xaeb   :  { %2252 = vmatpush1.msra.mxu0 %v7051_v21  ;;  %2287 = vmatprep.mubr.f32.mxu0 %v8323_v54 }
 0xaec   :  { %2253 = vmatprep.subr.mxu0 %v7057_v22 }
 0xaed   :  { %2254 = vmatpush1.msra.mxu0 %v7063_v24 }
 0xaee   :  { %5892 = vmatprep.subr.mxu0 %v7074_v28 }
 0xb96   :  { %v1890_v43 = vpop.f32.mrf.mxu0 }
 0xb98   :  { %v1892_v44 = vpop.f32.mrf.mxu0 }
 0xb9a   :  { %v1896_v33 = vpop.f32.mrf.mxu0 }
 0xb9c   :  { %v1898_v45 = vpop.f32.mrf.mxu0 }
 0xb9e   :  { %v1902_v39 = vpop.f32.mrf.mxu0 }
 0xb9f   :  { %v2004_v4 = vadd.f32 %v1902_v39, %v7224_v35  ;;  %v2001_v35 = vadd.f32 %v1896_v33, %v7220_v47 }
 0xba0   :  { %v1904_v48 = vpop.f32.mrf.mxu0 }
 0xba1   :  { %v2005_v28 = vadd.f32 %v1904_v48, %v7226_v36  ;;  %v2002_v36 = vadd.f32 %v1898_v45, %v7222_v46  ;;  %v7416_v46 = vld [vmem:[%s8296_s4] ss:$0 sm:$0xff] }
 0xba2   :  { %v1908_v8 = vpop.f32.mrf.mxu0 }
 0xba3   :  { %v2007_v3 = vadd.f32 %v1908_v8, %v7228_v30  ;;  %v1999_v30 = vadd.f32 %v1892_v44, %v7218_v34  ;;  %v7400_v34 = vld [vmem:[%s8295_s0 + $0x10] sm:$0xff] }
 0xba4   :  { %v1910_v9 = vpop.f32.mrf.mxu0 }
 0xba5   :  { %v2008_v24 = vadd.f32 %v1910_v9, %v7230_v26 }
 0xba6   :  { %v5858_v15 = vpop.f32.mrf.mxu0 }
 0xba8   :  { %v1979_v49 = vpop.f32.mrf.mxu0 }
 0xbaa   :  { %v5861_v14 = vpop.f32.mrf.mxu0 }
 0xbab   :  { %v2009_v21 = vadd.f32 %v5861_v14, %v6938_v0  ;;  %v2003_v0 = vadd.f32 %v5858_v15, %v6934_v62  ;;  %v1998_v62 = vadd.f32 %v1890_v43, %v7216_v29  ;;  %v7407_v29 = vld [vmem:[%s8295_s0 + $0x18] sm:$0xff] }
 0xbac   :  { %v1989_v58 = vpop.f32.mrf.mxu0 }
 0xbad   :  { %v2006_v22 = vadd.f32 %v1989_v58, %v6940_v2  ;;  %5862 = vmatprep.subr.mxu1 %v2009_v21  ;;  %v2000_v2 = vadd.f32 %v1979_v49, %v6936_v63  ;;  %v7393_v63 = vld [vmem:[%s8295_s0 + $0x8] sm:$0xff] }
 0xbae   :  { %5863 = vmatpush3.msra.mxu1 %v2009_v21 }
 0xbaf   :  { %5864 = vmatprep.subr.mxu1 %v2006_v22 }
 0xbb0   :  { %5865 = vmatpush3.msra.mxu1 %v2006_v22 }
 0xbb1   :  { %5866 = vmatprep.subr.mxu1 %v2008_v24 }
 0xbb2   :  { %5867 = vmatpush3.msra.mxu1 %v2008_v24 }
 0xbb3   :  { %5868 = vmatprep.subr.mxu1 %v2005_v28 }
 0xbb4   :  { %5869 = vmatpush3.msra.mxu1 %v2005_v28 }
 0xbb5   :  { %5870 = vmatprep.subr.mxu1 %v2007_v3 }
 0xbb6   :  { %5871 = vmatpush3.msra.mxu1 %v2007_v3 }
 0xbb7   :  { %5872 = vmatprep.subr.mxu1 %v2004_v4 }
 0xbb8   :  { %5873 = vmatpush3.msra.mxu1 %v2004_v4 }
 0xbb9   :  { %5874 = vmatprep.subr.mxu1 %v2003_v0 }
 0xbba   :  { %5875 = vmatpush3.msra.mxu1 %v2003_v0 }
 0xbbb   :  { %5876 = vmatprep.subr.mxu1 %v2000_v2 }
 0xbbc   :  { %5877 = vmatpush3.msra.mxu1 %v2000_v2 }
 0xbbd   :  { %5878 = vmatprep.subr.mxu1 %v2002_v36 }
 0xbbe   :  { %5879 = vmatpush3.msra.mxu1 %v2002_v36 }
 0xbbf   :  { %5880 = vmatprep.subr.mxu1 %v1999_v30 }
 0xbc0   :  { %5881 = vmatpush3.msra.mxu1 %v1999_v30 }
 0xbc1   :  { %5882 = vmatprep.subr.mxu1 %v2001_v35 }
 0xbc2   :  { %5883 = vmatpush3.msra.mxu1 %v2001_v35 }
 0xbc3   :  { %5884 = vmatprep.subr.mxu1 %v1998_v62 }
 0xbc4   :  { %5885 = vmatpush3.msra.mxu1 %v1998_v62 }
 0xbc5   :  { %5887 = vmatmul.mubr.msk.f32.vlgmr.msra.gmra.mxu1 %vm787_vm2, %v7393_v63 }
 0xbc6   :  { %5889 = vmatprep.mubr.msk.f32.mxu1 %vm787_vm2, %v7400_v34 }
 0xbc9   :  { %5890 = vmatmul.mubr.msk.f32.gmra.mxu1 %vm787_vm2, %v7407_v29 }
 0xbca   :  { %5930 = vmatprep.mubr.msk.f32.mxu1 %vm787_vm2, %v7310_v59 }
 0xc85   :  { %v5888_v47 = vpop.f32.mrf.mxu1 }
 0xc86   :  { %v2082_v26 = vadd.f32 %v7416_v46, %v5888_v47 }
 0xc87   :  { %v2076_v7 = vpop.f32.mrf.mxu1 }
 0xc88   :  { %6328 = vtanh.f32 %v2082_v26  ;;  %v2077_v51 = vadd.f32 %v7416_v46, %v2076_v7  ;;  %v5247_v32 = vmul.f32 -1.442695, %v2082_v26 }
 0xc89   :  { %v5891_v10 = vpop.f32.mrf.mxu1 }
 0xc8a   :  { %v2092_v52 = vadd.f32 %v7416_v46, %v5891_v10  ;;  %6330 = vtanh.f32 %v2077_v51  ;;  %v5246_v20 = vmul.f32 -1.442695, %v2077_v51 }
 0xc8b   :  { %v2086_v12 = vpop.f32.mrf.mxu1 }
 0xc8c   :  { %v2087_v13 = vadd.f32 %v7416_v46, %v2086_v12  ;;  %6332 = vtanh.f32 %v2092_v52  ;;  %v5249_v41 = vmul.f32 -1.442695, %v2092_v52  ;;  %v7459_v52 = vld [vmem:[%s8297_s3 + $0x58] sm:$0xff]  ;;  %v7465_v12 = vld [vmem:[%s8297_s3 + $0x40] sm:$0xff] }
 0xc8e   :  { %6334 = vtanh.f32 %v2087_v13  ;;  %v5248_v25 = vmul.f32 -1.442695, %v2087_v13 }
 0xc8f   :  { %6336 = vpow2.f32 %v5247_v32 }
 0xc90   :  { %6338 = vpow2.f32 %v5246_v20  ;;  %v7500_v20 = vld [vmem:[%s8297_s3 + $0x48] sm:$0xff] }
 0xc91   :  { %6340 = vpow2.f32 %v5249_v41  ;;  %v7506_v41 = vld [vmem:[%s8297_s3 + $0x38] sm:$0xff] }
 0xc92   :  { %6342 = vpow2.f32 %v5248_v25  ;;  %v7512_v25 = vld [vmem:[%s8297_s3 + $0x30] sm:$0xff] }
 0xc95   :  { %v6329_v18 = vpop.eup %6328 }
 0xc96   :  { %2133 = vrot.lane.b32.xlu1 %v6329_v18, %s6615_s14  ;;  %v7473_v18 = vld [vmem:[%s8297_s3 + $0x28] sm:$0xff] }
 0xc97   :  { %v6331_v42 = vpop.eup %6330 }
 0xc98   :  { %2131 = vrot.lane.b32.xlu0 %v6331_v42, %s6615_s14  ;;  %v7481_v42 = vld [vmem:[%s8297_s3 + $0x10] sm:$0xff] }
 0xc99   :  { %v6333_v37 = vpop.eup %6332 }
 0xc9a   :  { %2137 = vrot.lane.b32.xlu1 %v6333_v37, %s6615_s14 }
 0xc9b   :  { %v6335_v17 = vpop.eup %6334 }
 0xc9c   :  { %2135 = vrot.lane.b32.xlu0 %v6335_v17, %s6615_s14  ;;  %v6337_v23 = vpop.eup %6336  ;;  %v7489_v17 = vld [vmem:[%s8297_s3 + $0x50] sm:$0xff] }
 0xc9d   :  { %v6339_v27 = vpop.eup %6338  ;;  %v2108_v56 = vadd.f32 1.0, %v6337_v23  ;;  %v7519_v23 = vld [vmem:[%s8297_s3 + $0x20] sm:$0xff] }
 0xc9e   :  { %v6341_v38 = vpop.eup %6340  ;;  %v2107_v11 = vadd.f32 1.0, %v6339_v27  ;;  %v7525_v27 = vld [vmem:[%s8297_s3 + $0x18] sm:$0xff] }
 0xc9f   :  { %v6343_v1 = vpop.eup %6342  ;;  %6344 = vrcp.f32 %v2108_v56  ;;  %v2110_v55 = vadd.f32 1.0, %v6341_v38  ;;  %v7532_v56 = vld [vmem:[%s8297_s3 + $0x8] sm:$0xff]  ;;  %v7538_v38 = vld [vmem:[%s8297_s3] sm:$0xff] }
 0xca0   :  { %6346 = vrcp.f32 %v2107_v11  ;;  %v2109_v57 = vadd.f32 1.0, %v6343_v1 }
 0xca1   :  { %6348 = vrcp.f32 %v2110_v55 }
 0xca2   :  { %6350 = vrcp.f32 %v2109_v57 }
 0xcac   :  { %v6345_v60 = vpop.eup %6344 }
 0xcad   :  { %v6347_v31 = vpop.eup %6346  ;;  %v2124_v15 = vmul.f32 %v6345_v60, %v7327_v53 }
 0xcae   :  { %v6349_v33 = vpop.eup %6348  ;;  %v2123_v21 = vmul.f32 %v6347_v31, %v7331_v16 }
 0xcaf   :  { %v6351_v48 = vpop.eup %6350  ;;  %v2126_v24 = vmul.f32 %v6349_v33, %v7335_v50 }
 0xcb0   :  { %v2125_v4 = vmul.f32 %v6351_v48, %v7339_v19 }
 0xd08   :  { %v2134_v40 = vpop.permute.xlu1 %2133 }
 0xd09   :  { %v2144_v61 = vmul.f32 %v6345_v60, %v2134_v40 }
 0xd0a   :  { %v2132_v43 = vpop.permute.xlu0 %2131 }
 0xd0b   :  { %2153 = vrot.lane.b32.xlu1 %v2144_v61, %s6615_s14  ;;  %v2143_v44 = vmul.f32 %v6347_v31, %v2132_v43 }
 0xd0c   :  { %v2138_v45 = vpop.permute.xlu1 %2137 }
 0xd0d   :  { %v2146_v39 = vmul.f32 %v6349_v33, %v2138_v45  ;;  %2151 = vrot.lane.b32.xlu0 %v2143_v44, %s6615_s14 }
 0xd0e   :  { %v2136_v8 = vpop.permute.xlu0 %2135 }
 0xd0f   :  { %v2145_v9 = vmul.f32 %v6351_v48, %v2136_v8  ;;  %2157 = vrot.lane.b32.xlu1 %v2146_v39, %s6615_s14  ;;  %v8354_v8 = vld [vmem:[#allocation26_spill] sm:$0xff] }
 0xd11   :  { %2155 = vrot.lane.b32.xlu0 %v2145_v9, %s6615_s14 }
 0xd7d   :  { %v2154_v49 = vpop.permute.xlu1 %2153 }
 0xd7e   :  { %v7431_v14 = vadd.f32 %v2154_v49, %v2124_v15  ;;  %v8355_v15 = vld [vmem:[#allocation24_spill] sm:$0xff] }
 0xd7f   :  { %v2152_v58 = vpop.permute.xlu0 %2151 }
 0xd80   :  { %6352 = vtanh.f32 %v7431_v14  ;;  %v7435_v22 = vadd.f32 %v2152_v58, %v2123_v21  ;;  %v8356_v21 = vld [vmem:[#allocation25_spill] sm:$0xff] }
 0xd81   :  { %v2158_v28 = vpop.permute.xlu1 %2157 }
 0xd82   :  { %6354 = vtanh.f32 %v7435_v22  ;;  %v7439_v3 = vadd.f32 %v2158_v28, %v2126_v24  ;;  %v8357_v24 = vld [vmem:[#allocation23_spill] sm:$0xff] }
 0xd83   :  { %v2156_v53 = vpop.permute.xlu0 %2155 }
 0xd84   :  { %6356 = vtanh.f32 %v7439_v3  ;;  %v7443_v0 = vadd.f32 %v2156_v53, %v2125_v4  ;;  %v8359_v4 = vld [vmem:[#allocation6_spill] sm:$0xff] }
 0xd86   :  { %6358 = vtanh.f32 %v7443_v0 }
 0xd8d   :  { %v6353_v16 = vpop.eup %6352 }
 0xd8e   :  { %2177 = vrot.lane.b32.xlu1 %v6353_v16, %s6615_s14  ;;  %v8360_v16 = vld [vmem:[#allocation22_spill] sm:$0xff] }
 0xd8f   :  { %v6355_v2 = vpop.eup %6354 }
 0xd90   :  { %2175 = vrot.lane.b32.xlu0 %v6355_v2, %s6615_s14 }
 0xd91   :  { %v6357_v50 = vpop.eup %6356 }
 0xd92   :  { %2181 = vrot.lane.b32.xlu1 %v6357_v50, %s6615_s14  ;;  %v8361_v50 = vld [vmem:[#allocation20_spill] sm:$0xff] }
 0xd93   :  { %v6359_v36 = vpop.eup %6358 }
 0xd94   :  { %2179 = vrot.lane.b32.xlu0 %v6359_v36, %s6615_s14 }
 0xe00   :  { %v2178_v19 = vpop.permute.xlu1 %2177 }
 0xe01   :  { %v2188_v30 = vmul.f32 %v6345_v60, %v2178_v19  ;;  %v8362_v19 = vld [vmem:[#allocation21_spill] sm:$0xff] }
 0xe02   :  { %v2176_v35 = vpop.permute.xlu0 %2175 }
 0xe03   :  { %2209 = vrot.lane.b32.xlu1 %v2188_v30, %s6616_s17  ;;  %v2187_v62 = vmul.f32 %v6347_v31, %v2176_v35  ;;  %v8363_v35 = vld [vmem:[#allocation19_spill] sm:$0xff] }
 0xe04   :  { %v2182_v47 = vpop.permute.xlu1 %2181 }
 0xe05   :  { %v2190_v26 = vmul.f32 %v6349_v33, %v2182_v47  ;;  %2207 = vrot.lane.b32.xlu0 %v2187_v62, %s6616_s17 }
 0xe06   :  { %v2180_v7 = vpop.permute.xlu0 %2179 }
 0xe07   :  { %v2189_v51 = vmul.f32 %v6351_v48, %v2180_v7  ;;  %2213 = vrot.lane.b32.xlu1 %v2190_v26, %s6616_s17 }
 0xe09   :  { %2211 = vrot.lane.b32.xlu0 %v2189_v51, %s6616_s17 }
 0xe75   :  { %v2210_v13 = vpop.permute.xlu1 %2209 }
 0xe77   :  { %v2208_v10 = vpop.permute.xlu0 %2207 }
 0xe78   :  { %5250 = vmatmul.mubr.msk.f32.vlgmr.msra.gmra.mxu0 %vm1017_vm3, %v2208_v10 }
 0xe79   :  { %2293 = vmatprep.mubr.f32.mxu0 %v8323_v54  ;;  %5893 = vmatpush3.msra.mxu0 %v7459_v52  ;;  %v2214_v32 = vpop.permute.xlu1 %2213 }
 0xe7a   :  { %5894 = vmatprep.subr.mxu0 %v7465_v12 }
 0xe7b   :  { %5895 = vmatpush3.msra.mxu0 %v7465_v12  ;;  %v2212_v37 = vpop.permute.xlu0 %2211 }
 0xe7c   :  { %5251 = vmatmul.mubr.msk.f32.gmra.mxu0 %vm1017_vm3, %v2210_v13  ;;  %5896 = vmatprep.subr.mxu0 %v7473_v18 }
 0xe7d   :  { %2299 = vmatprep.mubr.f32.mxu0 %v8323_v54  ;;  %5897 = vmatpush3.msra.mxu0 %v7473_v18 }
 0xe7e   :  { %5898 = vmatprep.subr.mxu0 %v7481_v42 }
 0xe7f   :  { %5899 = vmatpush3.msra.mxu0 %v7481_v42 }
 0xe80   :  { %5252 = vmatmul.mubr.msk.f32.gmra.mxu0 %vm1017_vm3, %v2212_v37  ;;  %2646 = vmatprep.subr.mxu0 %v7489_v17 }
 0xe81   :  { %2305 = vmatprep.mubr.f32.mxu0 %v8323_v54 }
 0xe84   :  { %5253 = vmatmul.mubr.msk.f32.gmra.mxu0 %vm1017_vm3, %v2214_v32 }
 0xe85   :  { %5900 = vmatprep.mubr.msk.f32.mxu0 %vm1017_vm3, %v2208_v10 }
 0xe88   :  { %5901 = vmatmul.mubr.msk.f32.vlgmr.msra.gmra.mxu0 %vm1017_vm3, %v2210_v13 }
 0xe89   :  { %5903 = vmatprep.mubr.msk.f32.mxu0 %vm1017_vm3, %v2212_v37  ;;  %2647 = vmatpush1.msra.mxu0 %v7500_v20 }
 0xe8a   :  { %2648 = vmatprep.subr.mxu0 %v7506_v41 }
 0xe8b   :  { %2649 = vmatpush1.msra.mxu0 %v7512_v25 }
 0xe8c   :  { %5904 = vmatmul.mubr.msk.f32.gmra.mxu0 %vm1017_vm3, %v2214_v32  ;;  %2650 = vmatprep.subr.mxu0 %v7519_v23 }
 0xe8d   :  { %2651 = vmatpush1.msra.mxu0 %v7525_v27  ;;  %2686 = vmatprep.mubr.f32.mxu0 %v8323_v54 }
 0xe8e   :  { %2652 = vmatprep.subr.mxu0 %v7532_v56 }
 0xe8f   :  { %2653 = vmatpush1.msra.mxu0 %v7538_v38 }
 0xe90   :  { %5936 = vmatprep.subr.mxu0 %v7459_v52 }
 0xf38   :  { %v2289_v11 = vpop.f32.mrf.mxu0 }
 0xf39   :  { %v2397_v62 = vadd.f32 %v2289_v11, %v8363_v35 }
 0xf3a   :  { %v2291_v1 = vpop.f32.mrf.mxu0 }
 0xf3b   :  { %v2398_v36 = vadd.f32 %v2291_v1, %v8361_v50 }
 0xf3c   :  { %v2295_v55 = vpop.f32.mrf.mxu0 }
 0xf3d   :  { %v2400_v30 = vadd.f32 %v2295_v55, %v8362_v19 }
 0xf3e   :  { %v2297_v57 = vpop.f32.mrf.mxu0 }
 0xf3f   :  { %v2401_v2 = vadd.f32 %v2297_v57, %v8360_v16 }
 0xf40   :  { %v2301_v60 = vpop.f32.mrf.mxu0 }
 0xf41   :  { %v2403_v28 = vadd.f32 %v2301_v60, %v8357_v24 }
 0xf42   :  { %v2303_v40 = vpop.f32.mrf.mxu0 }
 0xf43   :  { %v2404_v49 = vadd.f32 %v2303_v40, %v8355_v15 }
 0xf44   :  { %v2307_v61 = vpop.f32.mrf.mxu0 }
 0xf45   :  { %v2406_v58 = vadd.f32 %v2307_v61, %v8356_v21 }
 0xf46   :  { %v2309_v31 = vpop.f32.mrf.mxu0 }
 0xf47   :  { %v2407_v9 = vadd.f32 %v2309_v31, %v8354_v8 }
 0xf48   :  { %v5902_v43 = vpop.f32.mrf.mxu0 }
 0xf4a   :  { %v2378_v44 = vpop.f32.mrf.mxu0 }
 0xf4b   :  { %v2399_v53 = vadd.f32 %v2378_v44, %v8359_v4 }
 0xf4c   :  { %v5905_v33 = vpop.f32.mrf.mxu0 }
 0xf4d   :  { %v2408_v45 = vadd.f32 %v5905_v33, %v6946_v5  ;;  %v8358_v5 = vld [vmem:[#allocation5_spill] sm:$0xff] }
 0xf4e   :  { %v2388_v39 = vpop.f32.mrf.mxu0 }
 0xf4f   :  { %v2405_v48 = vadd.f32 %v2388_v39, %v6948_v6  ;;  %5906 = vmatprep.subr.mxu1 %v2408_v45  ;;  %v2402_v6 = vadd.f32 %v5902_v43, %v8358_v5 }
 0xf50   :  { %5907 = vmatpush3.msra.mxu1 %v2408_v45 }
 0xf51   :  { %5908 = vmatprep.subr.mxu1 %v2405_v48 }
 0xf52   :  { %5909 = vmatpush3.msra.mxu1 %v2405_v48 }
 0xf53   :  { %5910 = vmatprep.subr.mxu1 %v2407_v9 }
 0xf54   :  { %5911 = vmatpush3.msra.mxu1 %v2407_v9 }
 0xf55   :  { %5912 = vmatprep.subr.mxu1 %v2404_v49 }
 0xf56   :  { %5913 = vmatpush3.msra.mxu1 %v2404_v49 }
 0xf57   :  { %5914 = vmatprep.subr.mxu1 %v2406_v58 }
 0xf58   :  { %5915 = vmatpush3.msra.mxu1 %v2406_v58 }
 0xf59   :  { %5916 = vmatprep.subr.mxu1 %v2403_v28 }
 0xf5a   :  { %5917 = vmatpush3.msra.mxu1 %v2403_v28 }
 0xf5b   :  { %5918 = vmatprep.subr.mxu1 %v2402_v6 }
 0xf5c   :  { %5919 = vmatpush3.msra.mxu1 %v2402_v6 }
 0xf5d   :  { %5920 = vmatprep.subr.mxu1 %v2399_v53 }
 0xf5e   :  { %5921 = vmatpush3.msra.mxu1 %v2399_v53 }
 0xf5f   :  { %5922 = vmatprep.subr.mxu1 %v2401_v2 }
 0xf60   :  { %5923 = vmatpush3.msra.mxu1 %v2401_v2 }
 0xf61   :  { %5924 = vmatprep.subr.mxu1 %v2398_v36 }
 0xf62   :  { %5925 = vmatpush3.msra.mxu1 %v2398_v36 }
 0xf63   :  { %5926 = vmatprep.subr.mxu1 %v2400_v30 }
 0xf64   :  { %5927 = vmatpush3.msra.mxu1 %v2400_v30 }
 0xf65   :  { %5928 = vmatprep.subr.mxu1 %v2397_v62 }
 0xf66   :  { %5929 = vmatpush3.msra.mxu1 %v2397_v62 }
 0xf67   :  { %5931 = vmatmul.mubr.msk.f32.vlgmr.msra.gmra.mxu1 %vm787_vm2, %v7393_v63 }
 0xf68   :  { %5933 = vmatprep.mubr.msk.f32.mxu1 %vm787_vm2, %v7400_v34 }
 0xf6b   :  { %5934 = vmatmul.mubr.msk.f32.gmra.mxu1 %vm787_vm2, %v7407_v29 }
 0xf6c   :  { %5974 = vmatprep.mubr.msk.f32.mxu1 %vm787_vm2, %v7310_v59 }
0x1027   :  { %v5932_v47 = vpop.f32.mrf.mxu1 }
0x1028   :  { %v2481_v26 = vadd.f32 %v7416_v46, %v5932_v47 }
0x1029   :  { %v2475_v7 = vpop.f32.mrf.mxu1 }
0x102a   :  { %6360 = vtanh.f32 %v2481_v26  ;;  %v2476_v51 = vadd.f32 %v7416_v46, %v2475_v7  ;;  %v5263_v57 = vmul.f32 -1.442695, %v2481_v26 }
0x102b   :  { %v5935_v10 = vpop.f32.mrf.mxu1 }
0x102c   :  { %v2491_v13 = vadd.f32 %v7416_v46, %v5935_v10  ;;  %6362 = vtanh.f32 %v2476_v51  ;;  %v5262_v60 = vmul.f32 -1.442695, %v2476_v51 }
0x102d   :  { %v2485_v37 = vpop.f32.mrf.mxu1 }
0x102e   :  { %v2486_v32 = vadd.f32 %v7416_v46, %v2485_v37  ;;  %6364 = vtanh.f32 %v2491_v13  ;;  %v5265_v40 = vmul.f32 -1.442695, %v2491_v13 }
0x1030   :  { %6366 = vtanh.f32 %v2486_v32  ;;  %v5264_v61 = vmul.f32 -1.442695, %v2486_v32 }
0x1031   :  { %6368 = vpow2.f32 %v5263_v57 }
0x1032   :  { %6370 = vpow2.f32 %v5262_v60 }
0x1033   :  { %6372 = vpow2.f32 %v5265_v40 }
0x1034   :  { %6374 = vpow2.f32 %v5264_v61 }
0x1037   :  { %v6361_v11 = vpop.eup %6360 }
0x1038   :  { %2532 = vrot.lane.b32.xlu1 %v6361_v11, %s6615_s14 }
0x1039   :  { %v6363_v59 = vpop.eup %6362 }
0x103a   :  { %2530 = vrot.lane.b32.xlu0 %v6363_v59, %s6615_s14 }
0x103b   :  { %v6365_v1 = vpop.eup %6364 }
0x103c   :  { %2536 = vrot.lane.b32.xlu1 %v6365_v1, %s6615_s14 }
0x103d   :  { %v6367_v55 = vpop.eup %6366 }
0x103e   :  { %2534 = vrot.lane.b32.xlu0 %v6367_v55, %s6615_s14  ;;  %v6369_v31 = vpop.eup %6368 }
0x103f   :  { %v6371_v43 = vpop.eup %6370  ;;  %v2507_v44 = vadd.f32 1.0, %v6369_v31 }
0x1040   :  { %v6373_v33 = vpop.eup %6372  ;;  %v2506_v45 = vadd.f32 1.0, %v6371_v43 }
0x1041   :  { %v6375_v39 = vpop.eup %6374  ;;  %6376 = vrcp.f32 %v2507_v44  ;;  %v2509_v48 = vadd.f32 1.0, %v6373_v33 }
0x1042   :  { %6378 = vrcp.f32 %v2506_v45  ;;  %v2508_v8 = vadd.f32 1.0, %v6375_v39 }
0x1043   :  { %6380 = vrcp.f32 %v2509_v48 }
0x1044   :  { %6382 = vrcp.f32 %v2508_v8 }
0x104e   :  { %v6377_v9 = vpop.eup %6376 }
0x104f   :  { %v6379_v21 = vpop.eup %6378  ;;  %v2523_v2 = vmul.f32 %v6377_v9, %v7431_v14 }
0x1050   :  { %v6381_v28 = vpop.eup %6380  ;;  %v2522_v19 = vmul.f32 %v6379_v21, %v7435_v22 }
0x1051   :  { %v6383_v4 = vpop.eup %6382  ;;  %v2525_v62 = vmul.f32 %v6381_v28, %v7439_v3 }
0x1052   :  { %v2524_v7 = vmul.f32 %v6383_v4, %v7443_v0 }
0x10aa   :  { %v2533_v15 = vpop.permute.xlu1 %2532 }
0x10ab   :  { %v2543_v49 = vmul.f32 %v6377_v9, %v2533_v15 }
0x10ac   :  { %v2531_v58 = vpop.permute.xlu0 %2530 }
0x10ad   :  { %2552 = vrot.lane.b32.xlu1 %v2543_v49, %s6615_s14  ;;  %v2542_v24 = vmul.f32 %v6379_v21, %v2531_v58  ;;  %v8364_v58 = vld [vmem:[#allocation9_spill] sm:$0xff] }
0x10ae   :  { %v2537_v5 = vpop.permute.xlu1 %2536 }
0x10af   :  { %v2545_v6 = vmul.f32 %v6381_v28, %v2537_v5  ;;  %2550 = vrot.lane.b32.xlu0 %v2542_v24, %s6615_s14  ;;  %v8365_v5 = vld [vmem:[#allocation10_spill] sm:$0xff] }
0x10b0   :  { %v2535_v53 = vpop.permute.xlu0 %2534 }
0x10b1   :  { %v2544_v16 = vmul.f32 %v6383_v4, %v2535_v53  ;;  %2556 = vrot.lane.b32.xlu1 %v2545_v6, %s6615_s14 }
0x10b3   :  { %2554 = vrot.lane.b32.xlu0 %v2544_v16, %s6615_s14  ;;  %v8367_v16 = vld [vmem:[#allocation32_spill] sm:$0xff] }
0x111f   :  { %v2553_v50 = vpop.permute.xlu1 %2552 }
0x1120   :  { %v7575_v36 = vadd.f32 %v2553_v50, %v2523_v2  ;;  %v8368_v50 = vld [vmem:[#allocation33_spill] sm:$0xff] }
0x1121   :  { %v2551_v30 = vpop.permute.xlu0 %2550 }
0x1122   :  { %6384 = vtanh.f32 %v7575_v36  ;;  %v7579_v35 = vadd.f32 %v2551_v30, %v2522_v19  ;;  %v8369_v30 = vld [vmem:[#allocation31_spill] sm:$0xff] }
0x1123   :  { %v2557_v47 = vpop.permute.xlu1 %2556 }
0x1124   :  { %6386 = vtanh.f32 %v7579_v35  ;;  %v7583_v26 = vadd.f32 %v2557_v47, %v2525_v62  ;;  %v8370_v47 = vld [vmem:[#allocation7_spill] sm:$0xff] }
0x1125   :  { %v2555_v14 = vpop.permute.xlu0 %2554 }
0x1126   :  { %6388 = vtanh.f32 %v7583_v26  ;;  %v7587_v51 = vadd.f32 %v2555_v14, %v2524_v7  ;;  %v8371_v14 = vld [vmem:[#allocation8_spill] sm:$0xff] }
0x1128   :  { %6390 = vtanh.f32 %v7587_v51 }
0x112f   :  { %v6385_v22 = vpop.eup %6384 }
0x1130   :  { %2576 = vrot.lane.b32.xlu1 %v6385_v22, %s6615_s14 }
0x1131   :  { %v6387_v10 = vpop.eup %6386 }
0x1132   :  { %2574 = vrot.lane.b32.xlu0 %v6387_v10, %s6615_s14  ;;  %v8372_v10 = vld [vmem:[#allocation30_spill] sm:$0xff] }
0x1133   :  { %v6389_v3 = vpop.eup %6388 }
0x1134   :  { %2580 = vrot.lane.b32.xlu1 %v6389_v3, %s6615_s14 }
0x1135   :  { %v6391_v13 = vpop.eup %6390 }
0x1136   :  { %2578 = vrot.lane.b32.xlu0 %v6391_v13, %s6615_s14  ;;  %v8373_v13 = vld [vmem:[#allocation28_spill] sm:$0xff] }
0x11a2   :  { %v2577_v0 = vpop.permute.xlu1 %2576 }
0x11a3   :  { %v2587_v37 = vmul.f32 %v6377_v9, %v2577_v0 }
0x11a4   :  { %v2575_v32 = vpop.permute.xlu0 %2574 }
0x11a5   :  { %2608 = vrot.lane.b32.xlu1 %v2587_v37, %s6616_s17  ;;  %v2586_v11 = vmul.f32 %v6379_v21, %v2575_v32  ;;  %v8374_v37 = vld [vmem:[#allocation29_spill] sm:$0xff] }
0x11a6   :  { %v2581_v59 = vpop.permute.xlu1 %2580 }
0x11a7   :  { %v2589_v1 = vmul.f32 %v6381_v28, %v2581_v59  ;;  %2606 = vrot.lane.b32.xlu0 %v2586_v11, %s6616_s17  ;;  %v8375_v11 = vld [vmem:[#allocation27_spill] sm:$0xff] }
0x11a8   :  { %v2579_v55 = vpop.permute.xlu0 %2578 }
0x11a9   :  { %v2588_v57 = vmul.f32 %v6383_v4, %v2579_v55  ;;  %2612 = vrot.lane.b32.xlu1 %v2589_v1, %s6616_s17  ;;  %v8366_v4 = vld [vmem:[#allocation34_spill] sm:$0xff]  ;;  %v7647_v1 = vld [vmem:[%s8295_s0] sm:$0xff] }
0x11ab   :  { %2610 = vrot.lane.b32.xlu0 %v2588_v57, %s6616_s17 }
0x1217   :  { %v2609_v40 = vpop.permute.xlu1 %2608 }
0x1219   :  { %v2607_v60 = vpop.permute.xlu0 %2606 }
0x121a   :  { %5266 = vmatmul.mubr.msk.f32.vlgmr.msra.gmra.mxu0 %vm1017_vm3, %v2607_v60 }
0x121b   :  { %2692 = vmatprep.mubr.f32.mxu0 %v8323_v54  ;;  %5937 = vmatpush3.msra.mxu0 %v7459_v52  ;;  %v2613_v31 = vpop.permute.xlu1 %2612 }
0x121c   :  { %5938 = vmatprep.subr.mxu0 %v7465_v12 }
0x121d   :  { %5939 = vmatpush3.msra.mxu0 %v7465_v12  ;;  %v2611_v61 = vpop.permute.xlu0 %2610 }
0x121e   :  { %5267 = vmatmul.mubr.msk.f32.gmra.mxu0 %vm1017_vm3, %v2609_v40  ;;  %5940 = vmatprep.subr.mxu0 %v7473_v18 }
0x121f   :  { %2698 = vmatprep.mubr.f32.mxu0 %v8323_v54  ;;  %5941 = vmatpush3.msra.mxu0 %v7473_v18 }
0x1220   :  { %5942 = vmatprep.subr.mxu0 %v7481_v42 }
0x1221   :  { %5943 = vmatpush3.msra.mxu0 %v7481_v42 }
0x1222   :  { %5268 = vmatmul.mubr.msk.f32.gmra.mxu0 %vm1017_vm3, %v2611_v61  ;;  %3045 = vmatprep.subr.mxu0 %v7489_v17 }
0x1223   :  { %2704 = vmatprep.mubr.f32.mxu0 %v8323_v54 }
0x1226   :  { %5269 = vmatmul.mubr.msk.f32.gmra.mxu0 %vm1017_vm3, %v2613_v31 }
0x1227   :  { %5944 = vmatprep.mubr.msk.f32.mxu0 %vm1017_vm3, %v2607_v60 }
0x122a   :  { %5945 = vmatmul.mubr.msk.f32.vlgmr.msra.gmra.mxu0 %vm1017_vm3, %v2609_v40 }
0x122b   :  { %5947 = vmatprep.mubr.msk.f32.mxu0 %vm1017_vm3, %v2611_v61  ;;  %3046 = vmatpush1.msra.mxu0 %v7500_v20 }
0x122c   :  { %3047 = vmatprep.subr.mxu0 %v7506_v41 }
0x122d   :  { %3048 = vmatpush1.msra.mxu0 %v7512_v25 }
0x122e   :  { %5948 = vmatmul.mubr.msk.f32.gmra.mxu0 %vm1017_vm3, %v2613_v31  ;;  %3049 = vmatprep.subr.mxu0 %v7519_v23 }
0x122f   :  { %3050 = vmatpush1.msra.mxu0 %v7525_v27  ;;  %3085 = vmatprep.mubr.f32.mxu0 %v8323_v54 }
0x1230   :  { %3051 = vmatprep.subr.mxu0 %v7532_v56 }
0x1231   :  { %3052 = vmatpush1.msra.mxu0 %v7538_v38 }
0x1232   :  { %5980 = vmatprep.subr.mxu0 %v7459_v52 }
0x12da   :  { %v2688_v43 = vpop.f32.mrf.mxu0 }
0x12db   :  { %v2796_v59 = vadd.f32 %v2688_v43, %v8375_v11 }
0x12dc   :  { %v2690_v44 = vpop.f32.mrf.mxu0 }
0x12dd   :  { %v2797_v0 = vadd.f32 %v2690_v44, %v8373_v13 }
0x12de   :  { %v2694_v33 = vpop.f32.mrf.mxu0 }
0x12df   :  { %v2799_v32 = vadd.f32 %v2694_v33, %v8374_v37 }
0x12e0   :  { %v2696_v45 = vpop.f32.mrf.mxu0 }
0x12e1   :  { %v2800_v3 = vadd.f32 %v2696_v45, %v8372_v10 }
0x12e2   :  { %v2700_v39 = vpop.f32.mrf.mxu0 }
0x12e3   :  { %v2802_v62 = vadd.f32 %v2700_v39, %v8369_v30 }
0x12e4   :  { %v2702_v48 = vpop.f32.mrf.mxu0 }
0x12e5   :  { %v2803_v2 = vadd.f32 %v2702_v48, %v8367_v16 }
0x12e6   :  { %v2706_v8 = vpop.f32.mrf.mxu0 }
0x12e7   :  { %v2805_v19 = vadd.f32 %v2706_v8, %v8368_v50 }
0x12e8   :  { %v2708_v9 = vpop.f32.mrf.mxu0 }
0x12e9   :  { %v2806_v53 = vadd.f32 %v2708_v9, %v8366_v4 }
0x12ea   :  { %v5946_v15 = vpop.f32.mrf.mxu0 }
0x12eb   :  { %v2801_v7 = vadd.f32 %v5946_v15, %v8370_v47 }
0x12ec   :  { %v2777_v49 = vpop.f32.mrf.mxu0 }
0x12ed   :  { %v2798_v22 = vadd.f32 %v2777_v49, %v8371_v14 }
0x12ee   :  { %v5949_v21 = vpop.f32.mrf.mxu0 }
0x12ef   :  { %v2807_v24 = vadd.f32 %v5949_v21, %v8364_v58 }
0x12f0   :  { %v2787_v28 = vpop.f32.mrf.mxu0 }
0x12f1   :  { %v2804_v6 = vadd.f32 %v2787_v28, %v8365_v5  ;;  %5950 = vmatprep.subr.mxu1 %v2807_v24 }
0x12f2   :  { %5951 = vmatpush3.msra.mxu1 %v2807_v24 }
0x12f3   :  { %5952 = vmatprep.subr.mxu1 %v2804_v6 }
0x12f4   :  { %5953 = vmatpush3.msra.mxu1 %v2804_v6 }
0x12f5   :  { %5954 = vmatprep.subr.mxu1 %v2806_v53 }
0x12f6   :  { %5955 = vmatpush3.msra.mxu1 %v2806_v53 }
0x12f7   :  { %5956 = vmatprep.subr.mxu1 %v2803_v2 }
0x12f8   :  { %5957 = vmatpush3.msra.mxu1 %v2803_v2 }
0x12f9   :  { %5958 = vmatprep.subr.mxu1 %v2805_v19 }
0x12fa   :  { %5959 = vmatpush3.msra.mxu1 %v2805_v19 }
0x12fb   :  { %5960 = vmatprep.subr.mxu1 %v2802_v62 }
0x12fc   :  { %5961 = vmatpush3.msra.mxu1 %v2802_v62 }
0x12fd   :  { %5962 = vmatprep.subr.mxu1 %v2801_v7 }
0x12fe   :  { %5963 = vmatpush3.msra.mxu1 %v2801_v7 }
0x12ff   :  { %5964 = vmatprep.subr.mxu1 %v2798_v22 }
0x1300   :  { %5965 = vmatpush3.msra.mxu1 %v2798_v22 }
0x1301   :  { %5966 = vmatprep.subr.mxu1 %v2800_v3 }
0x1302   :  { %5967 = vmatpush3.msra.mxu1 %v2800_v3 }
0x1303   :  { %5968 = vmatprep.subr.mxu1 %v2797_v0 }
0x1304   :  { %5969 = vmatpush3.msra.mxu1 %v2797_v0 }
0x1305   :  { %5970 = vmatprep.subr.mxu1 %v2799_v32 }
0x1306   :  { %5971 = vmatpush3.msra.mxu1 %v2799_v32 }
0x1307   :  { %5972 = vmatprep.subr.mxu1 %v2796_v59 }
0x1308   :  { %5973 = vmatpush3.msra.mxu1 %v2796_v59 }
0x1309   :  { %5975 = vmatmul.mubr.msk.f32.vlgmr.msra.gmra.mxu1 %vm787_vm2, %v7393_v63 }
0x130a   :  { %5977 = vmatprep.mubr.msk.f32.mxu1 %vm787_vm2, %v7400_v34 }
0x130d   :  { %5978 = vmatmul.mubr.msk.f32.gmra.mxu1 %vm787_vm2, %v7407_v29 }
0x130e   :  { %6018 = vmatprep.mubr.msk.f32.mxu1 %vm787_vm2, %v7647_v1 }
0x13c9   :  { %v5976_v55 = vpop.f32.mrf.mxu1 }
0x13ca   :  { %v2880_v57 = vadd.f32 %v7416_v46, %v5976_v55 }
0x13cb   :  { %v2874_v60 = vpop.f32.mrf.mxu1 }
0x13cc   :  { %6392 = vtanh.f32 %v2880_v57  ;;  %v2875_v63 = vadd.f32 %v7416_v46, %v2874_v60  ;;  %v5279_v45 = vmul.f32 -1.442695, %v2880_v57 }
0x13cd   :  { %v5979_v40 = vpop.f32.mrf.mxu1 }
0x13ce   :  { %v2890_v34 = vadd.f32 %v7416_v46, %v5979_v40  ;;  %6394 = vtanh.f32 %v2875_v63  ;;  %v5278_v39 = vmul.f32 -1.442695, %v2875_v63 }
0x13cf   :  { %v2884_v29 = vpop.f32.mrf.mxu1 }
0x13d0   :  { %v2885_v61 = vadd.f32 %v7416_v46, %v2884_v29  ;;  %6396 = vtanh.f32 %v2890_v34  ;;  %v5281_v48 = vmul.f32 -1.442695, %v2890_v34 }
0x13d2   :  { %6398 = vtanh.f32 %v2885_v61  ;;  %v5280_v46 = vmul.f32 -1.442695, %v2885_v61 }
0x13d3   :  { %6400 = vpow2.f32 %v5279_v45 }
0x13d4   :  { %6402 = vpow2.f32 %v5278_v39 }
0x13d5   :  { %6404 = vpow2.f32 %v5281_v48 }
0x13d6   :  { %6406 = vpow2.f32 %v5280_v46 }
0x13d9   :  { %v6393_v31 = vpop.eup %6392 }
0x13da   :  { %2931 = vrot.lane.b32.xlu1 %v6393_v31, %s6615_s14 }
0x13db   :  { %v6395_v43 = vpop.eup %6394 }
0x13dc   :  { %2929 = vrot.lane.b32.xlu0 %v6395_v43, %s6615_s14 }
0x13dd   :  { %v6397_v44 = vpop.eup %6396 }
0x13de   :  { %2935 = vrot.lane.b32.xlu1 %v6397_v44, %s6615_s14 }
0x13df   :  { %v6399_v33 = vpop.eup %6398 }
0x13e0   :  { %2933 = vrot.lane.b32.xlu0 %v6399_v33, %s6615_s14  ;;  %v6401_v8 = vpop.eup %6400 }
0x13e1   :  { %v6403_v9 = vpop.eup %6402  ;;  %v2906_v15 = vadd.f32 1.0, %v6401_v8 }
0x13e2   :  { %v6405_v49 = vpop.eup %6404  ;;  %v2905_v21 = vadd.f32 1.0, %v6403_v9 }
0x13e3   :  { %v6407_v58 = vpop.eup %6406  ;;  %6408 = vrcp.f32 %v2906_v15  ;;  %v2908_v24 = vadd.f32 1.0, %v6405_v49  ;;  %v8377_v49 = vld [vmem:[#allocation14_spill] sm:$0xff] }
0x13e4   :  { %6410 = vrcp.f32 %v2905_v21  ;;  %v2907_v28 = vadd.f32 1.0, %v6407_v58  ;;  %v8379_v21 = vld [vmem:[#allocation40_spill] sm:$0xff] }
0x13e5   :  { %6412 = vrcp.f32 %v2908_v24  ;;  %v8380_v24 = vld [vmem:[#allocation41_spill] sm:$0xff] }
0x13e6   :  { %6414 = vrcp.f32 %v2907_v28 }
0x13f0   :  { %v6409_v5 = vpop.eup %6408 }
0x13f1   :  { %v6411_v53 = vpop.eup %6410  ;;  %v2922_v14 = vmul.f32 %v6409_v5, %v7575_v36 }
0x13f2   :  { %v6413_v50 = vpop.eup %6412  ;;  %v2921_v3 = vmul.f32 %v6411_v53, %v7579_v35 }
0x13f3   :  { %v6415_v62 = vpop.eup %6414  ;;  %v2924_v37 = vmul.f32 %v6413_v50, %v7583_v26 }
0x13f4   :  { %v2923_v59 = vmul.f32 %v6415_v62, %v7587_v51 }
0x144c   :  { %v2932_v6 = vpop.permute.xlu1 %2931 }
0x144d   :  { %v2942_v4 = vmul.f32 %v6409_v5, %v2932_v6 }
0x144e   :  { %v2930_v16 = vpop.permute.xlu0 %2929 }
0x144f   :  { %2951 = vrot.lane.b32.xlu1 %v2942_v4, %s6615_s14  ;;  %v2941_v2 = vmul.f32 %v6411_v53, %v2930_v16  ;;  %v8382_v4 = vld [vmem:[#allocation11_spill] sm:$0xff]  ;;  %v8383_v16 = vld [vmem:[#allocation12_spill] sm:$0xff] }
0x1450   :  { %v2936_v19 = vpop.permute.xlu1 %2935 }
0x1451   :  { %v2944_v30 = vmul.f32 %v6413_v50, %v2936_v19  ;;  %2949 = vrot.lane.b32.xlu0 %v2941_v2, %s6615_s14 }
0x1452   :  { %v2934_v47 = vpop.permute.xlu0 %2933 }
0x1453   :  { %v2943_v7 = vmul.f32 %v6415_v62, %v2934_v47  ;;  %2955 = vrot.lane.b32.xlu1 %v2944_v30, %s6615_s14  ;;  %v8385_v30 = vld [vmem:[#allocation36_spill] sm:$0xff]  ;;  %v8386_v47 = vld [vmem:[#allocation37_spill] sm:$0xff] }
0x1455   :  { %2953 = vrot.lane.b32.xlu0 %v2943_v7, %s6615_s14 }
0x14c1   :  { %v2952_v22 = vpop.permute.xlu1 %2951 }
0x14c2   :  { %v7664_v10 = vadd.f32 %v2952_v22, %v2922_v14  ;;  %v8387_v14 = vld [vmem:[#allocation35_spill] sm:$0xff] }
0x14c3   :  { %v2950_v13 = vpop.permute.xlu0 %2949 }
0x14c4   :  { %6416 = vtanh.f32 %v7664_v10  ;;  %v7668_v0 = vadd.f32 %v2950_v13, %v2921_v3  ;;  %v7730_v3 = vld [vmem:[%s8295_s0 + $0x8] sm:$0xff]  ;;  %v7737_v13 = vld [vmem:[%s8295_s0 + $0x10] sm:$0xff] }
0x14c5   :  { %v2956_v32 = vpop.permute.xlu1 %2955 }
0x14c6   :  { %6418 = vtanh.f32 %v7668_v0  ;;  %v7672_v11 = vadd.f32 %v2956_v32, %v2924_v37  ;;  %v7744_v37 = vld [vmem:[%s8295_s0 + $0x18] sm:$0xff] }
0x14c7   :  { %v2954_v36 = vpop.permute.xlu0 %2953 }
0x14c8   :  { %6420 = vtanh.f32 %v7672_v11  ;;  %v7676_v55 = vadd.f32 %v2954_v36, %v2923_v59  ;;  %v7753_v59 = vld [vmem:[%s8296_s4] ss:$0 sm:$0xff] }
0x14ca   :  { %6422 = vtanh.f32 %v7676_v55 }
0x14d1   :  { %v6417_v35 = vpop.eup %6416 }
0x14d2   :  { %2975 = vrot.lane.b32.xlu1 %v6417_v35, %s6615_s14 }
0x14d3   :  { %v6419_v57 = vpop.eup %6418 }
0x14d4   :  { %2973 = vrot.lane.b32.xlu0 %v6419_v57, %s6615_s14 }
0x14d5   :  { %v6421_v26 = vpop.eup %6420 }
0x14d6   :  { %2979 = vrot.lane.b32.xlu1 %v6421_v26, %s6615_s14 }
0x14d7   :  { %v6423_v60 = vpop.eup %6422 }
0x14d8   :  { %2977 = vrot.lane.b32.xlu0 %v6423_v60, %s6615_s14 }
0x1544   :  { %v2976_v51 = vpop.permute.xlu1 %2975 }
0x1545   :  { %v2986_v63 = vmul.f32 %v6409_v5, %v2976_v51  ;;  %v8381_v5 = vld [vmem:[#allocation39_spill] sm:$0xff] }
0x1546   :  { %v2974_v40 = vpop.permute.xlu0 %2973 }
0x1547   :  { %3007 = vrot.lane.b32.xlu1 %v2986_v63, %s6616_s17  ;;  %v2985_v34 = vmul.f32 %v6411_v53, %v2974_v40 }
0x1548   :  { %v2980_v29 = vpop.permute.xlu1 %2979 }
0x1549   :  { %v2988_v61 = vmul.f32 %v6413_v50, %v2980_v29  ;;  %3005 = vrot.lane.b32.xlu0 %v2985_v34, %s6616_s17  ;;  %v8384_v50 = vld [vmem:[#allocation38_spill] sm:$0xff] }
0x154a   :  { %v2978_v31 = vpop.permute.xlu0 %2977 }
0x154b   :  { %v2987_v43 = vmul.f32 %v6415_v62, %v2978_v31  ;;  %3011 = vrot.lane.b32.xlu1 %v2988_v61, %s6616_s17 }
0x154d   :  { %3009 = vrot.lane.b32.xlu0 %v2987_v43, %s6616_s17 }
0x15b9   :  { %v3008_v33 = vpop.permute.xlu1 %3007 }
0x15bb   :  { %v3006_v44 = vpop.permute.xlu0 %3005 }
0x15bc   :  { %5282 = vmatmul.mubr.msk.f32.vlgmr.msra.gmra.mxu0 %vm1017_vm3, %v3006_v44 }
0x15bd   :  { %3091 = vmatprep.mubr.f32.mxu0 %v8323_v54  ;;  %5981 = vmatpush3.msra.mxu0 %v7459_v52 }
0x15be   :  { %5982 = vmatprep.subr.mxu0 %v7465_v12 }
0x15bf   :  { %5983 = vmatpush3.msra.mxu0 %v7465_v12  ;;  %v3010_v45 = vpop.permute.xlu0 %3009  ;;  %v3012_v12 = vpop.permute.xlu1 %3011 }
0x15c0   :  { %5283 = vmatmul.mubr.msk.f32.gmra.mxu0 %vm1017_vm3, %v3008_v33  ;;  %5984 = vmatprep.subr.mxu0 %v7473_v18 }
0x15c1   :  { %3097 = vmatprep.mubr.f32.mxu0 %v8323_v54  ;;  %5985 = vmatpush3.msra.mxu0 %v7473_v18 }
0x15c2   :  { %5986 = vmatprep.subr.mxu0 %v7481_v42 }
0x15c3   :  { %5987 = vmatpush3.msra.mxu0 %v7481_v42 }
0x15c4   :  { %5284 = vmatmul.mubr.msk.f32.gmra.mxu0 %vm1017_vm3, %v3010_v45  ;;  %3444 = vmatprep.subr.mxu0 %v7489_v17 }
0x15c5   :  { %3103 = vmatprep.mubr.f32.mxu0 %v8323_v54 }
0x15c8   :  { %5285 = vmatmul.mubr.msk.f32.gmra.mxu0 %vm1017_vm3, %v3012_v12 }
0x15c9   :  { %5988 = vmatprep.mubr.msk.f32.mxu0 %vm1017_vm3, %v3006_v44 }
0x15cc   :  { %5989 = vmatmul.mubr.msk.f32.vlgmr.msra.gmra.mxu0 %vm1017_vm3, %v3008_v33 }
0x15cd   :  { %5991 = vmatprep.mubr.msk.f32.mxu0 %vm1017_vm3, %v3010_v45  ;;  %3445 = vmatpush1.msra.mxu0 %v7500_v20 }
0x15ce   :  { %3446 = vmatprep.subr.mxu0 %v7506_v41 }
0x15cf   :  { %3447 = vmatpush1.msra.mxu0 %v7512_v25 }
0x15d0   :  { %5992 = vmatmul.mubr.msk.f32.gmra.mxu0 %vm1017_vm3, %v3012_v12  ;;  %3448 = vmatprep.subr.mxu0 %v7519_v23 }
0x15d1   :  { %3449 = vmatpush1.msra.mxu0 %v7525_v27  ;;  %3484 = vmatprep.mubr.f32.mxu0 %v8323_v54  ;;  %v8376_v27 = vld [vmem:[#allocation13_spill] sm:$0xff] }
0x15d2   :  { %3450 = vmatprep.subr.mxu0 %v7532_v56 }
0x15d3   :  { %3451 = vmatpush1.msra.mxu0 %v7538_v38  ;;  %v8378_v38 = vld [vmem:[#allocation42_spill] sm:$0xff] }
0x15d4   :  { %6024 = vmatprep.subr.mxu0 %v7459_v52 }
0x167c   :  { %v3087_v18 = vpop.f32.mrf.mxu0 }
0x167d   :  { %v3195_v22 = vadd.f32 %v3087_v18, %v8387_v14 }
0x167e   :  { %v3089_v42 = vpop.f32.mrf.mxu0 }
0x167f   :  { %v3196_v62 = vadd.f32 %v3089_v42, %v8385_v30 }
0x1680   :  { %v3093_v17 = vpop.f32.mrf.mxu0 }
0x1681   :  { %v3198_v7 = vadd.f32 %v3093_v17, %v8386_v47 }
0x1682   :  { %v3095_v20 = vpop.f32.mrf.mxu0 }
0x1683   :  { %v3199_v19 = vadd.f32 %v3095_v20, %v8384_v50 }
0x1684   :  { %v3099_v41 = vpop.f32.mrf.mxu0 }
0x1685   :  { %v3201_v6 = vadd.f32 %v3099_v41, %v8381_v5 }
0x1686   :  { %v3101_v25 = vpop.f32.mrf.mxu0 }
0x1687   :  { %v3202_v58 = vadd.f32 %v3101_v25, %v8379_v21 }
0x1688   :  { %v3105_v39 = vpop.f32.mrf.mxu0 }
0x1689   :  { %v3204_v28 = vadd.f32 %v3105_v39, %v8380_v24 }
0x168a   :  { %v3107_v48 = vpop.f32.mrf.mxu0 }
0x168b   :  { %v3205_v52 = vadd.f32 %v3107_v48, %v8378_v38 }
0x168c   :  { %v5990_v46 = vpop.f32.mrf.mxu0 }
0x168d   :  { %v3200_v53 = vadd.f32 %v5990_v46, %v8382_v4 }
0x168e   :  { %v3176_v23 = vpop.f32.mrf.mxu0 }
0x168f   :  { %v3197_v2 = vadd.f32 %v3176_v23, %v8383_v16 }
0x1690   :  { %v5993_v8 = vpop.f32.mrf.mxu0 }
0x1691   :  { %v3206_v9 = vadd.f32 %v5993_v8, %v8376_v27 }
0x1692   :  { %v3186_v15 = vpop.f32.mrf.mxu0 }
0x1693   :  { %v3203_v56 = vadd.f32 %v3186_v15, %v8377_v49  ;;  %5994 = vmatprep.subr.mxu1 %v3206_v9 }
0x1694   :  { %5995 = vmatpush3.msra.mxu1 %v3206_v9 }
0x1695   :  { %5996 = vmatprep.subr.mxu1 %v3203_v56 }
0x1696   :  { %5997 = vmatpush3.msra.mxu1 %v3203_v56 }
0x1697   :  { %5998 = vmatprep.subr.mxu1 %v3205_v52 }
0x1698   :  { %5999 = vmatpush3.msra.mxu1 %v3205_v52 }
0x1699   :  { %6000 = vmatprep.subr.mxu1 %v3202_v58 }
0x169a   :  { %6001 = vmatpush3.msra.mxu1 %v3202_v58 }
0x169b   :  { %6002 = vmatprep.subr.mxu1 %v3204_v28 }
0x169c   :  { %6003 = vmatpush3.msra.mxu1 %v3204_v28 }
0x169d   :  { %6004 = vmatprep.subr.mxu1 %v3201_v6 }
0x169e   :  { %6005 = vmatpush3.msra.mxu1 %v3201_v6 }
0x169f   :  { %6006 = vmatprep.subr.mxu1 %v3200_v53 }
0x16a0   :  { %6007 = vmatpush3.msra.mxu1 %v3200_v53 }
0x16a1   :  { %6008 = vmatprep.subr.mxu1 %v3197_v2 }
0x16a2   :  { %6009 = vmatpush3.msra.mxu1 %v3197_v2 }
0x16a3   :  { %6010 = vmatprep.subr.mxu1 %v3199_v19 }
0x16a4   :  { %6011 = vmatpush3.msra.mxu1 %v3199_v19 }
0x16a5   :  { %6012 = vmatprep.subr.mxu1 %v3196_v62 }
0x16a6   :  { %6013 = vmatpush3.msra.mxu1 %v3196_v62 }
0x16a7   :  { %6014 = vmatprep.subr.mxu1 %v3198_v7 }
0x16a8   :  { %6015 = vmatpush3.msra.mxu1 %v3198_v7 }
0x16a9   :  { %6016 = vmatprep.subr.mxu1 %v3195_v22 }
0x16aa   :  { %6017 = vmatpush3.msra.mxu1 %v3195_v22 }
0x16ab   :  { %6019 = vmatmul.mubr.msk.f32.vlgmr.msra.gmra.mxu1 %vm787_vm2, %v7730_v3 }
0x16ac   :  { %6021 = vmatprep.mubr.msk.f32.mxu1 %vm787_vm2, %v7737_v13 }
0x16af   :  { %6022 = vmatmul.mubr.msk.f32.gmra.mxu1 %vm787_vm2, %v7744_v37 }
0x16b0   :  { %6062 = vmatprep.mubr.msk.f32.mxu1 %vm787_vm2, %v7647_v1 }
0x176b   :  { %v6020_v32 = vpop.f32.mrf.mxu1 }
0x176c   :  { %v3279_v36 = vadd.f32 %v7753_v59, %v6020_v32 }
0x176d   :  { %v3273_v35 = vpop.f32.mrf.mxu1 }
0x176e   :  { %6424 = vtanh.f32 %v3279_v36  ;;  %v3274_v57 = vadd.f32 %v7753_v59, %v3273_v35  ;;  %v5295_v31 = vmul.f32 -1.442695, %v3279_v36 }
0x176f   :  { %v6023_v26 = vpop.f32.mrf.mxu1 }
0x1770   :  { %v3289_v60 = vadd.f32 %v7753_v59, %v6023_v26  ;;  %6426 = vtanh.f32 %v3274_v57  ;;  %v5294_v43 = vmul.f32 -1.442695, %v3274_v57  ;;  %v6606_v57 = vld [vmem:[%s8297_s3 + $0x58] sm:$0xff]  ;;  %v6607_v26 = vld [vmem:[%s8297_s3 + $0x40] sm:$0xff] }
0x1771   :  { %v3283_v51 = vpop.f32.mrf.mxu1 }
0x1772   :  { %v3284_v63 = vadd.f32 %v7753_v59, %v3283_v51  ;;  %6428 = vtanh.f32 %v3289_v60  ;;  %v5297_v44 = vmul.f32 -1.442695, %v3289_v60  ;;  %v6608_v51 = vld [vmem:[%s8297_s3 + $0x28] sm:$0xff] }
0x1774   :  { %6430 = vtanh.f32 %v3284_v63  ;;  %v5296_v33 = vmul.f32 -1.442695, %v3284_v63  ;;  %v6609_v63 = vld [vmem:[%s8297_s3 + $0x10] sm:$0xff] }
0x1775   :  { %6432 = vpow2.f32 %v5295_v31 }
0x1776   :  { %6434 = vpow2.f32 %v5294_v43 }
0x1777   :  { %6436 = vpow2.f32 %v5297_v44 }
0x1778   :  { %6438 = vpow2.f32 %v5296_v33 }
0x177b   :  { %v6425_v40 = vpop.eup %6424 }
0x177c   :  { %3330 = vrot.lane.b32.xlu1 %v6425_v40, %s6615_s14 }
0x177d   :  { %v6427_v34 = vpop.eup %6426 }
0x177e   :  { %3328 = vrot.lane.b32.xlu0 %v6427_v34, %s6615_s14 }
0x177f   :  { %v6429_v29 = vpop.eup %6428 }
0x1780   :  { %3334 = vrot.lane.b32.xlu1 %v6429_v29, %s6615_s14 }
0x1781   :  { %v6431_v61 = vpop.eup %6430 }
0x1782   :  { %3332 = vrot.lane.b32.xlu0 %v6431_v61, %s6615_s14  ;;  %v6433_v45 = vpop.eup %6432 }
0x1783   :  { %v6435_v12 = vpop.eup %6434  ;;  %v3305_v18 = vadd.f32 1.0, %v6433_v45 }
0x1784   :  { %v6437_v42 = vpop.eup %6436  ;;  %v3304_v17 = vadd.f32 1.0, %v6435_v12 }
0x1785   :  { %v6439_v20 = vpop.eup %6438  ;;  %6440 = vrcp.f32 %v3305_v18  ;;  %v3307_v41 = vadd.f32 1.0, %v6437_v42 }
0x1786   :  { %6442 = vrcp.f32 %v3304_v17  ;;  %v3306_v25 = vadd.f32 1.0, %v6439_v20  ;;  %v8388_v20 = vld [vmem:[#allocation17_spill] sm:$0xff] }
0x1787   :  { %6444 = vrcp.f32 %v3307_v41 }
0x1788   :  { %6446 = vrcp.f32 %v3306_v25 }
0x1792   :  { %v6441_v39 = vpop.eup %6440 }
0x1793   :  { %v6443_v23 = vpop.eup %6442  ;;  %v3321_v21 = vmul.f32 %v6441_v39, %v7664_v10 }
0x1794   :  { %v6445_v9 = vpop.eup %6444  ;;  %v3320_v28 = vmul.f32 %v6443_v23, %v7668_v0 }
0x1795   :  { %v6447_v56 = vpop.eup %6446  ;;  %v3323_v4 = vmul.f32 %v6445_v9, %v7672_v11 }
0x1796   :  { %v3322_v2 = vmul.f32 %v6447_v56, %v7676_v55 }
0x17ee   :  { %v3331_v48 = vpop.permute.xlu1 %3330 }
0x17ef   :  { %v3341_v46 = vmul.f32 %v6441_v39, %v3331_v48 }
0x17f0   :  { %v3329_v8 = vpop.permute.xlu0 %3328 }
0x17f1   :  { %3350 = vrot.lane.b32.xlu1 %v3341_v46, %s6615_s14  ;;  %v3340_v27 = vmul.f32 %v6443_v23, %v3329_v8  ;;  %v8390_v46 = vld [vmem:[#allocation4_spill] sm:$0xff] }
0x17f2   :  { %v3335_v15 = vpop.permute.xlu1 %3334  ;;  %v8391_v8 = vld [vmem:[#allocation48_spill] sm:$0xff] }
0x17f3   :  { %v3343_v49 = vmul.f32 %v6445_v9, %v3335_v15  ;;  %3348 = vrot.lane.b32.xlu0 %v3340_v27, %s6615_s14 }
0x17f4   :  { %v3333_v38 = vpop.permute.xlu0 %3332 }
0x17f5   :  { %v3342_v52 = vmul.f32 %v6447_v56, %v3333_v38  ;;  %3354 = vrot.lane.b32.xlu1 %v3343_v49, %s6615_s14  ;;  %v8393_v49 = vld [vmem:[#allocation47_spill] sm:$0xff] }
0x17f6   :  { %v8394_v38 = vld [vmem:[#allocation15_spill] sm:$0xff] }
0x17f7   :  { %3352 = vrot.lane.b32.xlu0 %v3342_v52, %s6615_s14 }
0x1863   :  { %v3351_v58 = vpop.permute.xlu1 %3350 }
0x1864   :  { %v7768_v24 = vadd.f32 %v3351_v58, %v3321_v21  ;;  %v8395_v21 = vld [vmem:[#allocation16_spill] sm:$0xff] }
0x1865   :  { %v3349_v5 = vpop.permute.xlu0 %3348 }
0x1866   :  { %6448 = vtanh.f32 %v7768_v24  ;;  %v7772_v6 = vadd.f32 %v3349_v5, %v3320_v28  ;;  %v8396_v28 = vld [vmem:[#allocation46_spill] sm:$0xff] }
0x1867   :  { %v3355_v53 = vpop.permute.xlu1 %3354 }
0x1868   :  { %6450 = vtanh.f32 %v7772_v6  ;;  %v7776_v16 = vadd.f32 %v3355_v53, %v3323_v4  ;;  %v8397_v4 = vld [vmem:[#allocation44_spill] sm:$0xff] }
0x1869   :  { %v3353_v10 = vpop.permute.xlu0 %3352 }
0x186a   :  { %6452 = vtanh.f32 %v7776_v16  ;;  %v7780_v50 = vadd.f32 %v3353_v10, %v3322_v2  ;;  %v8398_v2 = vld [vmem:[#allocation45_spill] sm:$0xff] }
0x186c   :  { %6454 = vtanh.f32 %v7780_v50 }
0x1873   :  { %v6449_v0 = vpop.eup %6448 }
0x1874   :  { %3374 = vrot.lane.b32.xlu1 %v6449_v0, %s6615_s14  ;;  %v8399_v0 = vld [vmem:[#allocation43_spill] sm:$0xff] }
0x1875   :  { %v6451_v19 = vpop.eup %6450 }
0x1876   :  { %3372 = vrot.lane.b32.xlu0 %v6451_v19, %s6615_s14 }
0x1877   :  { %v6453_v11 = vpop.eup %6452 }
0x1878   :  { %3378 = vrot.lane.b32.xlu1 %v6453_v11, %s6615_s14 }
0x1879   :  { %v6455_v30 = vpop.eup %6454 }
0x187a   :  { %3376 = vrot.lane.b32.xlu0 %v6455_v30, %s6615_s14 }
0x18e6   :  { %v3375_v55 = vpop.permute.xlu1 %3374 }
0x18e7   :  { %v3385_v62 = vmul.f32 %v6441_v39, %v3375_v55  ;;  %v8389_v39 = vld [vmem:[#allocation18_spill] sm:$0xff] }
0x18e8   :  { %v3373_v47 = vpop.permute.xlu0 %3372 }
0x18e9   :  { %3406 = vrot.lane.b32.xlu1 %v3385_v62, %s6616_s17  ;;  %v3384_v7 = vmul.f32 %v6443_v23, %v3373_v47 }
0x18ea   :  { %v3379_v14 = vpop.permute.xlu1 %3378 }
0x18eb   :  { %v3387_v22 = vmul.f32 %v6445_v9, %v3379_v14  ;;  %3404 = vrot.lane.b32.xlu0 %v3384_v7, %s6616_s17  ;;  %v8392_v9 = vld [vmem:[#allocation3_spill] sm:$0xff] }
0x18ec   :  { %v3377_v32 = vpop.permute.xlu0 %3376 }
0x18ed   :  { %v3386_v36 = vmul.f32 %v6447_v56, %v3377_v32  ;;  %3410 = vrot.lane.b32.xlu1 %v3387_v22, %s6616_s17 }
0x18ef   :  { %3408 = vrot.lane.b32.xlu0 %v3386_v36, %s6616_s17 }
0x195b   :  { %v3407_v60 = vpop.permute.xlu1 %3406 }
0x195d   :  { %v3405_v35 = vpop.permute.xlu0 %3404 }
0x195e   :  { %5298 = vmatmul.mubr.msk.f32.vlgmr.msra.gmra.mxu0 %vm1017_vm3, %v3405_v35 }
0x195f   :  { %3490 = vmatprep.mubr.f32.mxu0 %v8323_v54  ;;  %6025 = vmatpush3.msra.mxu0 %v6606_v57  ;;  %v3411_v34 = vpop.permute.xlu1 %3410 }
0x1960   :  { %6026 = vmatprep.subr.mxu0 %v6607_v26 }
0x1961   :  { %6027 = vmatpush3.msra.mxu0 %v6607_v26  ;;  %v3409_v40 = vpop.permute.xlu0 %3408 }
0x1962   :  { %5299 = vmatmul.mubr.msk.f32.gmra.mxu0 %vm1017_vm3, %v3407_v60  ;;  %6028 = vmatprep.subr.mxu0 %v6608_v51 }
0x1963   :  { %3496 = vmatprep.mubr.f32.mxu0 %v8323_v54  ;;  %6029 = vmatpush3.msra.mxu0 %v6608_v51 }
0x1964   :  { %6030 = vmatprep.subr.mxu0 %v6609_v63 }
0x1965   :  { %6031 = vmatpush3.msra.mxu0 %v6609_v63 }
0x1966   :  { %5300 = vmatmul.mubr.msk.f32.gmra.mxu0 %vm1017_vm3, %v3409_v40 }
0x1967   :  { %3502 = vmatprep.mubr.f32.mxu0 %v8323_v54 }
0x196a   :  { %5301 = vmatmul.mubr.msk.f32.gmra.mxu0 %vm1017_vm3, %v3411_v34 }
0x196b   :  { %6032 = vmatprep.mubr.msk.f32.mxu0 %vm1017_vm3, %v3405_v35 }
0x196e   :  { %6033 = vmatmul.mubr.msk.f32.vlgmr.msra.gmra.mxu0 %vm1017_vm3, %v3407_v60 }
0x196f   :  { %6035 = vmatprep.mubr.msk.f32.mxu0 %vm1017_vm3, %v3409_v40 }
0x1972   :  { %6036 = vmatmul.mubr.msk.f32.gmra.mxu0 %vm1017_vm3, %v3411_v34 }
0x1973   :  { %3883 = vmatprep.mubr.f32.mxu0 %v8323_v54 }
0x1a1e   :  { %v3486_v29 = vpop.f32.mrf.mxu0 }
0x1a1f   :  { %v3594_v19 = vadd.f32 %v3486_v29, %v8399_v0  ;;  %v3788_v0 = vld [vmem:[%s8298_s5 + $0x8] sm:$0xff] }
0x1a20   :  { %v3488_v61 = vpop.f32.mrf.mxu0 }
0x1a21   :  { %v3595_v53 = vadd.f32 %v3488_v61, %v8397_v4  ;;  %v3790_v4 = vld [vmem:[%s8298_s5 + $0x18] sm:$0xff] }
0x1a22   :  { %v3492_v31 = vpop.f32.mrf.mxu0 }
0x1a23   :  { %v3597_v10 = vadd.f32 %v3492_v31, %v8398_v2 }
0x1a24   :  { %v3494_v43 = vpop.f32.mrf.mxu0 }
0x1a25   :  { %v3598_v5 = vadd.f32 %v3494_v43, %v8396_v28 }
0x1a26   :  { %v3498_v44 = vpop.f32.mrf.mxu0 }
0x1a27   :  { %v3600_v56 = vadd.f32 %v3498_v44, %v8393_v49 }
0x1a28   :  { %v3500_v33 = vpop.f32.mrf.mxu0 }
0x1a29   :  { %v3601_v27 = vadd.f32 %v3500_v33, %v8391_v8 }
0x1a2a   :  { %v3504_v45 = vpop.f32.mrf.mxu0 }
0x1a2b   :  { %v3603_v15 = vadd.f32 %v3504_v45, %v8392_v9 }
0x1a2c   :  { %v3506_v12 = vpop.f32.mrf.mxu0 }
0x1a2d   :  { %v3604_v23 = vadd.f32 %v3506_v12, %v8390_v46 }
0x1a2e   :  { %v6034_v18 = vpop.f32.mrf.mxu0 }
0x1a2f   :  { %v3599_v52 = vadd.f32 %v6034_v18, %v8394_v38 }
0x1a30   :  { %v3575_v42 = vpop.f32.mrf.mxu0 }
0x1a31   :  { %v3596_v58 = vadd.f32 %v3575_v42, %v8395_v21 }
0x1a32   :  { %v6037_v17 = vpop.f32.mrf.mxu0 }
0x1a33   :  { %v3605_v41 = vadd.f32 %v6037_v17, %v8388_v20 }
0x1a34   :  { %v3585_v25 = vpop.f32.mrf.mxu0 }
0x1a35   :  { %v3602_v48 = vadd.f32 %v3585_v25, %v8389_v39  ;;  %6038 = vmatprep.subr.mxu1 %v3605_v41 }
0x1a36   :  { %6039 = vmatpush3.msra.mxu1 %v3605_v41 }
0x1a37   :  { %6040 = vmatprep.subr.mxu1 %v3602_v48 }
0x1a38   :  { %6041 = vmatpush3.msra.mxu1 %v3602_v48 }
0x1a39   :  { %6042 = vmatprep.subr.mxu1 %v3604_v23 }
0x1a3a   :  { %6043 = vmatpush3.msra.mxu1 %v3604_v23 }
0x1a3b   :  { %6044 = vmatprep.subr.mxu1 %v3601_v27 }
0x1a3c   :  { %6045 = vmatpush3.msra.mxu1 %v3601_v27 }
0x1a3d   :  { %6046 = vmatprep.subr.mxu1 %v3603_v15 }
0x1a3e   :  { %6047 = vmatpush3.msra.mxu1 %v3603_v15 }
0x1a3f   :  { %6048 = vmatprep.subr.mxu1 %v3600_v56 }
0x1a40   :  { %6049 = vmatpush3.msra.mxu1 %v3600_v56 }
0x1a41   :  { %6050 = vmatprep.subr.mxu1 %v3599_v52 }
0x1a42   :  { %6051 = vmatpush3.msra.mxu1 %v3599_v52 }
0x1a43   :  { %6052 = vmatprep.subr.mxu1 %v3596_v58 }
0x1a44   :  { %6053 = vmatpush3.msra.mxu1 %v3596_v58  ;;  %v3794_v58 = vld [vmem:[%s8298_s5 + $0x38] sm:$0xff] }
0x1a45   :  { %6054 = vmatprep.subr.mxu1 %v3598_v5 }
0x1a46   :  { %6055 = vmatpush3.msra.mxu1 %v3598_v5  ;;  %v3791_v5 = vld [vmem:[%s8298_s5 + $0x20] sm:$0xff] }
0x1a47   :  { %6056 = vmatprep.subr.mxu1 %v3595_v53 }
0x1a48   :  { %6057 = vmatpush3.msra.mxu1 %v3595_v53 }
0x1a49   :  { %6058 = vmatprep.subr.mxu1 %v3597_v10 }
0x1a4a   :  { %6059 = vmatpush3.msra.mxu1 %v3597_v10 }
0x1a4b   :  { %6060 = vmatprep.subr.mxu1 %v3594_v19 }
0x1a4c   :  { %6061 = vmatpush3.msra.mxu1 %v3594_v19  ;;  %v3787_v19 = vld [vmem:[%s8298_s5] sm:$0xff] }
0x1a4d   :  { %6063 = vmatmul.mubr.msk.f32.vlgmr.msra.gmra.mxu1 %vm787_vm2, %v7730_v3 }
0x1a4e   :  { %6065 = vmatprep.mubr.msk.f32.mxu1 %vm787_vm2, %v7737_v13 }
0x1a51   :  { %6066 = vmatmul.mubr.msk.f32.gmra.mxu1 %vm787_vm2, %v7744_v37 }
0x1a52   :  { %6106 = vmatprep.mubr.msk.f32.mxu1 %vm787_vm2, %v7647_v1 }
0x1b0d   :  { %v6064_v11 = vpop.f32.mrf.mxu1 }
0x1b0e   :  { %v3678_v30 = vadd.f32 %v7753_v59, %v6064_v11 }
0x1b0f   :  { %v3672_v55 = vpop.f32.mrf.mxu1 }
0x1b10   :  { %6456 = vtanh.f32 %v3678_v30  ;;  %v3673_v62 = vadd.f32 %v7753_v59, %v3672_v55  ;;  %v5311_v57 = vmul.f32 -1.442695, %v3678_v30  ;;  %v3798_v30 = vld [vmem:[%s8298_s5 + $0x58] sm:$0xff] }
0x1b11   :  { %v6067_v47 = vpop.f32.mrf.mxu1 }
0x1b12   :  { %v3688_v7 = vadd.f32 %v7753_v59, %v6067_v47  ;;  %6458 = vtanh.f32 %v3673_v62  ;;  %v5310_v26 = vmul.f32 -1.442695, %v3673_v62 }
0x1b13   :  { %v3682_v14 = vpop.f32.mrf.mxu1 }
0x1b14   :  { %v3683_v22 = vadd.f32 %v7753_v59, %v3682_v14  ;;  %6460 = vtanh.f32 %v3688_v7  ;;  %v5313_v60 = vmul.f32 -1.442695, %v3688_v7 }
0x1b16   :  { %6462 = vtanh.f32 %v3683_v22  ;;  %v5312_v59 = vmul.f32 -1.442695, %v3683_v22 }
0x1b17   :  { %6464 = vpow2.f32 %v5311_v57 }
0x1b18   :  { %6466 = vpow2.f32 %v5310_v26  ;;  %v3789_v26 = vld [vmem:[%s8298_s5 + $0x10] sm:$0xff] }
0x1b19   :  { %6468 = vpow2.f32 %v5313_v60 }
0x1b1a   :  { %6470 = vpow2.f32 %v5312_v59 }
0x1b1d   :  { %v6457_v32 = vpop.eup %6456 }
0x1b1e   :  { %3729 = vrot.lane.b32.xlu1 %v6457_v32, %s6615_s14 }
0x1b1f   :  { %v6459_v1 = vpop.eup %6458 }
0x1b20   :  { %3727 = vrot.lane.b32.xlu0 %v6459_v1, %s6615_s14 }
0x1b21   :  { %v6461_v36 = vpop.eup %6460 }
0x1b22   :  { %3733 = vrot.lane.b32.xlu1 %v6461_v36, %s6615_s14  ;;  %v3795_v36 = vld [vmem:[%s8298_s5 + $0x40] sm:$0xff] }
0x1b23   :  { %v6463_v35 = vpop.eup %6462 }
0x1b24   :  { %3731 = vrot.lane.b32.xlu0 %v6463_v35, %s6615_s14  ;;  %v6465_v51 = vpop.eup %6464  ;;  %v3792_v35 = vld [vmem:[%s8298_s5 + $0x28] sm:$0xff] }
0x1b25   :  { %v6467_v63 = vpop.eup %6466  ;;  %v3704_v40 = vadd.f32 1.0, %v6465_v51 }
0x1b26   :  { %v6469_v34 = vpop.eup %6468  ;;  %v3703_v29 = vadd.f32 1.0, %v6467_v63 }
0x1b27   :  { %v6471_v61 = vpop.eup %6470  ;;  %6472 = vrcp.f32 %v3704_v40  ;;  %v3706_v31 = vadd.f32 1.0, %v6469_v34 }
0x1b28   :  { %6474 = vrcp.f32 %v3703_v29  ;;  %v3705_v43 = vadd.f32 1.0, %v6471_v61 }
0x1b29   :  { %6476 = vrcp.f32 %v3706_v31 }
0x1b2a   :  { %6478 = vrcp.f32 %v3705_v43 }
0x1b34   :  { %v6473_v44 = vpop.eup %6472 }
0x1b35   :  { %v6475_v12 = vpop.eup %6474  ;;  %v3720_v46 = vmul.f32 %v6473_v44, %v7768_v24 }
0x1b36   :  { %v6477_v17 = vpop.eup %6476  ;;  %v3719_v27 = vmul.f32 %v6475_v12, %v7772_v6  ;;  %v3797_v6 = vld [vmem:[%s8298_s5 + $0x50] sm:$0xff] }
0x1b37   :  { %v6479_v25 = vpop.eup %6478  ;;  %v3722_v49 = vmul.f32 %v6477_v17, %v7776_v16  ;;  %v3796_v16 = vld [vmem:[%s8298_s5 + $0x48] sm:$0xff]  ;;  %3843 = vmatprep.subr.mxu0 %v3797_v6 }
0x1b38   :  { %v3721_v52 = vmul.f32 %v6479_v25, %v7780_v50  ;;  %v3793_v50 = vld [vmem:[%s8298_s5 + $0x30] sm:$0xff]  ;;  %3844 = vmatpush1.msra.mxu0 %v3796_v16 }
0x1b39   :  { %3845 = vmatprep.subr.mxu0 %v3794_v58 }
0x1b3a   :  { %3846 = vmatpush1.msra.mxu0 %v3793_v50 }
0x1b3b   :  { %3847 = vmatprep.subr.mxu0 %v3791_v5 }
0x1b3c   :  { %3848 = vmatpush1.msra.mxu0 %v3790_v4 }
0x1b3d   :  { %3849 = vmatprep.subr.mxu0 %v3788_v0 }
0x1b3e   :  { %3850 = vmatpush1.msra.mxu0 %v3787_v19 }
0x1b3f   :  { %6068 = vmatprep.subr.mxu0 %v3798_v30 }
0x1b90   :  { %v3730_v33 = vpop.permute.xlu1 %3729 }
0x1b91   :  { %v3740_v45 = vmul.f32 %v6473_v44, %v3730_v33 }
0x1b92   :  { %v3728_v18 = vpop.permute.xlu0 %3727 }
0x1b93   :  { %3749 = vrot.lane.b32.xlu1 %v3740_v45, %s6615_s14  ;;  %v3739_v42 = vmul.f32 %v6475_v12, %v3728_v18  ;;  %v7928_v18 = vld [vmem:[%s8295_s0] sm:$0xff] }
0x1b94   :  { %v3734_v20 = vpop.permute.xlu1 %3733 }
0x1b95   :  { %v3742_v41 = vmul.f32 %v6477_v17, %v3734_v20  ;;  %3747 = vrot.lane.b32.xlu0 %v3739_v42, %s6615_s14  ;;  %v7935_v42 = vld [vmem:[%s8299_s8] ss:$0 sm:$0xff] }
0x1b96   :  { %v3732_v39 = vpop.permute.xlu0 %3731 }
0x1b97   :  { %v3741_v48 = vmul.f32 %v6479_v25, %v3732_v39  ;;  %3753 = vrot.lane.b32.xlu1 %v3742_v41, %s6615_s14 }
0x1b99   :  { %3751 = vrot.lane.b32.xlu0 %v3741_v48, %s6615_s14 }
0x1c05   :  { %v3750_v23 = vpop.permute.xlu1 %3749 }
0x1c06   :  { %v7848_v8 = vadd.f32 %v3750_v23, %v3720_v46 }
0x1c07   :  { %v3748_v9 = vpop.permute.xlu0 %3747 }
0x1c08   :  { %6480 = vtanh.f32 %v7848_v8  ;;  %v7852_v15 = vadd.f32 %v3748_v9, %v3719_v27 }
0x1c09   :  { %v3754_v56 = vpop.permute.xlu1 %3753 }
0x1c0a   :  { %6482 = vtanh.f32 %v7852_v15  ;;  %v7856_v38 = vadd.f32 %v3754_v56, %v3722_v49 }
0x1c0b   :  { %v3752_v24 = vpop.permute.xlu0 %3751 }
0x1c0c   :  { %6484 = vtanh.f32 %v7856_v38  ;;  %v7860_v21 = vadd.f32 %v3752_v24, %v3721_v52 }
0x1c0e   :  { %6486 = vtanh.f32 %v7860_v21 }
0x1c15   :  { %v6481_v28 = vpop.eup %6480 }
0x1c16   :  { %3773 = vrot.lane.b32.xlu1 %v6481_v28, %s6615_s14 }
0x1c17   :  { %v6483_v53 = vpop.eup %6482 }
0x1c18   :  { %3771 = vrot.lane.b32.xlu0 %v6483_v53, %s6615_s14 }
0x1c19   :  { %v6485_v2 = vpop.eup %6484 }
0x1c1a   :  { %3777 = vrot.lane.b32.xlu1 %v6485_v2, %s6615_s14 }
0x1c1b   :  { %v6487_v10 = vpop.eup %6486 }
0x1c1c   :  { %3775 = vrot.lane.b32.xlu0 %v6487_v10, %s6615_s14 }
0x1c88   :  { %v3774_v11 = vpop.permute.xlu1 %3773 }
0x1c89   :  { %v3784_v55 = vmul.f32 %v6473_v44, %v3774_v11 }
0x1c8a   :  { %v3772_v62 = vpop.permute.xlu0 %3771 }
0x1c8b   :  { %3805 = vrot.lane.b32.xlu1 %v3784_v55, %s6616_s17  ;;  %v3783_v47 = vmul.f32 %v6475_v12, %v3772_v62 }
0x1c8c   :  { %v3778_v7 = vpop.permute.xlu1 %3777 }
0x1c8d   :  { %v3786_v14 = vmul.f32 %v6477_v17, %v3778_v7  ;;  %3803 = vrot.lane.b32.xlu0 %v3783_v47, %s6616_s17 }
0x1c8e   :  { %v3776_v22 = vpop.permute.xlu0 %3775 }
0x1c8f   :  { %v3785_v32 = vmul.f32 %v6479_v25, %v3776_v22  ;;  %3809 = vrot.lane.b32.xlu1 %v3786_v14, %s6616_s17 }
0x1c91   :  { %3807 = vrot.lane.b32.xlu0 %v3785_v32, %s6616_s17 }
0x1cfd   :  { %v3806_v57 = vpop.permute.xlu1 %3805 }
0x1cff   :  { %v3804_v1 = vpop.permute.xlu0 %3803 }
0x1d00   :  { %5314 = vmatmul.mubr.msk.f32.vlgmr.msra.gmra.mxu0 %vm1017_vm3, %v3804_v1 }
0x1d01   :  { %3889 = vmatprep.mubr.f32.mxu0 %v8323_v54  ;;  %6069 = vmatpush3.msra.mxu0 %v3798_v30  ;;  %v3810_v59 = vpop.permute.xlu1 %3809 }
0x1d02   :  { %6070 = vmatprep.subr.mxu0 %v3795_v36 }
0x1d03   :  { %6071 = vmatpush3.msra.mxu0 %v3795_v36  ;;  %v3808_v60 = vpop.permute.xlu0 %3807 }
0x1d04   :  { %5315 = vmatmul.mubr.msk.f32.gmra.mxu0 %vm1017_vm3, %v3806_v57  ;;  %6072 = vmatprep.subr.mxu0 %v3792_v35 }
0x1d05   :  { %3895 = vmatprep.mubr.f32.mxu0 %v8323_v54  ;;  %6073 = vmatpush3.msra.mxu0 %v3792_v35 }
0x1d06   :  { %6074 = vmatprep.subr.mxu0 %v3789_v26 }
0x1d07   :  { %6075 = vmatpush3.msra.mxu0 %v3789_v26 }
0x1d08   :  { %5316 = vmatmul.mubr.msk.f32.gmra.mxu0 %vm1017_vm3, %v3808_v60 }
0x1d09   :  { %3901 = vmatprep.mubr.f32.mxu0 %v8323_v54 }
0x1d0c   :  { %5317 = vmatmul.mubr.msk.f32.gmra.mxu0 %vm1017_vm3, %v3810_v59 }
0x1d0d   :  { %6076 = vmatprep.mubr.msk.f32.mxu0 %vm1017_vm3, %v3804_v1 }
0x1d10   :  { %6077 = vmatmul.mubr.msk.f32.vlgmr.msra.gmra.mxu0 %vm1017_vm3, %v3806_v57 }
0x1d11   :  { %6079 = vmatprep.mubr.msk.f32.mxu0 %vm1017_vm3, %v3808_v60 }
0x1d14   :  { %6080 = vmatmul.mubr.msk.f32.gmra.mxu0 %vm1017_vm3, %v3810_v59 }
0x1d15   :  { %4287 = vmatprep.mubr.f32.mxu0 %v8323_v54 }
0x1dc0   :  { %v3885_v51 = vpop.f32.mrf.mxu0 }
0x1dc2   :  { %v3887_v63 = vpop.f32.mrf.mxu0 }
0x1dc4   :  { %v3891_v40 = vpop.f32.mrf.mxu0 }
0x1dc6   :  { %v3893_v34 = vpop.f32.mrf.mxu0 }
0x1dc8   :  { %v3897_v29 = vpop.f32.mrf.mxu0 }
0x1dca   :  { %v3899_v61 = vpop.f32.mrf.mxu0 }
0x1dcc   :  { %v3903_v31 = vpop.f32.mrf.mxu0 }
0x1dce   :  { %v3905_v43 = vpop.f32.mrf.mxu0 }
0x1dd0   :  { %v6078_v44 = vpop.f32.mrf.mxu0 }
0x1dd2   :  { %v3974_v33 = vpop.f32.mrf.mxu0 }
0x1dd4   :  { %v6081_v45 = vpop.f32.mrf.mxu0 }
0x1dd5   :  { %6082 = vmatprep.subr.mxu1 %v6081_v45 }
0x1dd6   :  { %v3984_v12 = vpop.f32.mrf.mxu0  ;;  %6083 = vmatpush3.msra.mxu1 %v6081_v45  ;;  %v4174_v45 = vld [vmem:[%s8300_s6] sm:$0xff] }
0x1dd7   :  { %6084 = vmatprep.subr.mxu1 %v3984_v12 }
0x1dd8   :  { %6085 = vmatpush3.msra.mxu1 %v3984_v12 }
0x1dd9   :  { %6086 = vmatprep.subr.mxu1 %v3905_v43 }
0x1dda   :  { %6087 = vmatpush3.msra.mxu1 %v3905_v43 }
0x1ddb   :  { %6088 = vmatprep.subr.mxu1 %v3899_v61 }
0x1ddc   :  { %6089 = vmatpush3.msra.mxu1 %v3899_v61  ;;  %v4177_v61 = vld [vmem:[%s8300_s6 + $0x18] sm:$0xff] }
0x1ddd   :  { %6090 = vmatprep.subr.mxu1 %v3903_v31 }
0x1dde   :  { %6091 = vmatpush3.msra.mxu1 %v3903_v31 }
0x1ddf   :  { %6092 = vmatprep.subr.mxu1 %v3897_v29 }
0x1de0   :  { %6093 = vmatpush3.msra.mxu1 %v3897_v29  ;;  %v4178_v29 = vld [vmem:[%s8300_s6 + $0x20] sm:$0xff] }
0x1de1   :  { %6094 = vmatprep.subr.mxu1 %v6078_v44 }
0x1de2   :  { %6095 = vmatpush3.msra.mxu1 %v6078_v44 }
0x1de3   :  { %6096 = vmatprep.subr.mxu1 %v3974_v33 }
0x1de4   :  { %6097 = vmatpush3.msra.mxu1 %v3974_v33  ;;  %v4175_v33 = vld [vmem:[%s8300_s6 + $0x8] sm:$0xff] }
0x1de5   :  { %6098 = vmatprep.subr.mxu1 %v3893_v34 }
0x1de6   :  { %6099 = vmatpush3.msra.mxu1 %v3893_v34 }
0x1de7   :  { %6100 = vmatprep.subr.mxu1 %v3887_v63 }
0x1de8   :  { %6101 = vmatpush3.msra.mxu1 %v3887_v63 }
0x1de9   :  { %6102 = vmatprep.subr.mxu1 %v3891_v40 }
0x1dea   :  { %6103 = vmatpush3.msra.mxu1 %v3891_v40  ;;  %v4181_v40 = vld [vmem:[%s8300_s6 + $0x38] sm:$0xff] }
0x1deb   :  { %6104 = vmatprep.subr.mxu1 %v3885_v51 }
0x1dec   :  { %6105 = vmatpush3.msra.mxu1 %v3885_v51 }
0x1ded   :  { %6107 = vmatmul.mubr.msk.f32.vlgmr.msra.gmra.mxu1 %vm787_vm2, %v7730_v3 }
0x1dee   :  { %6109 = vmatprep.mubr.msk.f32.mxu1 %vm787_vm2, %v7737_v13 }
0x1df1   :  { %6110 = vmatmul.mubr.msk.f32.gmra.mxu1 %vm787_vm2, %v7744_v37 }
0x1df2   :  { %6150 = vmatprep.mubr.msk.f32.mxu1 %vm787_vm2, %v7928_v18 }
0x1ead   :  { %v6108_v3 = vpop.f32.mrf.mxu1 }
0x1eae   :  { %v4065_v17 = vadd.f32 %v6108_v3, %v7935_v42  ;;  %v7996_v3 = vld [vmem:[%s8300_s6 + $0x58] sm:$0xff] }
0x1eaf   :  { %v4059_v13 = vpop.f32.mrf.mxu1 }
0x1eb0   :  { %6488 = vtanh.f32 %v4065_v17  ;;  %v4060_v37 = vadd.f32 %v7935_v42, %v4059_v13  ;;  %v5327_v9 = vmul.f32 -1.442695, %v4065_v17 }
0x1eb1   :  { %v6111_v20 = vpop.f32.mrf.mxu1 }
0x1eb2   :  { %v4075_v41 = vadd.f32 %v6111_v20, %v7935_v42  ;;  %6490 = vtanh.f32 %v4060_v37  ;;  %v5326_v49 = vmul.f32 -1.442695, %v4060_v37 }
0x1eb3   :  { %v4069_v25 = vpop.f32.mrf.mxu1 }
0x1eb4   :  { %v4070_v39 = vadd.f32 %v7935_v42, %v4069_v25  ;;  %6492 = vtanh.f32 %v4075_v41  ;;  %v5329_v56 = vmul.f32 -1.442695, %v4075_v41 }
0x1eb6   :  { %6494 = vtanh.f32 %v4070_v39  ;;  %v5328_v52 = vmul.f32 -1.442695, %v4070_v39 }
0x1eb7   :  { %6496 = vpow2.f32 %v5327_v9  ;;  %v8026_v9 = vld [vmem:[%s8300_s6 + $0x10] sm:$0xff] }
0x1eb8   :  { %6498 = vpow2.f32 %v5326_v49 }
0x1eb9   :  { %6500 = vpow2.f32 %v5329_v56 }
0x1eba   :  { %6502 = vpow2.f32 %v5328_v52 }
0x1ebd   :  { %v6489_v48 = vpop.eup %6488 }
0x1ebe   :  { %4116 = vrot.lane.b32.xlu1 %v6489_v48, %s6615_s14 }
0x1ebf   :  { %v6491_v46 = vpop.eup %6490 }
0x1ec0   :  { %4114 = vrot.lane.b32.xlu0 %v6491_v46, %s6615_s14  ;;  %v8008_v46 = vld [vmem:[%s8300_s6 + $0x40] sm:$0xff] }
0x1ec1   :  { %v6493_v23 = vpop.eup %6492 }
0x1ec2   :  { %4120 = vrot.lane.b32.xlu1 %v6493_v23, %s6615_s14  ;;  %v8017_v23 = vld [vmem:[%s8300_s6 + $0x28] sm:$0xff] }
0x1ec3   :  { %v6495_v27 = vpop.eup %6494 }
0x1ec4   :  { %4118 = vrot.lane.b32.xlu0 %v6495_v27, %s6615_s14  ;;  %v6497_v24 = vpop.eup %6496 }
0x1ec5   :  { %v6499_v6 = vpop.eup %6498  ;;  %v4091_v16 = vadd.f32 1.0, %v6497_v24 }
0x1ec6   :  { %v6501_v58 = vpop.eup %6500  ;;  %v4090_v50 = vadd.f32 1.0, %v6499_v6 }
0x1ec7   :  { %v6503_v28 = vpop.eup %6502  ;;  %6504 = vrcp.f32 %v4091_v16  ;;  %v4093_v5 = vadd.f32 1.0, %v6501_v58 }
0x1ec8   :  { %6506 = vrcp.f32 %v4090_v50  ;;  %v4092_v4 = vadd.f32 1.0, %v6503_v28  ;;  %v4188_v50 = vlaneseq }
0x1ec9   :  { %6508 = vrcp.f32 %v4093_v5 }
0x1eca   :  { %6510 = vrcp.f32 %v4092_v4  ;;  %v4189_v4 = vshrl.u32 %v4188_v50, 7 }
0x1ed4   :  { %v6505_v53 = vpop.eup %6504 }
0x1ed5   :  { %v6507_v0 = vpop.eup %6506  ;;  %v4107_v22 = vmul.f32 %v6505_v53, %v7848_v8 }
0x1ed6   :  { %v6509_v30 = vpop.eup %6508  ;;  %v4106_v36 = vmul.f32 %v6507_v0, %v7852_v15  ;;  %v4184_v15 = vld [vmem:[%s8300_s6 + $0x50] sm:$0xff] }
0x1ed7   :  { %v6511_v47 = vpop.eup %6510  ;;  %v4109_v26 = vmul.f32 %v6509_v30, %v7856_v38  ;;  %v4183_v38 = vld [vmem:[%s8300_s6 + $0x48] sm:$0xff]  ;;  %4247 = vmatprep.subr.mxu0 %v4184_v15 }
0x1ed8   :  { %v4108_v51 = vmul.f32 %v6511_v47, %v7860_v21  ;;  %v4180_v21 = vld [vmem:[%s8300_s6 + $0x30] sm:$0xff]  ;;  %4248 = vmatpush1.msra.mxu0 %v4183_v38 }
0x1ed9   :  { %4249 = vmatprep.subr.mxu0 %v4181_v40 }
0x1eda   :  { %4250 = vmatpush1.msra.mxu0 %v4180_v21 }
0x1edb   :  { %4251 = vmatprep.subr.mxu0 %v4178_v29 }
0x1edc   :  { %4252 = vmatpush1.msra.mxu0 %v4177_v61 }
0x1edd   :  { %4253 = vmatprep.subr.mxu0 %v4175_v33 }
0x1ede   :  { %4254 = vmatpush1.msra.mxu0 %v4174_v45 }
0x1edf   :  { %6112 = vmatprep.subr.mxu0 %v7996_v3 }
0x1f30   :  { %v4117_v2 = vpop.permute.xlu1 %4116 }
0x1f31   :  { %v4127_v10 = vmul.f32 %v6505_v53, %v4117_v2  ;;  %v4198_v2 = vsub.s32 2, %v4189_v4 }
0x1f32   :  { %v4115_v19 = vpop.permute.xlu0 %4114 }
0x1f33   :  { %4136 = vrot.lane.b32.xlu1 %v4127_v10, %s6615_s14  ;;  %v4126_v11 = vmul.f32 %v6507_v0, %v4115_v19 }
0x1f34   :  { %v4121_v55 = vpop.permute.xlu1 %4120 }
0x1f35   :  { %v4129_v62 = vmul.f32 %v6509_v30, %v4121_v55  ;;  %4134 = vrot.lane.b32.xlu0 %v4126_v11, %s6615_s14  ;;  %v4194_v11 = vsub.s32 1, %v4189_v4 }
0x1f36   :  { %v4119_v7 = vpop.permute.xlu0 %4118 }
0x1f37   :  { %v4128_v14 = vmul.f32 %v6511_v47, %v4119_v7  ;;  %4140 = vrot.lane.b32.xlu1 %v4129_v62, %s6615_s14  ;;  %v4190_v7 = vsub.s32 0, %v4189_v4 }
0x1f39   :  { %4138 = vrot.lane.b32.xlu0 %v4128_v14, %s6615_s14 }
0x1fa5   :  { %v4137_v32 = vpop.permute.xlu1 %4136 }
0x1fa6   :  { %v7950_v1 = vadd.f32 %v4137_v32, %v4107_v22 }
0x1fa7   :  { %v4135_v35 = vpop.permute.xlu0 %4134 }
0x1fa8   :  { %6512 = vtanh.f32 %v7950_v1  ;;  %v7954_v57 = vadd.f32 %v4135_v35, %v4106_v36 }
0x1fa9   :  { %v4141_v60 = vpop.permute.xlu1 %4140 }
0x1faa   :  { %6514 = vtanh.f32 %v7954_v57  ;;  %v7958_v59 = vadd.f32 %v4141_v60, %v4109_v26 }
0x1fab   :  { %v4139_v8 = vpop.permute.xlu0 %4138 }
0x1fac   :  { %6516 = vtanh.f32 %v7958_v59  ;;  %v7962_v63 = vadd.f32 %v4139_v8, %v4108_v51 }
0x1fae   :  { %6518 = vtanh.f32 %v7962_v63 }
0x1fb5   :  { %v6513_v34 = vpop.eup %6512 }
0x1fb6   :  { %4160 = vrot.lane.b32.xlu1 %v6513_v34, %s6615_s14  ;;  %v8078_v34 = vld [vmem:[%s8295_s0 + $0x8] sm:$0xff] }
0x1fb7   :  { %v6515_v31 = vpop.eup %6514 }
0x1fb8   :  { %4158 = vrot.lane.b32.xlu0 %v6515_v31, %s6615_s14 }
0x1fb9   :  { %v6517_v43 = vpop.eup %6516 }
0x1fba   :  { %4164 = vrot.lane.b32.xlu1 %v6517_v43, %s6615_s14 }
0x1fbb   :  { %v6519_v44 = vpop.eup %6518 }
0x1fbc   :  { %4162 = vrot.lane.b32.xlu0 %v6519_v44, %s6615_s14 }
0x2028   :  { %v4161_v12 = vpop.permute.xlu1 %4160 }
0x2029   :  { %v4171_v17 = vmul.f32 %v6505_v53, %v4161_v12 }
0x202a   :  { %v4159_v13 = vpop.permute.xlu0 %4158 }
0x202b   :  { %4209 = vrot.lane.b32.xlu1 %v4171_v17, %s6616_s17  ;;  %v4170_v37 = vmul.f32 %v6507_v0, %v4159_v13  ;;  %v4186_v0 = vld [vmem:[%s8301_s7] sm:$0x7] }
0x202c   :  { %v4165_v20 = vpop.permute.xlu1 %4164  ;;  %v8060_v14 = vrot.slane %v4186_v0, %v4194_v11  ;;  %v8064_v36 = vrot.slane %v4186_v0, %v4190_v7 }
0x202d   :  { %v4173_v41 = vmul.f32 %v6509_v30, %v4165_v20  ;;  %4207 = vrot.lane.b32.xlu0 %v4170_v37, %s6616_s17  ;;  %v8057_v30 = vrot.slane %v4186_v0, %v4198_v2 }
0x202e   :  { %v4163_v25 = vpop.permute.xlu0 %4162 }
0x202f   :  { %v4172_v39 = vmul.f32 %v6511_v47, %v4163_v25  ;;  %4213 = vrot.lane.b32.xlu1 %v4173_v41, %s6616_s17 }
0x2031   :  { %4211 = vrot.lane.b32.xlu0 %v4172_v39, %s6616_s17 }
0x209d   :  { %v8020_v27 = vpop.permute.xlu1 %4209 }
0x209f   :  { %v8003_v48 = vpop.permute.xlu0 %4207 }
0x20a0   :  { %5330 = vmatmul.mubr.msk.f32.vlgmr.msra.gmra.mxu0 %vm1017_vm3, %v8003_v48 }
0x20a1   :  { %4293 = vmatprep.mubr.f32.mxu0 %v8323_v54  ;;  %6113 = vmatpush3.msra.mxu0 %v7996_v3  ;;  %v8040_v56 = vpop.permute.xlu1 %4213 }
0x20a2   :  { %6114 = vmatprep.subr.mxu0 %v8008_v46 }
0x20a3   :  { %6115 = vmatpush3.msra.mxu0 %v8008_v46  ;;  %v8034_v49 = vpop.permute.xlu0 %4211 }
0x20a4   :  { %5331 = vmatmul.mubr.msk.f32.gmra.mxu0 %vm1017_vm3, %v8020_v27  ;;  %6116 = vmatprep.subr.mxu0 %v8017_v23 }
0x20a5   :  { %4299 = vmatprep.mubr.f32.mxu0 %v8323_v54  ;;  %6117 = vmatpush3.msra.mxu0 %v8017_v23 }
0x20a6   :  { %6118 = vmatprep.subr.mxu0 %v8026_v9 }
0x20a7   :  { %6119 = vmatpush3.msra.mxu0 %v8026_v9 }
0x20a8   :  { %5332 = vmatmul.mubr.msk.f32.gmra.mxu0 %vm1017_vm3, %v8034_v49  ;;  %4622 = vmatprep.subr.mxu0 %v4184_v15 }
0x20a9   :  { %4305 = vmatprep.mubr.f32.mxu0 %v8323_v54 }
0x20ac   :  { %5333 = vmatmul.mubr.msk.f32.gmra.mxu0 %vm1017_vm3, %v8040_v56 }
0x20ad   :  { %6120 = vmatprep.mubr.msk.f32.mxu0 %vm1017_vm3, %v8003_v48 }
0x20b0   :  { %6121 = vmatmul.mubr.msk.f32.vlgmr.msra.gmra.mxu0 %vm1017_vm3, %v8020_v27 }
0x20b1   :  { %6123 = vmatprep.mubr.msk.f32.mxu0 %vm1017_vm3, %v8034_v49  ;;  %4623 = vmatpush1.msra.mxu0 %v4183_v38 }
0x20b2   :  { %4624 = vmatprep.subr.mxu0 %v4181_v40 }
0x20b3   :  { %4625 = vmatpush1.msra.mxu0 %v4180_v21 }
0x20b4   :  { %6124 = vmatmul.mubr.msk.f32.gmra.mxu0 %vm1017_vm3, %v8040_v56  ;;  %4626 = vmatprep.subr.mxu0 %v4178_v29  ;;  %v8085_v29 = vld [vmem:[%s8295_s0 + $0x10] sm:$0xff] }
0x20b5   :  { %4627 = vmatpush1.msra.mxu0 %v4177_v61  ;;  %4662 = vmatprep.mubr.f32.mxu0 %v8323_v54  ;;  %v8092_v61 = vld [vmem:[%s8295_s0 + $0x18] sm:$0xff] }
0x20b6   :  { %4628 = vmatprep.subr.mxu0 %v4175_v33 }
0x20b7   :  { %4629 = vmatpush1.msra.mxu0 %v4174_v45 }
0x20b8   :  { %6156 = vmatprep.subr.mxu0 %v7996_v3 }
0x2160   :  { %v4289_v52 = vpop.f32.mrf.mxu0 }
0x2161   :  { %v4290_v21 = vadd.f32 %v4289_v52, %v8064_v36 }
0x2162   :  { %v4291_v24 = vpop.f32.mrf.mxu0 }
0x2163   :  { %v4292_v38 = vadd.f32 %v4291_v24, %v8060_v14 }
0x2164   :  { %v4295_v6 = vpop.f32.mrf.mxu0 }
0x2165   :  { %v4296_v40 = vadd.f32 %v4295_v6, %v8064_v36 }
0x2166   :  { %v4297_v16 = vpop.f32.mrf.mxu0 }
0x2167   :  { %v4298_v15 = vadd.f32 %v4297_v16, %v8060_v14 }
0x2168   :  { %v4301_v58 = vpop.f32.mrf.mxu0 }
0x2169   :  { %v4302_v60 = vadd.f32 %v4301_v58, %v8064_v36 }
0x216a   :  { %v4303_v28 = vpop.f32.mrf.mxu0 }
0x216b   :  { %v4304_v35 = vadd.f32 %v4303_v28, %v8060_v14 }
0x216c   :  { %v4307_v5 = vpop.f32.mrf.mxu0 }
0x216d   :  { %v4308_v26 = vadd.f32 %v4307_v5, %v8064_v36 }
0x216e   :  { %v4309_v53 = vpop.f32.mrf.mxu0 }
0x216f   :  { %v4310_v32 = vadd.f32 %v4309_v53, %v8060_v14 }
0x2170   :  { %v6122_v10 = vpop.f32.mrf.mxu0 }
0x2171   :  { %v4384_v51 = vadd.f32 %v6122_v10, %v8057_v30 }
0x2172   :  { %v4378_v19 = vpop.f32.mrf.mxu0 }
0x2173   :  { %v4379_v8 = vadd.f32 %v4378_v19, %v8057_v30 }
0x2174   :  { %v6125_v55 = vpop.f32.mrf.mxu0 }
0x2175   :  { %v4394_v62 = vadd.f32 %v6125_v55, %v8057_v30 }
0x2176   :  { %v4388_v47 = vpop.f32.mrf.mxu0 }
0x2177   :  { %v4389_v22 = vadd.f32 %v4388_v47, %v8057_v30  ;;  %6126 = vmatprep.subr.mxu1 %v4394_v62 }
0x2178   :  { %6127 = vmatpush3.msra.mxu1 %v4394_v62 }
0x2179   :  { %6128 = vmatprep.subr.mxu1 %v4389_v22 }
0x217a   :  { %6129 = vmatpush3.msra.mxu1 %v4389_v22 }
0x217b   :  { %6130 = vmatprep.subr.mxu1 %v4310_v32 }
0x217c   :  { %6131 = vmatpush3.msra.mxu1 %v4310_v32 }
0x217d   :  { %6132 = vmatprep.subr.mxu1 %v4304_v35 }
0x217e   :  { %6133 = vmatpush3.msra.mxu1 %v4304_v35 }
0x217f   :  { %6134 = vmatprep.subr.mxu1 %v4308_v26 }
0x2180   :  { %6135 = vmatpush3.msra.mxu1 %v4308_v26 }
0x2181   :  { %6136 = vmatprep.subr.mxu1 %v4302_v60 }
0x2182   :  { %6137 = vmatpush3.msra.mxu1 %v4302_v60 }
0x2183   :  { %6138 = vmatprep.subr.mxu1 %v4384_v51 }
0x2184   :  { %6139 = vmatpush3.msra.mxu1 %v4384_v51 }
0x2185   :  { %6140 = vmatprep.subr.mxu1 %v4379_v8 }
0x2186   :  { %6141 = vmatpush3.msra.mxu1 %v4379_v8 }
0x2187   :  { %6142 = vmatprep.subr.mxu1 %v4298_v15 }
0x2188   :  { %6143 = vmatpush3.msra.mxu1 %v4298_v15 }
0x2189   :  { %6144 = vmatprep.subr.mxu1 %v4292_v38 }
0x218a   :  { %6145 = vmatpush3.msra.mxu1 %v4292_v38 }
0x218b   :  { %6146 = vmatprep.subr.mxu1 %v4296_v40 }
0x218c   :  { %6147 = vmatpush3.msra.mxu1 %v4296_v40 }
0x218d   :  { %6148 = vmatprep.subr.mxu1 %v4290_v21 }
0x218e   :  { %6149 = vmatpush3.msra.mxu1 %v4290_v21 }
0x218f   :  { %6151 = vmatmul.mubr.msk.f32.vlgmr.msra.gmra.mxu1 %vm787_vm2, %v8078_v34 }
0x2190   :  { %6153 = vmatprep.mubr.msk.f32.mxu1 %vm787_vm2, %v8085_v29 }
0x2193   :  { %6154 = vmatmul.mubr.msk.f32.gmra.mxu1 %vm787_vm2, %v8092_v61 }
0x2194   :  { %6194 = vmatprep.mubr.msk.f32.mxu1 %vm787_vm2, %v7928_v18 }
0x224f   :  { %v6152_v31 = vpop.f32.mrf.mxu1 }
0x2250   :  { %v4469_v43 = vadd.f32 %v6152_v31, %v7935_v42 }
0x2251   :  { %v4463_v44 = vpop.f32.mrf.mxu1 }
0x2252   :  { %6520 = vtanh.f32 %v4469_v43  ;;  %v4464_v33 = vadd.f32 %v7935_v42, %v4463_v44  ;;  %v5343_v25 = vmul.f32 -1.442695, %v4469_v43 }
0x2253   :  { %v6155_v45 = vpop.f32.mrf.mxu1 }
0x2254   :  { %v4479_v12 = vadd.f32 %v6155_v45, %v7935_v42  ;;  %6522 = vtanh.f32 %v4464_v33  ;;  %v5342_v39 = vmul.f32 -1.442695, %v4464_v33 }
0x2255   :  { %v4473_v17 = vpop.f32.mrf.mxu1 }
0x2256   :  { %v4474_v13 = vadd.f32 %v7935_v42, %v4473_v17  ;;  %6524 = vtanh.f32 %v4479_v12  ;;  %v5345_v52 = vmul.f32 -1.442695, %v4479_v12 }
0x2258   :  { %6526 = vtanh.f32 %v4474_v13  ;;  %v5344_v24 = vmul.f32 -1.442695, %v4474_v13 }
0x2259   :  { %6528 = vpow2.f32 %v5343_v25 }
0x225a   :  { %6530 = vpow2.f32 %v5342_v39 }
0x225b   :  { %6532 = vpow2.f32 %v5345_v52  ;;  %v4956_v52 = vld [vmem:[%s8302_s9 + $0x18] sm:$0xff] }
0x225c   :  { %6534 = vpow2.f32 %v5344_v24 }
0x225f   :  { %v6521_v37 = vpop.eup %6520 }
0x2260   :  { %4520 = vrot.lane.b32.xlu1 %v6521_v37, %s6615_s14 }
0x2261   :  { %v6523_v18 = vpop.eup %6522 }
0x2262   :  { %4518 = vrot.lane.b32.xlu0 %v6523_v18, %s6615_s14 }
0x2263   :  { %v6525_v20 = vpop.eup %6524 }
0x2264   :  { %4524 = vrot.lane.b32.xlu1 %v6525_v20, %s6615_s14 }
0x2265   :  { %v6527_v41 = vpop.eup %6526 }
0x2266   :  { %4522 = vrot.lane.b32.xlu0 %v6527_v41, %s6615_s14  ;;  %v6529_v6 = vpop.eup %6528 }
0x2267   :  { %v6531_v16 = vpop.eup %6530  ;;  %v4495_v58 = vadd.f32 1.0, %v6529_v6 }
0x2268   :  { %v6533_v50 = vpop.eup %6532  ;;  %v4494_v28 = vadd.f32 1.0, %v6531_v16 }
0x2269   :  { %v6535_v5 = vpop.eup %6534  ;;  %6536 = vrcp.f32 %v4495_v58  ;;  %v4497_v4 = vadd.f32 1.0, %v6533_v50 }
0x226a   :  { %6538 = vrcp.f32 %v4494_v28  ;;  %v4496_v53 = vadd.f32 1.0, %v6535_v5 }
0x226b   :  { %6540 = vrcp.f32 %v4497_v4 }
0x226c   :  { %6542 = vrcp.f32 %v4496_v53 }
0x2276   :  { %v6537_v2 = vpop.eup %6536 }
0x2277   :  { %v6539_v19 = vpop.eup %6538  ;;  %v4511_v26 = vmul.f32 %v6537_v2, %v7950_v1 }
0x2278   :  { %v6541_v62 = vpop.eup %6540  ;;  %v4510_v8 = vmul.f32 %v6539_v19, %v7954_v57 }
0x2279   :  { %v6543_v22 = vpop.eup %6542  ;;  %v4513_v40 = vmul.f32 %v6541_v62, %v7958_v59 }
0x227a   :  { %v4512_v43 = vmul.f32 %v6543_v22, %v7962_v63 }
0x22d2   :  { %v4521_v10 = vpop.permute.xlu1 %4520 }
0x22d3   :  { %v4531_v0 = vmul.f32 %v6537_v2, %v4521_v10 }
0x22d4   :  { %v4519_v11 = vpop.permute.xlu0 %4518 }
0x22d5   :  { %4540 = vrot.lane.b32.xlu1 %v4531_v0, %s6615_s14  ;;  %v4530_v55 = vmul.f32 %v6539_v19, %v4519_v11 }
0x22d6   :  { %v4525_v47 = vpop.permute.xlu1 %4524 }
0x22d7   :  { %v4533_v7 = vmul.f32 %v6541_v62, %v4525_v47  ;;  %4538 = vrot.lane.b32.xlu0 %v4530_v55, %s6615_s14 }
0x22d8   :  { %v4523_v32 = vpop.permute.xlu0 %4522 }
0x22d9   :  { %v4532_v35 = vmul.f32 %v6543_v22, %v4523_v32  ;;  %4544 = vrot.lane.b32.xlu1 %v4533_v7, %s6615_s14 }
0x22db   :  { %4542 = vrot.lane.b32.xlu0 %v4532_v35, %s6615_s14 }
0x2347   :  { %v4541_v60 = vpop.permute.xlu1 %4540 }
0x2348   :  { %v8111_v51 = vadd.f32 %v4541_v60, %v4511_v26 }
0x2349   :  { %v4539_v15 = vpop.permute.xlu0 %4538 }
0x234a   :  { %6544 = vtanh.f32 %v8111_v51  ;;  %v8115_v38 = vadd.f32 %v4539_v15, %v4510_v8 }
0x234b   :  { %v4545_v21 = vpop.permute.xlu1 %4544 }
0x234c   :  { %6546 = vtanh.f32 %v8115_v38  ;;  %v8119_v31 = vadd.f32 %v4545_v21, %v4513_v40 }
0x234d   :  { %v4543_v1 = vpop.permute.xlu0 %4542 }
0x234e   :  { %6548 = vtanh.f32 %v8119_v31  ;;  %v8123_v44 = vadd.f32 %v4543_v1, %v4512_v43 }
0x2350   :  { %6550 = vtanh.f32 %v8123_v44 }
0x2357   :  { %v6545_v57 = vpop.eup %6544 }
0x2358   :  { %4564 = vrot.lane.b32.xlu1 %v6545_v57, %s6615_s14 }
0x2359   :  { %v6547_v33 = vpop.eup %6546 }
0x235a   :  { %4562 = vrot.lane.b32.xlu0 %v6547_v33, %s6615_s14 }
0x235b   :  { %v6549_v59 = vpop.eup %6548 }
0x235c   :  { %4568 = vrot.lane.b32.xlu1 %v6549_v59, %s6615_s14 }
0x235d   :  { %v6551_v45 = vpop.eup %6550 }
0x235e   :  { %4566 = vrot.lane.b32.xlu0 %v6551_v45, %s6615_s14 }
0x23ca   :  { %v4565_v63 = vpop.permute.xlu1 %4564 }
0x23cb   :  { %v4575_v12 = vmul.f32 %v6537_v2, %v4565_v63  ;;  %v8184_v2 = vld [vmem:[%s8303_s10] ss:$0 sm:$0xff] }
0x23cc   :  { %v4563_v17 = vpop.permute.xlu0 %4562 }
0x23cd   :  { %4584 = vrot.lane.b32.xlu1 %v4575_v12, %s6616_s17  ;;  %v4574_v13 = vmul.f32 %v6539_v19, %v4563_v17 }
0x23ce   :  { %v4569_v37 = vpop.permute.xlu1 %4568 }
0x23cf   :  { %v4577_v18 = vmul.f32 %v6541_v62, %v4569_v37  ;;  %4582 = vrot.lane.b32.xlu0 %v4574_v13, %s6616_s17 }
0x23d0   :  { %v4567_v20 = vpop.permute.xlu0 %4566 }
0x23d1   :  { %v4576_v41 = vmul.f32 %v6543_v22, %v4567_v20  ;;  %4588 = vrot.lane.b32.xlu1 %v4577_v18, %s6616_s17 }
0x23d3   :  { %4586 = vrot.lane.b32.xlu0 %v4576_v41, %s6616_s17 }
0x243f   :  { %v4585_v39 = vpop.permute.xlu1 %4584 }
0x2441   :  { %v4583_v25 = vpop.permute.xlu0 %4582 }
0x2442   :  { %5346 = vmatmul.mubr.msk.f32.vlgmr.msra.gmra.mxu0 %vm1017_vm3, %v4583_v25 }
0x2443   :  { %4668 = vmatprep.mubr.f32.mxu0 %v8323_v54  ;;  %6157 = vmatpush3.msra.mxu0 %v7996_v3 }
0x2444   :  { %6158 = vmatprep.subr.mxu0 %v8008_v46 }
0x2445   :  { %6159 = vmatpush3.msra.mxu0 %v8008_v46  ;;  %v4587_v3 = vpop.permute.xlu0 %4586  ;;  %v4589_v46 = vpop.permute.xlu1 %4588 }
0x2446   :  { %5347 = vmatmul.mubr.msk.f32.gmra.mxu0 %vm1017_vm3, %v4585_v39  ;;  %6160 = vmatprep.subr.mxu0 %v8017_v23 }
0x2447   :  { %4674 = vmatprep.mubr.f32.mxu0 %v8323_v54  ;;  %6161 = vmatpush3.msra.mxu0 %v8017_v23  ;;  %v4955_v23 = vld [vmem:[%s8302_s9 + $0x10] sm:$0xff] }
0x2448   :  { %6162 = vmatprep.subr.mxu0 %v8026_v9 }
0x2449   :  { %6163 = vmatpush3.msra.mxu0 %v8026_v9  ;;  %v4954_v9 = vld [vmem:[%s8302_s9 + $0x8] sm:$0xff] }
0x244a   :  { %5348 = vmatmul.mubr.msk.f32.gmra.mxu0 %vm1017_vm3, %v4587_v3  ;;  %6200 = vmatprep.subr.mxu0 %v4956_v52 }
0x244b   :  { %4680 = vmatprep.mubr.f32.mxu0 %v8323_v54  ;;  %v4953_v54 = vld [vmem:[%s8302_s9] sm:$0xff] }
0x244e   :  { %5349 = vmatmul.mubr.msk.f32.gmra.mxu0 %vm1017_vm3, %v4589_v46 }
0x244f   :  { %6164 = vmatprep.mubr.msk.f32.mxu0 %vm1017_vm3, %v4583_v25 }
0x2452   :  { %6165 = vmatmul.mubr.msk.f32.vlgmr.msra.gmra.mxu0 %vm1017_vm3, %v4585_v39 }
0x2453   :  { %6167 = vmatprep.mubr.msk.f32.mxu0 %vm1017_vm3, %v4587_v3  ;;  %6201 = vmatpush3.msra.mxu0 %v4956_v52 }
0x2454   :  { %6202 = vmatprep.subr.mxu0 %v4955_v23 }
0x2455   :  { %6203 = vmatpush3.msra.mxu0 %v4955_v23 }
0x2456   :  { %6168 = vmatmul.mubr.msk.f32.gmra.mxu0 %vm1017_vm3, %v4589_v46  ;;  %6204 = vmatprep.subr.mxu0 %v4954_v9 }
0x2457   :  { %6205 = vmatpush3.msra.mxu0 %v4954_v9  ;;  %6208 = vmatprep.mubr.msk.f32.mxu0 %vm1017_vm3, %v8003_v48 }
0x2458   :  { %6206 = vmatprep.subr.mxu0 %v4953_v54 }
0x2459   :  { %6207 = vmatpush3.msra.mxu0 %v4953_v54 }
0x245a   :  { %6209 = vmatmul.mubr.msk.f32.vlgmr.msra.gmra.mxu0 %vm1017_vm3, %v8020_v27 }
0x245b   :  { %6211 = vmatprep.mubr.msk.f32.mxu0 %vm1017_vm3, %v8034_v49 }
0x245e   :  { %6212 = vmatmul.mubr.msk.f32.gmra.mxu0 %vm1017_vm3, %v8040_v56 }
0x245f   :  { %6214 = vmatprep.mubr.msk.f32.mxu0 %vm1017_vm3, %v4583_v25 }
0x2462   :  { %6215 = vmatmul.mubr.msk.f32.gmra.mxu0 %vm1017_vm3, %v4585_v39 }
0x2463   :  { %6217 = vmatprep.mubr.msk.f32.mxu0 %vm1017_vm3, %v4587_v3 }
0x2466   :  { %6218 = vmatmul.mubr.msk.f32.gmra.mxu0 %vm1017_vm3, %v4589_v46 }
0x2502   :  { %v8176_v48 = vpop.f32.mrf.mxu0 }
0x2504   :  { %v4666_v24 = vpop.f32.mrf.mxu0 }
0x2505   :  { %v4667_v45 = vadd.f32 %v4666_v24, %v8060_v14 }
0x2506   :  { %v8178_v6 = vpop.f32.mrf.mxu0 }
0x2507   :  { %v4671_v12 = vadd.f32 %v8178_v6, %v8064_v36 }
0x2508   :  { %v4672_v27 = vpop.f32.mrf.mxu0 }
0x2509   :  { %v4673_v33 = vadd.f32 %v4672_v27, %v8060_v14 }
0x250a   :  { %v4676_v16 = vpop.f32.mrf.mxu0 }
0x250b   :  { %v4677_v26 = vadd.f32 %v4676_v16, %v8064_v36 }
0x250c   :  { %v4678_v58 = vpop.f32.mrf.mxu0 }
0x250d   :  { %v4679_v62 = vadd.f32 %v4678_v58, %v8060_v14 }
0x250e   :  { %v4682_v49 = vpop.f32.mrf.mxu0 }
0x250f   :  { %v4683_v22 = vadd.f32 %v4682_v49, %v8064_v36 }
0x2510   :  { %v4684_v50 = vpop.f32.mrf.mxu0 }
0x2511   :  { %v4685_v19 = vadd.f32 %v4684_v50, %v8060_v14  ;;  %v4665_v14 = vadd.f32 %v8176_v48, %v8064_v36 }
0x2512   :  { %v6166_v28 = vpop.f32.mrf.mxu0 }
0x2513   :  { %v4759_v15 = vadd.f32 %v6166_v28, %v8057_v30 }
0x2514   :  { %v4753_v56 = vpop.f32.mrf.mxu0 }
0x2515   :  { %v4754_v43 = vadd.f32 %v4753_v56, %v8057_v30 }
0x2516   :  { %v6169_v5 = vpop.f32.mrf.mxu0 }
0x2517   :  { %v4769_v4 = vadd.f32 %v6169_v5, %v8057_v30 }
0x2518   :  { %v4763_v53 = vpop.f32.mrf.mxu0 }
0x2519   :  { %v4764_v10 = vadd.f32 %v4763_v53, %v8057_v30  ;;  %6170 = vmatprep.subr.mxu1 %v4769_v4 }
0x251a   :  { %6171 = vmatpush3.msra.mxu1 %v4769_v4  ;;  %v6210_v0 = vpop.f32.mrf.mxu0 }
0x251b   :  { %v5056_v11 = vadd.f32 %v6210_v0, %v8184_v2  ;;  %6172 = vmatprep.subr.mxu1 %v4764_v10 }
0x251c   :  { %6173 = vmatpush3.msra.mxu1 %v4764_v10  ;;  %v5050_v55 = vpop.f32.mrf.mxu0 }
0x251d   :  { %5110 = vst.msk [vmem:[%s8304_s11 + $0x8] sm:$0xff] %vm75_vm1, %v5056_v11  ;;  %v5051_v47 = vadd.f32 %v8184_v2, %v5050_v55  ;;  %6174 = vmatprep.subr.mxu1 %v4685_v19 }
0x251e   :  { %6175 = vmatpush3.msra.mxu1 %v4685_v19  ;;  %v6213_v7 = vpop.f32.mrf.mxu0 }
0x251f   :  { %5109 = vst.msk [vmem:[%s8304_s11] sm:$0xff] %vm75_vm1, %v5051_v47  ;;  %v5066_v32 = vadd.f32 %v6213_v7, %v8184_v2  ;;  %6176 = vmatprep.subr.mxu1 %v4679_v62 }
0x2520   :  { %6177 = vmatpush3.msra.mxu1 %v4679_v62  ;;  %v5060_v35 = vpop.f32.mrf.mxu0 }
0x2521   :  { %5112 = vst.msk [vmem:[%s8304_s11 + $0x18] sm:$0xff] %vm75_vm1, %v5066_v32  ;;  %v5061_v60 = vadd.f32 %v8184_v2, %v5060_v35  ;;  %6178 = vmatprep.subr.mxu1 %v4683_v22 }
0x2522   :  { %6179 = vmatpush3.msra.mxu1 %v4683_v22  ;;  %v6216_v8 = vpop.f32.mrf.mxu0 }
0x2523   :  { %5111 = vst.msk [vmem:[%s8304_s11 + $0x10] sm:$0xff] %vm75_vm1, %v5061_v60  ;;  %v5076_v40 = vadd.f32 %v6216_v8, %v8184_v2  ;;  %6180 = vmatprep.subr.mxu1 %v4677_v26 }
0x2524   :  { %6181 = vmatpush3.msra.mxu1 %v4677_v26  ;;  %v5070_v21 = vpop.f32.mrf.mxu0 }
0x2525   :  { %5114 = vst.msk [vmem:[%s8304_s11 + $0x28] sm:$0xff] %vm75_vm1, %v5076_v40  ;;  %v5071_v1 = vadd.f32 %v8184_v2, %v5070_v21  ;;  %6182 = vmatprep.subr.mxu1 %v4759_v15 }
0x2526   :  { %6183 = vmatpush3.msra.mxu1 %v4759_v15  ;;  %v6219_v57 = vpop.f32.mrf.mxu0 }
0x2527   :  { %5113 = vst.msk [vmem:[%s8304_s11 + $0x20] sm:$0xff] %vm75_vm1, %v5071_v1  ;;  %v5086_v59 = vadd.f32 %v6219_v57, %v8184_v2  ;;  %6184 = vmatprep.subr.mxu1 %v4754_v43 }
0x2528   :  { %6185 = vmatpush3.msra.mxu1 %v4754_v43  ;;  %v5080_v30 = vpop.f32.mrf.mxu0 }
0x2529   :  { %5116 = vst.msk [vmem:[%s8304_s11 + $0x38] sm:$0xff] %vm75_vm1, %v5086_v59  ;;  %v5081_v63 = vadd.f32 %v8184_v2, %v5080_v30  ;;  %6186 = vmatprep.subr.mxu1 %v4673_v33 }
0x252a   :  { %6187 = vmatpush3.msra.mxu1 %v4673_v33 }
0x252b   :  { %5115 = vst.msk [vmem:[%s8304_s11 + $0x30] sm:$0xff] %vm75_vm1, %v5081_v63  ;;  %6188 = vmatprep.subr.mxu1 %v4667_v45 }
0x252c   :  { %6189 = vmatpush3.msra.mxu1 %v4667_v45 }
0x252d   :  { %6190 = vmatprep.subr.mxu1 %v4671_v12 }
0x252e   :  { %6191 = vmatpush3.msra.mxu1 %v4671_v12 }
0x252f   :  { %6192 = vmatprep.subr.mxu1 %v4665_v14 }
0x2530   :  { %6193 = vmatpush3.msra.mxu1 %v4665_v14 }
0x2531   :  { %6195 = vmatmul.mubr.msk.f32.vlgmr.msra.gmra.mxu1 %vm787_vm2, %v8078_v34 }
0x2532   :  { %6197 = vmatprep.mubr.msk.f32.mxu1 %vm787_vm2, %v8085_v29 }
0x2535   :  { %6198 = vmatmul.mubr.msk.f32.gmra.mxu1 %vm787_vm2, %v8092_v61 }
0x25f1   :  { %v6196_v17 = vpop.f32.mrf.mxu1 }
0x25f2   :  { %v4844_v13 = vadd.f32 %v6196_v17, %v7935_v42 }
0x25f3   :  { %v4838_v37 = vpop.f32.mrf.mxu1 }
0x25f4   :  { %6552 = vtanh.f32 %v4844_v13  ;;  %v4839_v36 = vadd.f32 %v7935_v42, %v4838_v37  ;;  %v5359_v52 = vmul.f32 -1.442695, %v4844_v13 }
0x25f5   :  { %v6199_v18 = vpop.f32.mrf.mxu1 }
0x25f6   :  { %v4854_v20 = vadd.f32 %v6199_v18, %v7935_v42  ;;  %6554 = vtanh.f32 %v4839_v36  ;;  %v5358_v3 = vmul.f32 -1.442695, %v4839_v36 }
0x25f7   :  { %v4848_v41 = vpop.f32.mrf.mxu1 }
0x25f8   :  { %v4849_v34 = vadd.f32 %v7935_v42, %v4848_v41  ;;  %6556 = vtanh.f32 %v4854_v20  ;;  %v5361_v46 = vmul.f32 -1.442695, %v4854_v20 }
0x25fa   :  { %6558 = vtanh.f32 %v4849_v34  ;;  %v5360_v42 = vmul.f32 -1.442695, %v4849_v34 }
0x25fb   :  { %6560 = vpow2.f32 %v5359_v52 }
0x25fc   :  { %6562 = vpow2.f32 %v5358_v3 }
0x25fd   :  { %6564 = vpow2.f32 %v5361_v46 }
0x25fe   :  { %6566 = vpow2.f32 %v5360_v42 }
0x2601   :  { %v6553_v29 = vpop.eup %6552 }
0x2602   :  { %4895 = vrot.lane.b32.xlu1 %v6553_v29, %s6615_s14 }
0x2603   :  { %v6555_v61 = vpop.eup %6554 }
0x2604   :  { %4893 = vrot.lane.b32.xlu0 %v6555_v61, %s6615_s14 }
0x2605   :  { %v6557_v25 = vpop.eup %6556 }
0x2606   :  { %4899 = vrot.lane.b32.xlu1 %v6557_v25, %s6615_s14 }
0x2607   :  { %v6559_v39 = vpop.eup %6558 }
0x2608   :  { %4897 = vrot.lane.b32.xlu0 %v6559_v39, %s6615_s14  ;;  %v6561_v23 = vpop.eup %6560 }
0x2609   :  { %v6563_v9 = vpop.eup %6562  ;;  %v4870_v54 = vadd.f32 1.0, %v6561_v23 }
0x260a   :  { %v6565_v48 = vpop.eup %6564  ;;  %v4869_v24 = vadd.f32 1.0, %v6563_v9 }
0x260b   :  { %v6567_v6 = vpop.eup %6566  ;;  %6568 = vrcp.f32 %v4870_v54  ;;  %v4872_v27 = vadd.f32 1.0, %v6565_v48 }
0x260c   :  { %6570 = vrcp.f32 %v4869_v24  ;;  %v4871_v16 = vadd.f32 1.0, %v6567_v6 }
0x260d   :  { %6572 = vrcp.f32 %v4872_v27 }
0x260e   :  { %6574 = vrcp.f32 %v4871_v16 }
0x2618   :  { %v6569_v58 = vpop.eup %6568 }
0x2619   :  { %v6571_v28 = vpop.eup %6570  ;;  %v4886_v55 = vmul.f32 %v6569_v58, %v8111_v51 }
0x261a   :  { %v6573_v4 = vpop.eup %6572  ;;  %v4885_v7 = vmul.f32 %v6571_v28, %v8115_v38 }
0x261b   :  { %v6575_v0 = vpop.eup %6574  ;;  %v4888_v35 = vmul.f32 %v6573_v4, %v8119_v31 }
0x261c   :  { %v4887_v8 = vmul.f32 %v6575_v0, %v8123_v44 }
0x2674   :  { %v4896_v49 = vpop.permute.xlu1 %4895 }
0x2675   :  { %v4906_v50 = vmul.f32 %v6569_v58, %v4896_v49 }
0x2676   :  { %v4894_v56 = vpop.permute.xlu0 %4893 }
0x2677   :  { %4915 = vrot.lane.b32.xlu1 %v4906_v50, %s6615_s14  ;;  %v4905_v5 = vmul.f32 %v6571_v28, %v4894_v56 }
0x2678   :  { %v4900_v53 = vpop.permute.xlu1 %4899 }
0x2679   :  { %v4908_v10 = vmul.f32 %v6573_v4, %v4900_v53  ;;  %4913 = vrot.lane.b32.xlu0 %v4905_v5, %s6615_s14 }
0x267a   :  { %v4898_v19 = vpop.permute.xlu0 %4897 }
0x267b   :  { %v4907_v11 = vmul.f32 %v6575_v0, %v4898_v19  ;;  %4919 = vrot.lane.b32.xlu1 %v4908_v10, %s6615_s14 }
0x267d   :  { %4917 = vrot.lane.b32.xlu0 %v4907_v11, %s6615_s14 }
0x26e9   :  { %v4916_v62 = vpop.permute.xlu1 %4915 }
0x26ea   :  { %v4926_v47 = vadd.f32 %v4916_v62, %v4886_v55 }
0x26eb   :  { %v4914_v22 = vpop.permute.xlu0 %4913 }
0x26ec   :  { %6576 = vtanh.f32 %v4926_v47  ;;  %v4925_v32 = vadd.f32 %v4914_v22, %v4885_v7 }
0x26ed   :  { %v4920_v26 = vpop.permute.xlu1 %4919 }
0x26ee   :  { %6578 = vtanh.f32 %v4925_v32  ;;  %v4928_v60 = vadd.f32 %v4920_v26, %v4888_v35 }
0x26ef   :  { %v4918_v15 = vpop.permute.xlu0 %4917 }
0x26f0   :  { %6580 = vtanh.f32 %v4928_v60  ;;  %v4927_v40 = vadd.f32 %v4918_v15, %v4887_v8 }
0x26f2   :  { %6582 = vtanh.f32 %v4927_v40 }
0x26f9   :  { %v6577_v21 = vpop.eup %6576 }
0x26fa   :  { %4939 = vrot.lane.b32.xlu1 %v6577_v21, %s6615_s14 }
0x26fb   :  { %v6579_v51 = vpop.eup %6578 }
0x26fc   :  { %4937 = vrot.lane.b32.xlu0 %v6579_v51, %s6615_s14 }
0x26fd   :  { %v6581_v38 = vpop.eup %6580 }
0x26fe   :  { %4943 = vrot.lane.b32.xlu1 %v6581_v38, %s6615_s14 }
0x26ff   :  { %v6583_v43 = vpop.eup %6582 }
0x2700   :  { %4941 = vrot.lane.b32.xlu0 %v6583_v43, %s6615_s14 }
0x276c   :  { %v4940_v31 = vpop.permute.xlu1 %4939 }
0x276d   :  { %v4950_v1 = vmul.f32 %v6569_v58, %v4940_v31 }
0x276e   :  { %v4938_v57 = vpop.permute.xlu0 %4937 }
0x276f   :  { %4970 = vrot.lane.b32.xlu1 %v4950_v1, %s6616_s17  ;;  %v4949_v44 = vmul.f32 %v6571_v28, %v4938_v57 }
0x2770   :  { %v4944_v33 = vpop.permute.xlu1 %4943 }
0x2771   :  { %v4952_v59 = vmul.f32 %v6573_v4, %v4944_v33  ;;  %4968 = vrot.lane.b32.xlu0 %v4949_v44, %s6616_s17 }
0x2772   :  { %v4942_v30 = vpop.permute.xlu0 %4941 }
0x2773   :  { %v4951_v45 = vmul.f32 %v6575_v0, %v4942_v30  ;;  %4974 = vrot.lane.b32.xlu1 %v4952_v59, %s6616_s17 }
0x2775   :  { %4972 = vrot.lane.b32.xlu0 %v4951_v45, %s6616_s17 }
0x27e1   :  { %v4971_v63 = vpop.permute.xlu1 %4970 }
0x27e3   :  { %v4969_v12 = vpop.permute.xlu0 %4968 }
0x27e4   :  { %6220 = vmatprep.mubr.msk.f32.mxu0 %vm1017_vm3, %v4969_v12 }
0x27e5   :  { %6221 = vmatmul.mubr.msk.f32.gmra.mxu0 %vm1017_vm3, %v4971_v63  ;;  %v4975_v17 = vpop.permute.xlu1 %4974 }
0x27e7   :  { %v4973_v14 = vpop.permute.xlu0 %4972 }
0x27e8   :  { %6223 = vmatprep.mubr.msk.f32.mxu0 %vm1017_vm3, %v4973_v14 }
0x27e9   :  { %6224 = vmatmul.mubr.msk.f32.gmra.mxu0 %vm1017_vm3, %v4975_v17 }
0x28a5   :  { %v6222_v13 = vpop.f32.mrf.mxu0 }
0x28a6   :  { %v5096_v37 = vadd.f32 %v6222_v13, %v8184_v2 }
0x28a7   :  { %v5090_v36 = vpop.f32.mrf.mxu0 }
0x28a8   :  { %5118 = vst.msk [vmem:[%s8304_s11 + $0x48] sm:$0xff] %vm75_vm1, %v5096_v37  ;;  %v5091_v18 = vadd.f32 %v8184_v2, %v5090_v36 }
0x28a9   :  { %v6225_v20 = vpop.f32.mrf.mxu0 }
0x28aa   :  { %5117 = vst.msk [vmem:[%s8304_s11 + $0x40] sm:$0xff] %vm75_vm1, %v5091_v18  ;;  %v5106_v41 = vadd.f32 %v6225_v20, %v8184_v2 }
0x28ab   :  { %v5100_v34 = vpop.f32.mrf.mxu0 }
0x28ac   :  { %5120 = vst.msk [vmem:[%s8304_s11 + $0x58] sm:$0xff] %vm75_vm1, %v5106_v41  ;;  %v5101_v29 = vadd.f32 %v8184_v2, %v5100_v34 }
0x28ae   :  { %5119 = vst.msk [vmem:[%s8304_s11 + $0x50] sm:$0xff] %vm75_vm1, %v5101_v29 }

</bundles_post_ra>
